<compile_context>
chip_gen: v6e
topology: v6e:2x2x1
jax: 0.10.0
libtpu: 0.0.40
codegen_flags: <defaults>
</compile_context>

<pallas_src>
import functools

import numpy as np

import jax
import jax.numpy as jnp
from jax import lax
from jax.experimental import pallas as pl
from jax.experimental.pallas import tpu as pltpu


def _round_up(v, m):
    return ((v + m - 1) // m) * m


def _vmem_bytes(shape, dtype):
    """Approximate VMEM footprint of one buffer after (sublane, lane) tile padding."""
    itemsize = np.dtype(dtype).itemsize
    sub = {4: 8, 2: 16, 1: 32}[itemsize]
    s = [int(d) for d in shape]
    s[-1] = _round_up(s[-1], 128)
    if len(s) >= 2:
        s[-2] = _round_up(s[-2], sub)
    n = 1
    for d in s:
        n *= d
    return n * itemsize


# ---------------------------------------------------------------------------
# Pallas kernels
# ---------------------------------------------------------------------------
def _minmax_kernel(rows_ref, x_ref, min_ref, max_ref):
    """Lane-dense tiled global min/max reduction.

    rows_ref : SMEM (1,) int32   number of valid rows of the (R, 128) view
    x_ref    : (block_rows, 128) tile of the flattened activation
    min/max  : (1, 1) resident accumulators (same block every step, axis 'arbitrary')
    """
    @pl.when(pl.program_id(0) == 0)
    def _():
        min_ref[...] = jnp.full(min_ref.shape, jnp.inf, min_ref.dtype)
        max_ref[...] = jnp.full(max_ref.shape, -jnp.inf, max_ref.dtype)

    br = x_ref.shape[0]
    v = x_ref[...].astype(jnp.float32)
    ridx = lax.broadcasted_iota(jnp.int32, v.shape, 0) + pl.program_id(0) * br
    valid = ridx < rows_ref[0]
    min_ref[...] = jnp.minimum(min_ref[...], jnp.min(jnp.where(valid, v, jnp.inf)))
    max_ref[...] = jnp.maximum(max_ref[...], jnp.max(jnp.where(valid, v, -jnp.inf)))


def _global_minmax(x, block_rows=2048):
    """Global min/max of an arbitrary-shaped array via a lane-dense Pallas reduction."""
    T = int(np.prod(x.shape))
    if T % 128 != 0:
        # TODO(synk): rare ragged total size -- fall back to the XLA reduction.
        xf = x.astype(jnp.float32)
        return jnp.min(xf), jnp.max(xf)
    R = T // 128
    x2 = x.reshape(R, 128)                     # contiguous reshape: no HBM copy
    br = min(block_rows, R)                    # >= ~512 KB tiles when possible
    nb = pl.cdiv(R, br)
    rows = jnp.array([R], jnp.int32)

    mn, mx = pl.pallas_call(
        _minmax_kernel,
        out_shape=(jax.ShapeDtypeStruct((1, 1), jnp.float32),
                   jax.ShapeDtypeStruct((1, 1), jnp.float32)),
        grid=(nb,),
        in_specs=[pl.BlockSpec(memory_space=pltpu.MemorySpace.SMEM),
                  pl.BlockSpec((br, 128), lambda i: (i, 0))],
        out_specs=(pl.BlockSpec((1, 1), lambda i: (0, 0)),
                   pl.BlockSpec((1, 1), lambda i: (0, 0))),
        compiler_params=pltpu.CompilerParams(
            dimension_semantics=("arbitrary",)),
    )(rows, x2)
    return mn[0, 0], mx[0, 0]


def _quan_conv_bn_kernel(aq_ref, x_ref, w_ref, bn_s_ref, bn_b_ref, o_ref,
                         xq_ref, acc_ref, *,
                         kh_size, kw_size, pad, taps_per_dot, m_big, abits,
                         pre_relu, quantize_act, last_relu):
    """Fused ReLU -> act fake-quant -> (in-VMEM zero pad) -> shift-matmul conv -> BN -> ReLU.

    aq_ref   : SMEM (3,) f32   [1/a_scale, a_zero_point, a_scale]
    x_ref    : (n_blk, H, W, Cin)       unpadded bf16 activations
    w_ref    : (KH*KW*Cin_p, Cout_p)    pre-fake-quantized weights, bf16, im2col-K layout
    bn_*_ref : (1, Cout_p)              folded (bias + BatchNorm) scale / shift, f32
    o_ref    : (n_blk, H_out, W_out, Cout_p)
    xq_ref   : VMEM (m_total, Cin_p) f32  flattened, zero-padded, quantized activations
    acc_ref  : VMEM (m_big, Cout_p)  f32  conv accumulator (includes pad columns)
    """
    n_blk, H, W, Cin = x_ref.shape
    H_out, W_out = o_ref.shape[1], o_ref.shape[2]
    Cin_p = xq_ref.shape[1]
    Hp = H + 2 * pad
    Wp = W + 2 * pad
    qmax = float((1 << abits) - 1)

    inv_scale = aq_ref[0]
    zp = aq_ref[1]
    scale = aq_ref[2]

    # (1) Zero the staging buffer: provides the conv zero-padding ring (applied AFTER
    #     activation quantization, exactly like F.conv2d) and keeps slab-overrun rows
    #     well defined.  Per-step fill keeps every grid step self-contained (megacore safe).
    xq_ref[...] = jnp.zeros(xq_ref.shape, xq_ref.dtype)

    # (2) ReLU -> activation fake-quant -> scatter interior rows (row h of image b goes
    #     to flattened rows [b*Hp*Wp + (h+pad)*Wp + pad, +W), lanes [0, Cin)).
    for b in range(n_blk):                                    # static unroll
        x = x_ref[b].astype(jnp.float32)                      # (H, W, Cin)
        if pre_relu:
            x = jnp.maximum(x, 0.0)
        if quantize_act:
            q = jnp.clip(jnp.round(x * inv_scale - zp), 0.0, qmax)
            x = (q + zp) * scale
        base = b * Hp * Wp + pad * Wp + pad
        for h in range(H):
            xq_ref[pl.ds(base + h * Wp, W), pl.ds(0, Cin)] = x[h]

    # (3) Conv as tap-group shift-matmuls.  For tap (kh, kw) the contiguous row slab
    #     xq[kh*Wp + kw : +m_big] lines up so that accumulator row
    #     r = b*Hp*Wp + h*Wp + w is output (b, h, w) for every tap (the Wp-W_out extra
    #     columns are garbage and discarded).  Taps are fused in pairs so K >= 256.
    tap_offsets = [kh * Wp + kw for kh in range(kh_size) for kw in range(kw_size)]
    groups = [tap_offsets[i:i + taps_per_dot]
              for i in range(0, len(tap_offsets), taps_per_dot)]
    for g, offs in enumerate(groups):
        slabs = [xq_ref[pl.ds(off, m_big), :].astype(jnp.bfloat16) for off in offs]
        a = slabs[0] if len(slabs) == 1 else jnp.concatenate(slabs, axis=-1)
        wg = w_ref[pl.ds(g * taps_per_dot * Cin_p, len(offs) * Cin_p), :]
        part = jnp.dot(a, wg, preferred_element_type=jnp.float32)
        if g == 0:
            acc_ref[...] = part
        else:
            acc_ref[...] += part

    # (4) Epilogue per output row: folded bias+BN, optional ReLU, lane-dense store.
    bn_s = bn_s_ref[...]                                      # (1, Cout_p), hoisted
    bn_b = bn_b_ref[...]
    for b in range(n_blk):
        for h in range(H_out):
            r0 = b * Hp * Wp + h * Wp
            y = acc_ref[pl.ds(r0, W_out), :] * bn_s + bn_b
            if last_relu:
                y = jnp.maximum(y, 0.0)
            o_ref[b, h, :, :] = y.astype(o_ref.dtype)


# ---------------------------------------------------------------------------
# Glue (parameter preparation) in plain JAX / numpy
# ---------------------------------------------------------------------------
def channel_shuffle(x, groups):
    n, c, h, w = x.shape
    assert c % groups == 0
    x = x.reshape(n, groups, c // groups, h, w)
    x = jnp.transpose(x, (0, 2, 1, 3, 4))
    return x.reshape(n, c, h, w)


def _fake_quant_weight_per_channel(w, bits):
    """Asymmetric per-output-channel fake quantization of the conv weight."""
    qmax = float((1 << bits) - 1)
    wmin = jnp.min(w, axis=(1, 2, 3), keepdims=True)
    wmax = jnp.max(w, axis=(1, 2, 3), keepdims=True)
    scale = jnp.maximum((wmax - wmin) / qmax, 1e-8)
    zp = jnp.round(wmin / scale)
    q = jnp.clip(jnp.round(w / scale - zp), 0.0, qmax)
    return (q + zp) * scale


def quan_conv2d(x, weight, bias, gamma, beta, running_mean, running_var, *,
                stride=1, padding=1, groups=1,
                channel_shuffle_flag=0, shuffle_groups=1, last_relu=0,
                abits=8, wbits=8, first_layer=0, eps=1e-5,
                out_dtype=jnp.float32):
    """QuanConv2d.forward. x: (N, Cin, H, W) NCHW; returns (N, Cout, H_out, W_out)."""
    # TODO(synk): stride > 1 is not implemented (nin_gc QuanConv2d layers are stride 1).
    assert stride == 1
    N, Cin, H, W = x.shape
    Cout = int(weight.shape[0])
    KH, KW = int(weight.shape[2]), int(weight.shape[3])
    assert Cin % groups == 0 and Cout % groups == 0
    assert int(weight.shape[1]) == Cin // groups

    # bf16 activation feed: values are immediately 8-bit fake-quantized, so this is
    # within quantization noise and halves activation HBM / DMA traffic.
    x_bf = x.astype(jnp.bfloat16)

    # --- per-layer activation quantization params (lane-dense Pallas min/max) ---
    # min/max is permutation-invariant (channel shuffle) and ReLU is monotone, so it
    # is taken on the raw NCHW tensor and clamped at 0 afterwards.
    # TODO(synk): AveragedRangeTracker keeps a training-time running average; here the
    # current batch's range is used (== first training step / calibration batch).
    if not first_layer:
        xmin, xmax = _global_minmax(x_bf)
        a_min = jnp.maximum(xmin, 0.0)
        a_max = jnp.maximum(xmax, 0.0)
        qmax_a = float((1 << abits) - 1)
        a_scale = jnp.maximum((a_max - a_min) / qmax_a, 1e-8)
        a_zp = jnp.round(a_min / a_scale)
        aq = jnp.stack([1.0 / a_scale, a_zp, a_scale]).astype(jnp.float32)
    else:
        aq = jnp.array([1.0, 0.0, 1.0], jnp.float32)

    # --- weight preparation (O(weight) work, negligible vs activations) ---
    qw = _fake_quant_weight_per_channel(weight.astype(jnp.float32), wbits)
    if groups > 1:
        # Grouped conv as a dense conv with an exact block-diagonal weight.
        Cig, Cog = Cin // groups, Cout // groups
        qw_dense = jnp.zeros((Cout, Cin, KH, KW), jnp.float32)
        for g in range(groups):
            qw_dense = qw_dense.at[g * Cog:(g + 1) * Cog,
                                   g * Cig:(g + 1) * Cig].set(qw[g * Cog:(g + 1) * Cog])
        qw = qw_dense
    if channel_shuffle_flag and shuffle_groups > 1:
        # Fold channel_shuffle into the weight's Cin axis (commutes with the elementwise
        # ReLU and the per-layer quantizer) -> no activation HBM pass for the shuffle.
        assert Cin % shuffle_groups == 0
        idx_shuf = np.arange(Cin).reshape(shuffle_groups,
                                          Cin // shuffle_groups).T.reshape(-1)
        qw = qw[:, np.argsort(idx_shuf), :, :]

    Cin_p = _round_up(Cin, 128)
    Cout_p = _round_up(Cout, 128)
    w_hwio = jnp.transpose(qw, (2, 3, 1, 0))                       # (KH, KW, Cin, Cout)
    w_pad = jnp.zeros((KH, KW, Cin_p, Cout_p), jnp.float32)
    w_pad = w_pad.at[:, :, :Cin, :Cout].set(w_hwio)
    w2d = w_pad.reshape(KH * KW * Cin_p, Cout_p).astype(jnp.bfloat16)

    # conv bias + eval-mode BatchNorm folded into one per-channel scale/shift.
    # TODO(synk): training-mode BN (batch statistics + momentum update) not modeled.
    bn_scale = (gamma / jnp.sqrt(running_var + eps)).astype(jnp.float32)
    bn_shift = (beta + (bias - running_mean) * bn_scale).astype(jnp.float32)
    bn_s = jnp.zeros((1, Cout_p), jnp.float32).at[0, :Cout].set(bn_scale)
    bn_b = jnp.zeros((1, Cout_p), jnp.float32).at[0, :Cout].set(bn_shift)

    # Only remaining wrapper-side activation pass: NCHW -> NHWC (bf16).
    # TODO(synk): expose an NHWC / Cout_p-native entry point so chained layers skip this.
    x_nhwc = jnp.transpose(x_bf, (0, 2, 3, 1))

    H_out = H + 2 * padding - KH + 1
    W_out = W + 2 * padding - KW + 1
    Hp, Wp = H + 2 * padding, W + 2 * padding

    # Pack several images per grid step when spatial dims are small so matmul M stays big.
    n_blk = 1
    per_img_m = H_out * Wp
    if per_img_m < 256:
        target = min(N, -(-256 // per_img_m))
        for cand in range(target, 0, -1):
            if N % cand == 0:
                n_blk = cand
                break

    m_big = (n_blk - 1) * Hp * Wp + H_out * Wp             # matmul M (incl. pad columns)
    m_total = _round_up(n_blk * Hp * Wp + (KW - 1), 8)     # staging rows (+ slab overrun)
    n_taps = KH * KW
    taps_per_dot = max(1, min(n_taps, 256 // Cin_p))       # K >= 256 per dot when possible
    # TODO(synk): int8 MXU path (uint8 act codes x int8 weight codes, int32 accumulate,
    # zero-point correction folded into the BN epilogue) for v5e/v6e; keep bf16 on v7x.

    kernel = functools.partial(
        _quan_conv_bn_kernel,
        kh_size=KH, kw_size=KW, pad=padding,
        taps_per_dot=taps_per_dot, m_big=m_big, abits=abits,
        pre_relu=(not first_layer), quantize_act=(not first_layer),
        last_relu=bool(last_relu))

    # VMEM budget from actual tile-padded buffer sizes; cap at v7x's 64 MiB.
    vmem_need = (
        2 * _vmem_bytes((n_blk, H, W, Cin), jnp.bfloat16)              # x block (dbuf)
        + 2 * _vmem_bytes((KH * KW * Cin_p, Cout_p), jnp.bfloat16)     # weights
        + 4 * _vmem_bytes((1, Cout_p), jnp.float32)                    # bn scale/shift
        + 2 * _vmem_bytes((n_blk, H_out, W_out, Cout_p), out_dtype)    # out block (dbuf)
        + _vmem_bytes((m_total, Cin_p), jnp.float32)                   # xq scratch
        + _vmem_bytes((m_big, Cout_p), jnp.float32))                   # acc scratch
    vmem_limit = int(min(max(2 * vmem_need + (8 << 20), 32 << 20), 64 << 20))

    # TODO(synk): for feature maps much larger than CIFAR, add a second grid axis over
    # output-row tiles (KH-1 halo) to bound xq/acc VMEM and feed v7x's two TensorCores.
    out = pl.pallas_call(
        kernel,
        out_shape=jax.ShapeDtypeStruct((N, H_out, W_out, Cout_p), out_dtype),
        grid=(N // n_blk,),
        in_specs=[
            pl.BlockSpec(memory_space=pltpu.MemorySpace.SMEM),               # quant scalars
            pl.BlockSpec((n_blk, H, W, Cin), lambda n: (n, 0, 0, 0)),        # activations
            pl.BlockSpec((KH * KW * Cin_p, Cout_p), lambda n: (0, 0)),       # weights
            pl.BlockSpec((1, Cout_p), lambda n: (0, 0)),                     # bn scale
            pl.BlockSpec((1, Cout_p), lambda n: (0, 0)),                     # bn shift
        ],
        out_specs=pl.BlockSpec((n_blk, H_out, W_out, Cout_p),
                               lambda n: (n, 0, 0, 0)),
        scratch_shapes=[
            pltpu.VMEM((m_total, Cin_p), jnp.float32),    # padded, flattened activations
            pltpu.VMEM((m_big, Cout_p), jnp.float32),     # f32 conv accumulator
        ],
        compiler_params=pltpu.CompilerParams(
            dimension_semantics=("parallel",),
            vmem_limit_bytes=vmem_limit),
    )(aq, x_nhwc, w2d, bn_s, bn_b)

    out = out[:, :, :, :Cout]                              # strip lane padding
    return jnp.transpose(out, (0, 3, 1, 2))


# ---------------------------------------------------------------------------
# Pure-JAX reference (mirrors the PyTorch forward; activation/weight cast to bf16
# at the same points as the kernel so the comparison isolates kernel structure)
# ---------------------------------------------------------------------------
def _reference_forward(x, weight, bias, gamma, beta, running_mean, running_var, *,
                       stride=1, padding=1, groups=1, channel_shuffle_flag=0,
                       shuffle_groups=1, last_relu=0, abits=8, wbits=8,
                       first_layer=0, eps=1e-5):
    x = x.astype(jnp.bfloat16).astype(jnp.float32)         # mirror bf16 activation feed
    if not first_layer:
        x = jnp.maximum(x, 0.0)
    if channel_shuffle_flag:
        x = channel_shuffle(x, shuffle_groups)
    if not first_layer:
        qmax_a = float((1 << abits) - 1)
        a_min, a_max = jnp.min(x), jnp.max(x)
        a_scale = jnp.maximum((a_max - a_min) / qmax_a, 1e-8)
        a_zp = jnp.round(a_min / a_scale)
        a_inv = 1.0 / a_scale                              # same reciprocal as the kernel
        q = jnp.clip(jnp.round(x * a_inv - a_zp), 0.0, qmax_a)
        x = (q + a_zp) * a_scale
    qw = _fake_quant_weight_per_channel(weight.astype(jnp.float32), wbits)
    y = lax.conv_general_dilated(
        x.astype(jnp.bfloat16), qw.astype(jnp.bfloat16),
        window_strides=(stride, stride),
        padding=((padding, padding), (padding, padding)),
        dimension_numbers=("NCHW", "OIHW", "NCHW"),
        feature_group_count=groups,
        preferred_element_type=jnp.float32)
    y = y + bias.reshape(1, -1, 1, 1)
    y = ((y - running_mean.reshape(1, -1, 1, 1))
         / jnp.sqrt(running_var.reshape(1, -1, 1, 1) + eps)
         * gamma.reshape(1, -1, 1, 1) + beta.reshape(1, -1, 1, 1))
    if last_relu:
        y = jnp.maximum(y, 0.0)
    return y


if __name__ == "__main__":
    key = jax.random.PRNGKey(0)
    ks = jax.random.split(key, 16)

    # --- standalone check of the lane-dense min/max (multi-block + masked ragged tail) ---
    r = jax.random.normal(ks[15], (3000, 128), jnp.float32)
    mn, mx = _global_minmax(r)
    assert abs(float(mn) - float(jnp.min(r))) < 1e-6
    assert abs(float(mx) - float(jnp.max(r))) < 1e-6

    def make_case(keys, N, Cin, H, W, Cout, K, groups=1):
        x = jax.random.normal(keys[0], (N, Cin, H, W), jnp.float32)
        weight = 0.2 * jax.random.normal(keys[1], (Cout, Cin // groups, K, K),
                                         jnp.float32)
        bias = 0.05 * jax.random.normal(keys[2], (Cout,), jnp.float32)
        gamma = 1.0 + 0.1 * jax.random.normal(keys[3], (Cout,), jnp.float32)
        beta = 0.1 * jax.random.normal(keys[4], (Cout,), jnp.float32)
        rmean = 0.1 * jax.random.normal(keys[5], (Cout,), jnp.float32)
        rvar = jnp.abs(jax.random.normal(keys[6], (Cout,), jnp.float32)) + 0.5
        return x, weight, bias, gamma, beta, rmean, rvar

    # --- case 1: 16x16 image, shuffle + last ReLU (one image per grid step) ---
    args1 = make_case(ks[0:7], 2, 4, 16, 16, 8, 3)
    cfg1 = dict(stride=1, padding=1, groups=1, channel_shuffle_flag=1,
                shuffle_groups=2, last_relu=1, abits=8, wbits=8, first_layer=0)
    y1 = jax.block_until_ready(quan_conv2d(*args1, **cfg1))
    y1_ref = _reference_forward(*args1, **cfg1)
    assert y1.shape == (2, 8, 16, 16), y1.shape
    err1 = float(jnp.max(jnp.abs(y1 - y1_ref)))
    if err1 > 5e-3:
        raise AssertionError(f"case1 mismatch vs reference: {err1}")

    # --- case 2: grouped conv, small spatial (8x8) -> four images packed per grid step ---
    args2 = make_case(ks[7:14], 4, 8, 8, 8, 16, 3, groups=2)
    cfg2 = dict(stride=1, padding=1, groups=2, channel_shuffle_flag=1,
                shuffle_groups=2, last_relu=0, abits=8, wbits=8, first_layer=0)
    y2 = jax.block_until_ready(quan_conv2d(*args2, **cfg2))
    y2_ref = _reference_forward(*args2, **cfg2)
    assert y2.shape == (4, 16, 8, 8), y2.shape
    err2 = float(jnp.max(jnp.abs(y2 - y2_ref)))
    if err2 > 5e-3:
        raise AssertionError(f"case2 mismatch vs reference: {err2}")

    print("KERNEL_OK")
</pallas_src>

<mosaic_0001>
module attributes {stable_mosaic.version = 11 : i64} {
  func.func @_minmax_kernel(%arg0: i32, %arg1: memref<1xi32, #tpu.memory_space<smem>>, %arg2: memref<2048x128xf32, #tpu.memory_space<vmem>>, %arg3: memref<1x1xf32, #tpu.memory_space<vmem>>, %arg4: memref<1x1xf32, #tpu.memory_space<vmem>>) attributes {dimension_semantics = [#tpu.dimension_semantics<arbitrary>], iteration_bounds = array<i64: 2>, scalar_prefetch = 0 : i64, scratch_operands = 0 : i64, tpu.core_type = #tpu.core_type<tc>, window_params = [{transform_indices = @transform_0, window_bounds = array<i64: 1>}, {transform_indices = @transform_1, window_bounds = array<i64: 2048, 128>}, {pipeline_mode = #tpu.pipeline_mode<synchronous>, transform_indices = @transform_2, window_bounds = array<i64: 1, 1>}, {pipeline_mode = #tpu.pipeline_mode<synchronous>, transform_indices = @transform_3, window_bounds = array<i64: 1, 1>}]} {
    %c0_i32 = arith.constant 0 : i32
    %0 = arith.cmpi eq, %arg0, %c0_i32 : i32
    %1 = arith.extui %0 : i1 to i32
    %c0_i32_0 = arith.constant 0 : i32
    %2 = arith.cmpi ne, %1, %c0_i32_0 : i32
    scf.if %2 {
      %cst_14 = arith.constant 0x7F800000 : f32
      %31 = vector.broadcast %cst_14 : f32 to vector<1x1xf32>
      %c0_15 = arith.constant 0 : index
      %c0_16 = arith.constant 0 : index
      %32 = vector.load %arg3[%c0_15, %c0_16] : memref<1x1xf32, #tpu.memory_space<vmem>>, vector<1x1xf32>
      tpu.vector_store %arg3[%c0_15, %c0_16], %31 {strides = array<i32>} : memref<1x1xf32, #tpu.memory_space<vmem>>, vector<1x1xf32>,
      %cst_17 = arith.constant 0xFF800000 : f32
      %33 = vector.broadcast %cst_17 : f32 to vector<1x1xf32>
      %c0_18 = arith.constant 0 : index
      %c0_19 = arith.constant 0 : index
      %34 = vector.load %arg4[%c0_18, %c0_19] : memref<1x1xf32, #tpu.memory_space<vmem>>, vector<1x1xf32>
      tpu.vector_store %arg4[%c0_18, %c0_19], %33 {strides = array<i32>} : memref<1x1xf32, #tpu.memory_space<vmem>>, vector<1x1xf32>,
    } else {
    }
    %c0 = arith.constant 0 : index
    %c0_1 = arith.constant 0 : index
    %3 = vector.load %arg2[%c0, %c0_1] : memref<2048x128xf32, #tpu.memory_space<vmem>>, vector<2048x128xf32>
    %4 = tpu.iota {dimensions = array<i32: 0>} : vector<2048x128xi32>
    %c2048_i32 = arith.constant 2048 : i32
    %5 = arith.muli %arg0, %c2048_i32 : i32
    %6 = vector.broadcast %5 : i32 to vector<2048x128xi32>
    %7 = arith.addi %4, %6 : vector<2048x128xi32>
    %c0_2 = arith.constant 0 : index
    %8 = memref.load %arg1[%c0_2] : memref<1xi32, #tpu.memory_space<smem>>
    %9 = vector.broadcast %8 : i32 to vector<2048x128xi32>
    %10 = arith.cmpi slt, %7, %9 : vector<2048x128xi32>
    %c0_3 = arith.constant 0 : index
    %c0_4 = arith.constant 0 : index
    %11 = vector.load %arg3[%c0_3, %c0_4] : memref<1x1xf32, #tpu.memory_space<vmem>>, vector<1x1xf32>
    %cst = arith.constant 0x7F800000 : f32
    %12 = vector.broadcast %cst : f32 to vector<2048x128xf32>
    %13 = arith.select %10, %3, %12 : vector<2048x128xi1>, vector<2048x128xf32>
    %14 = vector.shape_cast %13 : vector<2048x128xf32> to vector<1x2048x128xf32>
    %cst_5 = arith.constant dense<0x7F800000> : vector<1xf32>
    %15 = vector.multi_reduction <minimumf>, %14, %cst_5 [1, 2] : vector<1x2048x128xf32> to vector<1xf32>
    %16 = vector.shape_cast %15 : vector<1xf32> to vector<1x1x1xf32>
    %17 = vector.extract %16[0, 0, 0] : f32 from vector<1x1x1xf32>
    %18 = vector.broadcast %17 : f32 to vector<1x1xf32>
    %19 = arith.minimumf %11, %18 : vector<1x1xf32>
    %c0_6 = arith.constant 0 : index
    %c0_7 = arith.constant 0 : index
    %20 = vector.load %arg3[%c0_6, %c0_7] : memref<1x1xf32, #tpu.memory_space<vmem>>, vector<1x1xf32>
    tpu.vector_store %arg3[%c0_6, %c0_7], %19 {strides = array<i32>} : memref<1x1xf32, #tpu.memory_space<vmem>>, vector<1x1xf32>,
    %c0_8 = arith.constant 0 : index
    %c0_9 = arith.constant 0 : index
    %21 = vector.load %arg4[%c0_8, %c0_9] : memref<1x1xf32, #tpu.memory_space<vmem>>, vector<1x1xf32>
    %cst_10 = arith.constant 0xFF800000 : f32
    %22 = vector.broadcast %cst_10 : f32 to vector<2048x128xf32>
    %23 = arith.select %10, %3, %22 : vector<2048x128xi1>, vector<2048x128xf32>
    %24 = vector.shape_cast %23 : vector<2048x128xf32> to vector<1x2048x128xf32>
    %cst_11 = arith.constant dense<0xFF800000> : vector<1xf32>
    %25 = vector.multi_reduction <maximumf>, %24, %cst_11 [1, 2] : vector<1x2048x128xf32> to vector<1xf32>
    %26 = vector.shape_cast %25 : vector<1xf32> to vector<1x1x1xf32>
    %27 = vector.extract %26[0, 0, 0] : f32 from vector<1x1x1xf32>
    %28 = vector.broadcast %27 : f32 to vector<1x1xf32>
    %29 = arith.maximumf %21, %28 : vector<1x1xf32>
    %c0_12 = arith.constant 0 : index
    %c0_13 = arith.constant 0 : index
    %30 = vector.load %arg4[%c0_12, %c0_13] : memref<1x1xf32, #tpu.memory_space<vmem>>, vector<1x1xf32>
    tpu.vector_store %arg4[%c0_12, %c0_13], %29 {strides = array<i32>} : memref<1x1xf32, #tpu.memory_space<vmem>>, vector<1x1xf32>,
    return
  }
  func.func @transform_0(%arg0: i32) -> i32 {
    %c0_i32 = arith.constant 0 : i32
    %c0_i32_0 = arith.constant 0 : i32
    return %c0_i32 : i32
  }
  func.func @transform_1(%arg0: i32) -> (i32, i32) {
    %c0_i32 = arith.constant 0 : i32
    %c0_i32_0 = arith.constant 0 : i32
    return %arg0, %c0_i32 : i32, i32
  }
  func.func @transform_2(%arg0: i32) -> (i32, i32) {
    %c0_i32 = arith.constant 0 : i32
    %c0_i32_0 = arith.constant 0 : i32
    %c0_i32_1 = arith.constant 0 : i32
    return %c0_i32, %c0_i32_0 : i32, i32
  }
  func.func @transform_3(%arg0: i32) -> (i32, i32) {
    %c0_i32 = arith.constant 0 : i32
    %c0_i32_0 = arith.constant 0 : i32
    %c0_i32_1 = arith.constant 0 : i32
    return %c0_i32, %c0_i32_0 : i32, i32
  }
}

</mosaic_0001>

<bundles_post_ra>
// kernel: tpu_custom_call.1
= control target key start
LH: loop header
LB: loop body
LE: loop exit
PB: predicated region body
PF: predicated region fallthrough
CT: control target
= control target key end

     0   :  { %s7045_s0 = inlined_call_operand.<no memory space> [shape: s32[1], index: 0, kind: input, shape index: {}]   ;;  %s7046_s1 = inlined_call_operand.hbm [shape: f32[3000,128], index: 1, kind: input, shape index: {}]   ;;  %s7047_s2 = inlined_call_operand.hbm [shape: f32[1,1], index: 2, kind: output, shape index: {0}]   ;;  %s7048_s3 = inlined_call_operand.hbm [shape: f32[1,1], index: 3, kind: output, shape index: {1}]  }
   0x1   :  { %9 = sst [smem:[#allocation2]] %s7045_s0 }
   0x2   :  { %10 = vsyncpa [#allocation4], 0 }
   0x3   :  { %12 = vsyncpa [#allocation4 + $0x1], 0 }
   0x4   :  { %13 = vsyncpa [#allocation5], 0 }
   0x5   :  { %14 = vsyncpa [#allocation8], 0  ;;  %s2576_s14 = smov 0   ;;  %s2578_s15 = smov 0  }
   0x6   :  { %s2580_s16 = smov 0   ;;  %s2582_s17 = smov 0  }
   0x7 LB: > { %s2595_s0 = sadd.s32 4294967295, %s2544_s17   ;;  %s2598_s18 = sadd.s32 1, %s2544_s17   ;;  %s2544_s17 = sphi %s2582_s17, %s7061_s17   ;;  %s2540_s16 = sphi %s2580_s16, %s7060_s16   ;;  %s2536_s15 = sphi %s2578_s15, %s7059_s15   ;;  %s2532_s14 = sphi %s2576_s14, %s7058_s14  }
   0x8   : > { %s45_s19 = ssub.s32 %s2544_s17, %s2598_s18  ;;  %s48_s20 = sadd.s32 1, %s2540_s16 }
   0x9   : > { %p46_p0 = scmp.eq.s32.totalorder %s45_s19, 0  ;;  %p55_p1 = scmp.ne.s32.totalorder %s2540_s16, %s2536_s15 }
   0xa   : > { %p56_p2 = scmp.eq.s32.totalorder %s2544_s17, 0  ;;  %p61_p3 = scmp.ne.s32.totalorder %s2536_s15, %s2532_s14 }
   0xb   : > { %s2608_s21 = scalar_select %p46_p0, %s2540_s16, %s48_s20  }
   0xc   : > { %p57_p4 = por %p56_p2, %p55_p1  ;;  %p62_p5 = scmp.eq.s32.totalorder %s2595_s0, 0 }
   0xd   : > { %p2354_p7 = scmp.ge.s32.totalorder %s2544_s17, 2 }
   0xe   : > { %p2611_p6 = por %p62_p5, %p61_p3 }
   0xf   : > { %126 = sbr.rel (%p2354_p7) target bundleno = 52 (0x34), region = 20 }
  0x14   : > { %129 = sbr.rel (!%p57_p4) target bundleno = 52 (0x34), region = 24  ;;  %s130_s23 = sand.u32 (%p57_p4), 1, %s2540_s16  }
  0x15   : > { %s2356_s24 = sshll.u32 (%p57_p4), %s2544_s17, 8  ;;  %s2355_s25 = sshll.u32 (%p57_p4), %s130_s23, 11 }
  0x16   : > { %s136_s26 = ssub.s32 (%p57_p4), 375, %s2356_s24  ;;  %s2621_s29 = scalar_lea.sflag (%p57_p4), [#allocation4], %s130_s23 }
  0x17   : > { %p137_p8 = scmp.lt.s32.totalorder (%p57_p4), %s136_s26, 256  ;;  %s134_s30 = scalar_lea.vmem (%p57_p4), [#allocation3], %s2355_s25 }
  0x19   : > { %s7063_s26 = smov (!%p137_p8, %s136_s26), 256 }
  0x1a   : > { %s2618_s27 = sshll.u32 %s7063_s26, 7 }
  0x1b   : > { %s141_s28 = ssub.s32 32768, %s2618_s27 }
  0x1c   : > { %142 = vsyncadd %s2621_s29, %s141_s28  ;;  %p2358_p9 = scmp.ne.s32.totalorder %s2618_s27, 0  ;;  %s2372_s4 = sshll.u32 %s2544_s17, 15 }
  0x1d   : > { %s2629_s7 = scalar_lea.hbm %s7046_s1, %s2372_s4  ;;  %s147_s8 = sshll.u32 %s134_s30, 4  ;;  %s2631_s8 = int_to_ptr.vmem [resolvable:$true] %s147_s8 }
  0x1e   : > { %s2428_s9 = scalar_lea.hbm %s2629_s7, %s2618_s27  ;;  %s2432_s12 = scalar_lea.hbm %s7046_s1, 48000 }
  0x1f   : > { %p2429_p10 = scmp.ne.s32.totalorder %s2629_s7, %s2428_s9  ;;  %p2433_p13 = scmp.lt.s32.totalorder %s2629_s7, %s7046_s1 }
  0x20   : > { %p2434_p0 = scmp.lt.s32.totalorder %s2432_s12, %s2428_s9 }
  0x21   : > { %p2430_p11 = pnand %p2429_p10, %p2358_p9 }
  0x22   : > { %p2435_p1 = por %p2434_p0, %p2433_p13 }
  0x23   : > { %p2431_p12 = pneg %p2430_p11 }
  0x25   : > { %p2436_p2 = pnand %p2435_p1, %p2431_p12 }
  0x27   : > { %2439 = shalt.err (!%p2436_p2)
}
  0x28   : > { %s2440_s19 = scalar_lea.vmem %s2631_s8, %s2618_s27  ;;  %s2546_s20 = smov [#allocation3]  }
  0x29   : > { %p2441_p3 = scmp.ne.s32.totalorder %s2631_s8, %s2440_s19  ;;  %s2444_s23 = sshll.u32 %s2546_s20, 4  ;;  %s2445_s23 = int_to_ptr.vmem [resolvable:$false] %s2444_s23 }
  0x2a   : > { %s2446_s24 = scalar_lea.vmem %s2445_s23, 65536  ;;  %p2447_p7 = scmp.lt.s32.totalorder %s2631_s8, %s2445_s23 }
  0x2b   : > { %p2442_p4 = pnand %p2441_p3, %p2358_p9  ;;  %p2448_p8 = scmp.lt.s32.totalorder %s2446_s24, %s2440_s19 }
  0x2d   : > { %p2443_p5 = pneg %p2442_p4  ;;  %p2449_p10 = por %p2448_p8, %p2447_p7 }
  0x2f   : > { %p2450_p11 = pnand %p2449_p10, %p2443_p5 }
  0x31   : > { %2453 = shalt.err (!%p2450_p11)
}
  0x32   : > { %s2547_s25 = smov 128   ;;  %s2548_s26 = smov 8  }
  0x33   : > { %153 = dma.hbm_to_vmem [thread:$0]  (%p2358_p9), %s2629_s7, %s2618_s27, %s2631_s8, %s2621_s29, %s2547_s25, %s2547_s25, %s2548_s26  }
  0x34 PF: > { %p2362_p12 = scmp.ge.s32.totalorder %s2544_s17, 1  ;;  %p155_p13 = scmp.lt.s32.totalorder %s2544_s17, 3 }
  0x36   : > { %p156_p0 = pnand %p2362_p12, %p155_p13 }
  0x37   : > { %s161_s28 = sand.u32 (!%p156_p0), 1, %s2536_s15  }
  0x38   : > { %159 = sbr.rel (%p156_p0) target bundleno = 809 (0x329), region = 28  ;;  %s2363_s30 = sshll.u32 (!%p156_p0), %s161_s28, 11 }
  0x39   : > { %s162_s4 = scalar_lea.sflag (!%p156_p0), [#allocation4], %s161_s28  ;;  %s2660_s5 = scalar_lea.vmem (!%p156_p0), [#allocation3], %s2363_s30 }
  0x3d   : > { %2519 = dma.done.wait (%p2611_p6), %s162_s4, 32768  }
  0x3e   : > { %2521 = vsyncadd (%p2611_p6), %s162_s4, 4294934528  ;;  %p2364_p9 = scmp.ne.s32.totalorder %s2595_s0, 0 }
  0x40   : > { %191 = sbr.rel (%p2364_p9) target bundleno = 71 (0x47), region = 36 }
  0x45   : > { %vm192_vm0 = vcmask 0   ;;  %v2549_v0 = vmov inf   ;;  %v2550_v1 = vmov -inf  }
  0x46   : > { %193 = vst.msk [vmem:[#allocation6] sm:$0x1] %vm192_vm0, %v2549_v0  ;;  %194 = vst.msk [vmem:[#allocation7] sm:$0x1] %vm192_vm0, %v2550_v1 }
  0x47 PF: > { %v451_v2 = vlaneseq  ;;  %s966_s17 = sld [smem:[#allocation2]]  ;;  %s2365_s27 = sshll.u32 %s2595_s0, 11  ;;  %v2694_v17 = vld [vmem:[%s2660_s5 + $0x40] sm:$0xff]  ;;  %v2697_v18 = vld [vmem:[%s2660_s5 + $0x48] sm:$0xff]  ;;  %v2700_v19 = vld [vmem:[%s2660_s5 + $0x50] sm:$0xff] }
  0x48   : > { %v2673_v7 = vstv %s2365_s27  ;;  %v2712_v21 = vld [vmem:[%s2660_s5 + $0x58] sm:$0xff]  ;;  %v2733_v27 = vld [vmem:[%s2660_s5 + $0x60] sm:$0xff]  ;;  %v2746_v32 = vld [vmem:[%s2660_s5 + $0x68] sm:$0xff]  ;;  %s2551_s22 = smov [#allocation6]   ;;  %p2386_p6 = scmp.eq.s32.totalorder %s2595_s0, 1 }
  0x49   : > { %v2667_v3 = vshrl.u32 %v451_v2, 7  ;;  %v2759_v37 = vld [vmem:[%s2660_s5 + $0x70] sm:$0xff]  ;;  %v2772_v42 = vld [vmem:[%s2660_s5 + $0x78] sm:$0xff]  ;;  %v2785_v47 = vld [vmem:[%s2660_s5 + $0x80] sm:$0xff]  ;;  %s2280_s29 = sshll.u32 %s2551_s22, 4  ;;  %s2281_s29 = int_to_ptr.vmem [resolvable:$true] %s2280_s29 }
  0x4a   : > { %v2798_v52 = vld [vmem:[%s2660_s5 + $0x88] sm:$0xff]  ;;  %v2811_v57 = vld [vmem:[%s2660_s5 + $0x90] sm:$0xff]  ;;  %v2824_v62 = vld [vmem:[%s2660_s5 + $0x98] sm:$0xff]  ;;  %s2454_s7 = scalar_lea.vmem %s2281_s29, 16  ;;  %s2460_s8 = scalar_lea.vmem %s2281_s29, 32 }
  0x4b   : > { %v460_v4 = vadd.s32 64, %v2667_v3  ;;  %v461_v5 = vadd.s32 72, %v2667_v3  ;;  %v462_v6 = vadd.s32 80, %v2667_v3  ;;  %v463_v8 = vadd.s32 88, %v2667_v3  ;;  %p2455_p1 = scmp.ne.s32.totalorder %s2281_s29, %s2454_s7  ;;  %p2461_p4 = scmp.lt.s32.totalorder %s2281_s29, %s2281_s29 }
  0x4c   : > { %v464_v9 = vadd.s32 96, %v2667_v3  ;;  %v465_v14 = vadd.s32 104, %v2667_v3  ;;  %v466_v16 = vadd.s32 112, %v2667_v3  ;;  %v467_v22 = vadd.s32 120, %v2667_v3  ;;  %p2462_p5 = scmp.lt.s32.totalorder %s2460_s8, %s2454_s7 }
  0x4d   : > { %v2678_v10 = vadd.s32 %v2673_v7, %v460_v4  ;;  %v2681_v11 = vadd.s32 %v2673_v7, %v461_v5  ;;  %v2684_v12 = vadd.s32 %v2673_v7, %v462_v6  ;;  %v2686_v13 = vstv %s966_s17  ;;  %v2837_v4 = vld [vmem:[%s2660_s5 + $0xa0] sm:$0xff]  ;;  %p2456_p2 = pnand %p2455_p1, %p2386_p6 }
  0x4e   : > { %v2690_v15 = vadd.s32 %v2673_v7, %v463_v8  ;;  %v2703_v20 = vadd.s32 %v2673_v7, %v464_v9  ;;  %v2716_v23 = vadd.s32 %v2673_v7, %v465_v14  ;;  %v468_v28 = vadd.s32 128, %v2667_v3  ;;  %v2850_v14 = vld [vmem:[%s2660_s5 + $0xa8] sm:$0xff]  ;;  %p2463_p7 = por %p2462_p5, %p2461_p4 }
  0x4f   : > { %vm976_vm1 = vcmp.lt.s32.totalorder %v2678_v10, %v2686_v13  ;;  %vm977_vm2 = vcmp.lt.s32.totalorder %v2681_v11, %v2686_v13  ;;  %vm978_vm3 = vcmp.lt.s32.totalorder %v2684_v12, %v2686_v13  ;;  %v2737_v29 = vadd.s32 %v2673_v7, %v466_v16  ;;  %p2457_p3 = pneg %p2456_p2 }
  0x50   : > { %vm979_vm4 = vcmp.lt.s32.totalorder %v2690_v15, %v2686_v13  ;;  %v1233_v24 = vsel %vm976_vm1, %v2694_v17, inf  ;;  %v1234_v25 = vsel %vm977_vm2, %v2697_v18, inf  ;;  %v1235_v26 = vsel %vm978_vm3, %v2700_v19, inf }
  0x51   : > { %vm980_vm5 = vcmp.lt.s32.totalorder %v2703_v20, %v2686_v13  ;;  %v1485_v30 = vmin.f32 %v1234_v25, %v1233_v24  ;;  %v1236_v31 = vsel %vm979_vm4, %v2712_v21, inf  ;;  %v469_v33 = vadd.s32 136, %v2667_v3  ;;  %p2464_p8 = pnand %p2463_p7, %p2457_p3 }
  0x52   : > { %v2750_v34 = vadd.s32 %v2673_v7, %v467_v22  ;;  %vm981_vm6 = vcmp.lt.s32.totalorder %v2716_v23, %v2686_v13  ;;  %v1237_v36 = vsel %vm980_vm5, %v2733_v27, inf  ;;  %v470_v38 = vadd.s32 144, %v2667_v3 }
  0x53   : > { %v1486_v35 = vmin.f32 %v1235_v26, %v1485_v30  ;;  %v2763_v39 = vadd.s32 %v2673_v7, %v468_v28  ;;  %vm982_vm7 = vcmp.lt.s32.totalorder %v2737_v29, %v2686_v13  ;;  %v1238_v41 = vsel %vm981_vm6, %v2746_v32, inf  ;;  %v2864_v28 = vld [vmem:[%s2660_s5 + $0xb0] sm:$0xff] }
  0x54   : > { %v471_v43 = vadd.s32 152, %v2667_v3  ;;  %v2776_v44 = vadd.s32 %v2673_v7, %v469_v33  ;;  %vm983_vm8 = vcmp.lt.s32.totalorder %v2750_v34, %v2686_v13  ;;  %v1239_v46 = vsel %vm982_vm7, %v2759_v37, inf }
  0x55   : > { %v1487_v40 = vmin.f32 %v1236_v31, %v1486_v35  ;;  %v472_v48 = vadd.s32 160, %v2667_v3  ;;  %v2789_v49 = vadd.s32 %v2673_v7, %v470_v38  ;;  %vm984_vm9 = vcmp.lt.s32.totalorder %v2763_v39, %v2686_v13 }
  0x56   : > { %v1240_v51 = vsel %vm983_vm8, %v2772_v42, inf  ;;  %v473_v53 = vadd.s32 168, %v2667_v3  ;;  %v2802_v54 = vadd.s32 %v2673_v7, %v471_v43  ;;  %vm985_vm10 = vcmp.lt.s32.totalorder %v2776_v44, %v2686_v13 }
  0x57   : > { %v1488_v45 = vmin.f32 %v1237_v36, %v1487_v40  ;;  %v1241_v56 = vsel %vm984_vm9, %v2785_v47, inf  ;;  %v474_v58 = vadd.s32 176, %v2667_v3  ;;  %v2815_v59 = vadd.s32 %v2673_v7, %v472_v48 }
  0x58   : > { %vm986_vm11 = vcmp.lt.s32.totalorder %v2789_v49, %v2686_v13  ;;  %v1242_v61 = vsel %vm985_vm10, %v2798_v52, inf  ;;  %v475_v63 = vadd.s32 184, %v2667_v3  ;;  %v2828_v0 = vadd.s32 %v2673_v7, %v473_v53 }
  0x59   : > { %v1489_v50 = vmin.f32 %v1238_v41, %v1488_v45  ;;  %vm987_vm12 = vcmp.lt.s32.totalorder %v2802_v54, %v2686_v13  ;;  %v1243_v2 = vsel %vm986_vm11, %v2811_v57, inf  ;;  %v476_v5 = vadd.s32 192, %v2667_v3  ;;  %v2889_v41 = vld [vmem:[%s2660_s5 + $0xb8] sm:$0xff] }
  0x5a   : > { %v2841_v6 = vadd.s32 %v2673_v7, %v474_v58  ;;  %vm988_vm13 = vcmp.lt.s32.totalorder %v2815_v59, %v2686_v13  ;;  %v1244_v9 = vsel %vm987_vm12, %v2824_v62, inf  ;;  %v477_v16 = vadd.s32 200, %v2667_v3 }
  0x5b   : > { %v1490_v55 = vmin.f32 %v1239_v46, %v1489_v50  ;;  %v2854_v22 = vadd.s32 %v2673_v7, %v475_v63  ;;  %vm989_vm14 = vcmp.lt.s32.totalorder %v2828_v0, %v2686_v13  ;;  %v478_v25 = vadd.s32 208, %v2667_v3 }
  0x5c   : > { %v1245_v26 = vsel %vm988_vm13, %v2837_v4, inf  ;;  %v479_v30 = vadd.s32 216, %v2667_v3  ;;  %v2868_v31 = vadd.s32 %v2673_v7, %v476_v5  ;;  %vm990_vm15 = vcmp.lt.s32.totalorder %v2841_v6, %v2686_v13 }
  0x5d   : > { %v1491_v60 = vmin.f32 %v1240_v51, %v1490_v55  ;;  %v1246_v35 = vsel %vm989_vm14, %v2850_v14, inf  ;;  %v1758_v36 = vsel %vm976_vm1, %v2694_v17, -inf  ;;  %v1759_v38 = vsel %vm977_vm2, %v2697_v18, -inf  ;;  %v2906_v18 = vld [vmem:[%s2660_s5 + $0xc0] sm:$0xff] }
  0x5e   : > { %v1760_v40 = vsel %vm978_vm3, %v2700_v19, -inf  ;;  %v2892_v43 = vadd.s32 %v2673_v7, %v477_v16  ;;  %vm991_vm0 = vcmp.lt.s32.totalorder %v2854_v22, %v2686_v13  ;;  %v2010_v17 = vmax.f32 %v1759_v38, %v1758_v36 }
  0x5f   : > { %v1492_v1 = vmin.f32 %v1241_v56, %v1491_v60  ;;  %v480_v45 = vadd.s32 224, %v2667_v3  ;;  %v1247_v11 = vsel %vm990_vm15, %v2864_v28, inf  ;;  %v1761_v12 = vsel %vm979_vm4, %v2712_v21, -inf  ;;  %v2923_v21 = vld [vmem:[%s2660_s5 + $0xc8] sm:$0xff] }
  0x60   : > { %v2909_v19 = vadd.s32 %v2673_v7, %v478_v25  ;;  %vm992_vm1 = vcmp.lt.s32.totalorder %v2868_v31, %v2686_v13  ;;  %v2011_v48 = vmax.f32 %v1760_v40, %v2010_v17  ;;  %v481_v50 = vadd.s32 232, %v2667_v3 }
  0x61   : > { %v1493_v8 = vmin.f32 %v1242_v61, %v1492_v1  ;;  %v1248_v51 = vsel %vm991_vm0, %v2889_v41, inf  ;;  %v1762_v15 = vsel %vm980_vm5, %v2733_v27, -inf  ;;  %v2926_v53 = vadd.s32 %v2673_v7, %v479_v30  ;;  %v2940_v27 = vld [vmem:[%s2660_s5 + $0xd0] sm:$0xff] }
  0x62   : > { %vm993_vm2 = vcmp.lt.s32.totalorder %v2892_v43, %v2686_v13  ;;  %v2012_v56 = vmax.f32 %v1761_v12, %v2011_v48  ;;  %v482_v58 = vadd.s32 240, %v2667_v3  ;;  %v1249_v60 = vsel %vm992_vm1, %v2906_v18, inf }
  0x63   : > { %v1494_v24 = vmin.f32 %v1243_v2, %v1493_v8  ;;  %v1763_v20 = vsel %vm981_vm6, %v2746_v32, -inf  ;;  %v2943_v61 = vadd.s32 %v2673_v7, %v480_v45  ;;  %vm994_vm3 = vcmp.lt.s32.totalorder %v2909_v19, %v2686_v13  ;;  %v2957_v32 = vld [vmem:[%s2660_s5 + $0xd8] sm:$0xff] }
  0x64   : > { %v2013_v1 = vmax.f32 %v1762_v15, %v2012_v56  ;;  %v483_v2 = vadd.s32 248, %v2667_v3  ;;  %v1250_v5 = vsel %vm993_vm2, %v2923_v21, inf  ;;  %v1764_v23 = vsel %vm982_vm7, %v2759_v37, -inf  ;;  %v2974_v37 = vld [vmem:[%s2660_s5 + $0xe0] sm:$0xff] }
  0x65   : > { %v1495_v33 = vmin.f32 %v1244_v9, %v1494_v24  ;;  %v2960_v8 = vadd.s32 %v2673_v7, %v481_v50  ;;  %vm995_vm4 = vcmp.lt.s32.totalorder %v2926_v53, %v2686_v13  ;;  %v484_v24 = vadd.s32 256, %v2667_v3 }
  0x66   : > { %v2014_v16 = vmax.f32 %v1763_v20, %v2013_v1  ;;  %v1251_v25 = vsel %vm994_vm3, %v2940_v27, inf  ;;  %v1765_v29 = vsel %vm983_vm8, %v2772_v42, -inf  ;;  %vm996_vm5 = vcmp.lt.s32.totalorder %v2943_v61, %v2686_v13  ;;  %v2991_v42 = vld [vmem:[%s2660_s5 + $0xe8] sm:$0xff] }
  0x67   : > { %v1496_v10 = vmin.f32 %v1245_v26, %v1495_v33  ;;  %v2977_v26 = vadd.s32 %v2673_v7, %v482_v58  ;;  %v1252_v36 = vsel %vm995_vm4, %v2957_v32, inf  ;;  %v1766_v34 = vsel %vm984_vm9, %v2785_v47, -inf  ;;  %v3008_v47 = vld [vmem:[%s2660_s5 + $0xf0] sm:$0xff] }
  0x68   : > { %v2015_v33 = vmax.f32 %v1764_v23, %v2014_v16  ;;  %v2994_v38 = vadd.s32 %v2673_v7, %v483_v2  ;;  %vm997_vm6 = vcmp.lt.s32.totalorder %v2960_v8, %v2686_v13  ;;  %v486_v17 = vadd.s32 272, %v2667_v3 }
  0x69   : > { %v1497_v46 = vmin.f32 %v1246_v35, %v1496_v10  ;;  %v485_v35 = vadd.s32 264, %v2667_v3  ;;  %v1253_v45 = vsel %vm996_vm5, %v2974_v37, inf  ;;  %v1767_v39 = vsel %vm985_vm10, %v2798_v52, -inf  ;;  %v3025_v52 = vld [vmem:[%s2660_s5 + $0xf8] sm:$0xff] }
  0x6a   : > { %v2016_v10 = vmax.f32 %v1765_v29, %v2015_v33  ;;  %vm998_vm7 = vcmp.lt.s32.totalorder %v2977_v26, %v2686_v13  ;;  %v487_v48 = vadd.s32 280, %v2667_v3  ;;  %v1254_v50 = vsel %vm997_vm6, %v2991_v42, inf }
  0x6b   : > { %v1498_v55 = vmin.f32 %v1247_v11, %v1497_v46  ;;  %v3011_v11 = vadd.s32 %v2673_v7, %v484_v24  ;;  %v1768_v44 = vsel %vm986_vm11, %v2811_v57, -inf  ;;  %vm999_vm8 = vcmp.lt.s32.totalorder %v2994_v38, %v2686_v13  ;;  %v3042_v57 = vld [vmem:[%s2660_s5 + $0x100] sm:$0xff] }
  0x6c   : > { %v2017_v46 = vmax.f32 %v1766_v34, %v2016_v10  ;;  %v488_v56 = vadd.s32 288, %v2667_v3  ;;  %v1255_v58 = vsel %vm998_vm7, %v3008_v47, inf  ;;  %v1769_v49 = vsel %vm987_vm12, %v2824_v62, -inf  ;;  %v3059_v62 = vld [vmem:[%s2660_s5 + $0x108] sm:$0xff] }
  0x6d   : > { %v1499_v63 = vmin.f32 %v1248_v51, %v1498_v55  ;;  %v3028_v51 = vadd.s32 %v2673_v7, %v485_v35  ;;  %vm1000_vm9 = vcmp.lt.s32.totalorder %v3011_v11, %v2686_v13  ;;  %v489_v1 = vadd.s32 296, %v2667_v3 }
  0x6e   : > { %v2018_v55 = vmax.f32 %v1767_v39, %v2017_v46  ;;  %v1256_v2 = vsel %vm999_vm8, %v3025_v52, inf  ;;  %v1770_v54 = vsel %vm988_vm13, %v2837_v4, -inf  ;;  %v490_v16 = vadd.s32 304, %v2667_v3  ;;  %v3076_v4 = vld [vmem:[%s2660_s5 + $0x110] sm:$0xff] }
  0x6f   : > { %v1500_v9 = vmin.f32 %v1249_v60, %v1499_v63  ;;  %v3045_v60 = vadd.s32 %v2673_v7, %v486_v17  ;;  %vm1001_vm10 = vcmp.lt.s32.totalorder %v3028_v51, %v2686_v13  ;;  %v1257_v24 = vsel %vm1000_vm9, %v3042_v57, inf }
  0x70   : > { %v2019_v63 = vmax.f32 %v1768_v44, %v2018_v55  ;;  %v1771_v59 = vsel %vm989_vm14, %v2850_v14, -inf  ;;  %v491_v33 = vadd.s32 312, %v2667_v3  ;;  %v1258_v35 = vsel %vm1001_vm10, %v3059_v62, inf  ;;  %v3093_v14 = vld [vmem:[%s2660_s5 + $0x118] sm:$0xff] }
  0x71   : > { %v1501_v30 = vmin.f32 %v1250_v5, %v1500_v9  ;;  %v3062_v5 = vadd.s32 %v2673_v7, %v487_v48  ;;  %vm1002_vm11 = vcmp.lt.s32.totalorder %v3045_v60, %v2686_v13  ;;  %v1772_v0 = vsel %vm990_vm15, %v2864_v28, -inf  ;;  %v3110_v28 = vld [vmem:[%s2660_s5 + $0x120] sm:$0xff] }
  0x72   : > { %v2020_v9 = vmax.f32 %v1769_v49, %v2019_v63  ;;  %v492_v10 = vadd.s32 320, %v2667_v3  ;;  %v1259_v17 = vsel %vm1002_vm11, %v3076_v4, inf  ;;  %v1773_v6 = vsel %vm991_vm0, %v2889_v41, -inf  ;;  %v3127_v41 = vld [vmem:[%s2660_s5 + $0x128] sm:$0xff] }
  0x73   : > { %v1502_v40 = vmin.f32 %v1251_v25, %v1501_v30  ;;  %v3079_v25 = vadd.s32 %v2673_v7, %v488_v56  ;;  %vm1003_vm12 = vcmp.lt.s32.totalorder %v3062_v5, %v2686_v13  ;;  %v493_v46 = vadd.s32 328, %v2667_v3 }
  0x74   : > { %v2021_v30 = vmax.f32 %v1770_v54, %v2020_v9  ;;  %v1260_v48 = vsel %vm1003_vm12, %v3093_v14, inf  ;;  %v1774_v22 = vsel %vm992_vm1, %v2906_v18, -inf  ;;  %v494_v55 = vadd.s32 336, %v2667_v3  ;;  %v3144_v18 = vld [vmem:[%s2660_s5 + $0x130] sm:$0xff] }
  0x75   : > { %v1503_v12 = vmin.f32 %v1252_v36, %v1502_v40  ;;  %v3096_v36 = vadd.s32 %v2673_v7, %v489_v1  ;;  %vm1004_vm13 = vcmp.lt.s32.totalorder %v3079_v25, %v2686_v13  ;;  %v1775_v31 = vsel %vm993_vm2, %v2923_v21, -inf  ;;  %v3161_v21 = vld [vmem:[%s2660_s5 + $0x138] sm:$0xff] }
  0x76   : > { %v2022_v40 = vmax.f32 %v1771_v59, %v2021_v30  ;;  %v1261_v56 = vsel %vm1004_vm13, %v3110_v28, inf  ;;  %v495_v63 = vadd.s32 344, %v2667_v3  ;;  %v1776_v43 = vsel %vm994_vm3, %v2940_v27, -inf  ;;  %v3178_v27 = vld [vmem:[%s2660_s5 + $0x140] sm:$0xff] }
  0x77   : > { %v1504_v15 = vmin.f32 %v1253_v45, %v1503_v12  ;;  %v3113_v45 = vadd.s32 %v2673_v7, %v490_v16  ;;  %vm1005_vm14 = vcmp.lt.s32.totalorder %v3096_v36, %v2686_v13  ;;  %v496_v9 = vadd.s32 352, %v2667_v3 }
  0x78   : > { %v2023_v12 = vmax.f32 %v1772_v0, %v2022_v40  ;;  %v1262_v1 = vsel %vm1005_vm14, %v3127_v41, inf  ;;  %v1777_v19 = vsel %vm995_vm4, %v2957_v32, -inf  ;;  %v497_v30 = vadd.s32 360, %v2667_v3  ;;  %v3195_v32 = vld [vmem:[%s2660_s5 + $0x148] sm:$0xff] }
  0x79   : > { %v1505_v20 = vmin.f32 %v1254_v50, %v1504_v15  ;;  %v3130_v50 = vadd.s32 %v2673_v7, %v491_v33  ;;  %vm1006_vm15 = vcmp.lt.s32.totalorder %v3113_v45, %v2686_v13  ;;  %v1778_v53 = vsel %vm996_vm5, %v2974_v37, -inf  ;;  %v3212_v37 = vld [vmem:[%s2660_s5 + $0x150] sm:$0xff] }
  0x7a   : > { %v2024_v15 = vmax.f32 %v1773_v6, %v2023_v12  ;;  %v1263_v16 = vsel %vm1006_vm15, %v3144_v18, inf  ;;  %v498_v40 = vadd.s32 368, %v2667_v3  ;;  %v1779_v61 = vsel %vm997_vm6, %v2991_v42, -inf  ;;  %v3229_v42 = vld [vmem:[%s2660_s5 + $0x158] sm:$0xff] }
  0x7b   : > { %v1506_v23 = vmin.f32 %v1255_v58, %v1505_v20  ;;  %v3147_v58 = vadd.s32 %v2673_v7, %v492_v10  ;;  %vm1007_vm0 = vcmp.lt.s32.totalorder %v3130_v50, %v2686_v13  ;;  %v499_v12 = vadd.s32 376, %v2667_v3 }
  0x7c   : > { %v2025_v20 = vmax.f32 %v1774_v22, %v2024_v15  ;;  %v1264_v33 = vsel %vm1007_vm0, %v3161_v21, inf  ;;  %v1780_v8 = vsel %vm998_vm7, %v3008_v47, -inf  ;;  %v500_v15 = vadd.s32 384, %v2667_v3  ;;  %v3246_v47 = vld [vmem:[%s2660_s5 + $0x160] sm:$0xff] }
  0x7d   : > { %v1507_v29 = vmin.f32 %v1256_v2, %v1506_v23  ;;  %v3164_v2 = vadd.s32 %v2673_v7, %v493_v46  ;;  %vm1008_vm1 = vcmp.lt.s32.totalorder %v3147_v58, %v2686_v13  ;;  %v1781_v26 = vsel %vm999_vm8, %v3025_v52, -inf  ;;  %v3263_v52 = vld [vmem:[%s2660_s5 + $0x168] sm:$0xff] }
  0x7e   : > { %v2026_v23 = vmax.f32 %v1775_v31, %v2025_v20  ;;  %v1265_v10 = vsel %vm1008_vm1, %v3178_v27, inf  ;;  %v501_v20 = vadd.s32 392, %v2667_v3  ;;  %v1782_v38 = vsel %vm1000_vm9, %v3042_v57, -inf  ;;  %v3280_v57 = vld [vmem:[%s2660_s5 + $0x170] sm:$0xff] }
  0x7f   : > { %v1508_v34 = vmin.f32 %v1257_v24, %v1507_v29  ;;  %v3181_v24 = vadd.s32 %v2673_v7, %v494_v55  ;;  %vm1009_vm2 = vcmp.lt.s32.totalorder %v3164_v2, %v2686_v13  ;;  %v1783_v11 = vsel %vm1001_vm10, %v3059_v62, -inf  ;;  %v3297_v62 = vld [vmem:[%s2660_s5 + $0x178] sm:$0xff] }
  0x80   : > { %v2027_v29 = vmax.f32 %v1776_v43, %v2026_v23  ;;  %v1266_v46 = vsel %vm1009_vm2, %v3195_v32, inf  ;;  %v502_v23 = vadd.s32 400, %v2667_v3  ;;  %v1784_v51 = vsel %vm1002_vm11, %v3076_v4, -inf  ;;  %v3314_v4 = vld [vmem:[%s2660_s5 + $0x180] sm:$0xff] }
  0x81   : > { %v1509_v39 = vmin.f32 %v1258_v35, %v1508_v34  ;;  %v3198_v35 = vadd.s32 %v2673_v7, %v495_v63  ;;  %vm1010_vm3 = vcmp.lt.s32.totalorder %v3181_v24, %v2686_v13  ;;  %v1785_v60 = vsel %vm1003_vm12, %v3093_v14, -inf  ;;  %v3331_v14 = vld [vmem:[%s2660_s5 + $0x188] sm:$0xff] }
  0x82   : > { %v2028_v34 = vmax.f32 %v1777_v19, %v2027_v29  ;;  %v1267_v55 = vsel %vm1010_vm3, %v3212_v37, inf  ;;  %v503_v29 = vadd.s32 408, %v2667_v3  ;;  %v1786_v5 = vsel %vm1004_vm13, %v3110_v28, -inf  ;;  %v3348_v28 = vld [vmem:[%s2660_s5 + $0x190] sm:$0xff] }
  0x83   : > { %v1510_v44 = vmin.f32 %v1259_v17, %v1509_v39  ;;  %v3215_v17 = vadd.s32 %v2673_v7, %v496_v9  ;;  %vm1011_vm4 = vcmp.lt.s32.totalorder %v3198_v35, %v2686_v13  ;;  %v1787_v25 = vsel %vm1005_vm14, %v3127_v41, -inf  ;;  %v3365_v41 = vld [vmem:[%s2660_s5 + $0x198] sm:$0xff] }
  0x84   : > { %v2029_v39 = vmax.f32 %v1778_v53, %v2028_v34  ;;  %v1268_v63 = vsel %vm1011_vm4, %v3229_v42, inf  ;;  %v504_v34 = vadd.s32 416, %v2667_v3  ;;  %v1788_v36 = vsel %vm1006_vm15, %v3144_v18, -inf  ;;  %v3382_v18 = vld [vmem:[%s2660_s5 + $0x1a0] sm:$0xff] }
  0x85   : > { %v1511_v49 = vmin.f32 %v1260_v48, %v1510_v44  ;;  %v3232_v48 = vadd.s32 %v2673_v7, %v497_v30  ;;  %vm1012_vm5 = vcmp.lt.s32.totalorder %v3215_v17, %v2686_v13  ;;  %v1789_v45 = vsel %vm1007_vm0, %v3161_v21, -inf  ;;  %v3399_v21 = vld [vmem:[%s2660_s5 + $0x1a8] sm:$0xff] }
  0x86   : > { %v2030_v44 = vmax.f32 %v1779_v61, %v2029_v39  ;;  %v1269_v9 = vsel %vm1012_vm5, %v3246_v47, inf  ;;  %v505_v39 = vadd.s32 424, %v2667_v3  ;;  %v1790_v50 = vsel %vm1008_vm1, %v3178_v27, -inf  ;;  %v3416_v27 = vld [vmem:[%s2660_s5 + $0x1b0] sm:$0xff] }
  0x87   : > { %v1512_v54 = vmin.f32 %v1261_v56, %v1511_v49  ;;  %v3249_v56 = vadd.s32 %v2673_v7, %v498_v40  ;;  %vm1013_vm6 = vcmp.lt.s32.totalorder %v3232_v48, %v2686_v13  ;;  %v1791_v58 = vsel %vm1009_vm2, %v3195_v32, -inf  ;;  %v3433_v32 = vld [vmem:[%s2660_s5 + $0x1b8] sm:$0xff] }
  0x88   : > { %v2031_v49 = vmax.f32 %v1780_v8, %v2030_v44  ;;  %v1270_v30 = vsel %vm1013_vm6, %v3263_v52, inf  ;;  %v506_v44 = vadd.s32 432, %v2667_v3  ;;  %v1792_v2 = vsel %vm1010_vm3, %v3212_v37, -inf  ;;  %v3450_v37 = vld [vmem:[%s2660_s5 + $0x1c0] sm:$0xff] }
  0x89   : > { %v1513_v59 = vmin.f32 %v1262_v1, %v1512_v54  ;;  %v3266_v1 = vadd.s32 %v2673_v7, %v499_v12  ;;  %vm1014_vm7 = vcmp.lt.s32.totalorder %v3249_v56, %v2686_v13  ;;  %v1793_v24 = vsel %vm1011_vm4, %v3229_v42, -inf  ;;  %v3467_v42 = vld [vmem:[%s2660_s5 + $0x1c8] sm:$0xff] }
  0x8a   : > { %v2032_v54 = vmax.f32 %v1781_v26, %v2031_v49  ;;  %v1271_v40 = vsel %vm1014_vm7, %v3280_v57, inf  ;;  %v507_v49 = vadd.s32 440, %v2667_v3  ;;  %v1794_v35 = vsel %vm1012_vm5, %v3246_v47, -inf  ;;  %v3484_v47 = vld [vmem:[%s2660_s5 + $0x1d0] sm:$0xff] }
  0x8b   : > { %v1514_v0 = vmin.f32 %v1263_v16, %v1513_v59  ;;  %v3283_v16 = vadd.s32 %v2673_v7, %v500_v15  ;;  %vm1015_vm8 = vcmp.lt.s32.totalorder %v3266_v1, %v2686_v13  ;;  %v1795_v17 = vsel %vm1013_vm6, %v3263_v52, -inf  ;;  %v3501_v52 = vld [vmem:[%s2660_s5 + $0x1d8] sm:$0xff] }
  0x8c   : > { %v2033_v59 = vmax.f32 %v1782_v38, %v2032_v54  ;;  %v1272_v12 = vsel %vm1015_vm8, %v3297_v62, inf  ;;  %v508_v54 = vadd.s32 448, %v2667_v3  ;;  %v1796_v48 = vsel %vm1014_vm7, %v3280_v57, -inf  ;;  %v3518_v57 = vld [vmem:[%s2660_s5 + $0x1e0] sm:$0xff] }
  0x8d   : > { %v1515_v6 = vmin.f32 %v1264_v33, %v1514_v0  ;;  %v3300_v33 = vadd.s32 %v2673_v7, %v501_v20  ;;  %vm1016_vm9 = vcmp.lt.s32.totalorder %v3283_v16, %v2686_v13  ;;  %v1797_v56 = vsel %vm1015_vm8, %v3297_v62, -inf  ;;  %v3535_v62 = vld [vmem:[%s2660_s5 + $0x1e8] sm:$0xff] }
  0x8e   : > { %v2034_v0 = vmax.f32 %v1783_v11, %v2033_v59  ;;  %v1273_v15 = vsel %vm1016_vm9, %v3314_v4, inf  ;;  %v509_v59 = vadd.s32 456, %v2667_v3  ;;  %v1798_v1 = vsel %vm1016_vm9, %v3314_v4, -inf  ;;  %v3552_v4 = vld [vmem:[%s2660_s5 + $0x1f0] sm:$0xff] }
  0x8f   : > { %v1516_v22 = vmin.f32 %v1265_v10, %v1515_v6  ;;  %v3317_v10 = vadd.s32 %v2673_v7, %v502_v23  ;;  %vm1017_vm10 = vcmp.lt.s32.totalorder %v3300_v33, %v2686_v13 }
  0x90   : > { %v2035_v6 = vmax.f32 %v1784_v51, %v2034_v0  ;;  %v1274_v20 = vsel %vm1017_vm10, %v3331_v14, inf  ;;  %v510_v0 = vadd.s32 464, %v2667_v3  ;;  %v1799_v16 = vsel %vm1017_vm10, %v3331_v14, -inf  ;;  %v3569_v14 = vld [vmem:[%s2660_s5 + $0x1f8] sm:$0xff] }
  0x91   : > { %v1517_v31 = vmin.f32 %v1266_v46, %v1516_v22  ;;  %v3334_v46 = vadd.s32 %v2673_v7, %v503_v29  ;;  %vm1018_vm11 = vcmp.lt.s32.totalorder %v3317_v10, %v2686_v13 }
  0x92   : > { %v2036_v22 = vmax.f32 %v1785_v60, %v2035_v6  ;;  %v1275_v23 = vsel %vm1018_vm11, %v3348_v28, inf  ;;  %v511_v6 = vadd.s32 472, %v2667_v3  ;;  %v1800_v33 = vsel %vm1018_vm11, %v3348_v28, -inf  ;;  %v3586_v28 = vld [vmem:[%s2660_s5 + $0x200] sm:$0xff] }
  0x93   : > { %v1518_v43 = vmin.f32 %v1267_v55, %v1517_v31  ;;  %v3351_v55 = vadd.s32 %v2673_v7, %v504_v34  ;;  %vm1019_vm12 = vcmp.lt.s32.totalorder %v3334_v46, %v2686_v13 }
  0x94   : > { %v2037_v31 = vmax.f32 %v1786_v5, %v2036_v22  ;;  %v1276_v29 = vsel %vm1019_vm12, %v3365_v41, inf  ;;  %v512_v22 = vadd.s32 480, %v2667_v3  ;;  %v1801_v10 = vsel %vm1019_vm12, %v3365_v41, -inf  ;;  %v3603_v41 = vld [vmem:[%s2660_s5 + $0x208] sm:$0xff] }
  0x95   : > { %v1519_v19 = vmin.f32 %v1268_v63, %v1518_v43  ;;  %v3368_v63 = vadd.s32 %v2673_v7, %v505_v39  ;;  %vm1020_vm13 = vcmp.lt.s32.totalorder %v3351_v55, %v2686_v13 }
  0x96   : > { %v2038_v43 = vmax.f32 %v1787_v25, %v2037_v31  ;;  %v1277_v34 = vsel %vm1020_vm13, %v3382_v18, inf  ;;  %v513_v31 = vadd.s32 488, %v2667_v3  ;;  %v1802_v46 = vsel %vm1020_vm13, %v3382_v18, -inf  ;;  %v3620_v18 = vld [vmem:[%s2660_s5 + $0x210] sm:$0xff] }
  0x97   : > { %v1520_v53 = vmin.f32 %v1269_v9, %v1519_v19  ;;  %v3385_v9 = vadd.s32 %v2673_v7, %v506_v44  ;;  %vm1021_vm14 = vcmp.lt.s32.totalorder %v3368_v63, %v2686_v13 }
  0x98   : > { %v2039_v19 = vmax.f32 %v1788_v36, %v2038_v43  ;;  %v1278_v39 = vsel %vm1021_vm14, %v3399_v21, inf  ;;  %v514_v43 = vadd.s32 496, %v2667_v3  ;;  %v1803_v55 = vsel %vm1021_vm14, %v3399_v21, -inf  ;;  %v3637_v21 = vld [vmem:[%s2660_s5 + $0x218] sm:$0xff] }
  0x99   : > { %v1521_v61 = vmin.f32 %v1270_v30, %v1520_v53  ;;  %v3402_v30 = vadd.s32 %v2673_v7, %v507_v49  ;;  %vm1022_vm15 = vcmp.lt.s32.totalorder %v3385_v9, %v2686_v13 }
  0x9a   : > { %v2040_v53 = vmax.f32 %v1789_v45, %v2039_v19  ;;  %v1279_v44 = vsel %vm1022_vm15, %v3416_v27, inf  ;;  %v515_v19 = vadd.s32 504, %v2667_v3  ;;  %v1804_v63 = vsel %vm1022_vm15, %v3416_v27, -inf  ;;  %v3654_v27 = vld [vmem:[%s2660_s5 + $0x220] sm:$0xff] }
  0x9b   : > { %v1522_v8 = vmin.f32 %v1271_v40, %v1521_v61  ;;  %v3419_v40 = vadd.s32 %v2673_v7, %v508_v54  ;;  %vm1023_vm0 = vcmp.lt.s32.totalorder %v3402_v30, %v2686_v13 }
  0x9c   : > { %v2041_v61 = vmax.f32 %v1790_v50, %v2040_v53  ;;  %v1280_v49 = vsel %vm1023_vm0, %v3433_v32, inf  ;;  %v516_v53 = vadd.s32 512, %v2667_v3  ;;  %v1805_v9 = vsel %vm1023_vm0, %v3433_v32, -inf  ;;  %v3671_v32 = vld [vmem:[%s2660_s5 + $0x228] sm:$0xff] }
  0x9d   : > { %v1523_v26 = vmin.f32 %v1272_v12, %v1522_v8  ;;  %v3436_v12 = vadd.s32 %v2673_v7, %v509_v59  ;;  %vm1024_vm1 = vcmp.lt.s32.totalorder %v3419_v40, %v2686_v13 }
  0x9e   : > { %v2042_v8 = vmax.f32 %v1791_v58, %v2041_v61  ;;  %v1281_v54 = vsel %vm1024_vm1, %v3450_v37, inf  ;;  %v517_v61 = vadd.s32 520, %v2667_v3  ;;  %v1806_v30 = vsel %vm1024_vm1, %v3450_v37, -inf  ;;  %v3688_v37 = vld [vmem:[%s2660_s5 + $0x230] sm:$0xff] }
  0x9f   : > { %v1524_v38 = vmin.f32 %v1273_v15, %v1523_v26  ;;  %v3453_v15 = vadd.s32 %v2673_v7, %v510_v0  ;;  %vm1025_vm2 = vcmp.lt.s32.totalorder %v3436_v12, %v2686_v13 }
  0xa0   : > { %v2043_v26 = vmax.f32 %v1792_v2, %v2042_v8  ;;  %v1282_v59 = vsel %vm1025_vm2, %v3467_v42, inf  ;;  %v518_v8 = vadd.s32 528, %v2667_v3  ;;  %v1807_v40 = vsel %vm1025_vm2, %v3467_v42, -inf  ;;  %v3705_v42 = vld [vmem:[%s2660_s5 + $0x238] sm:$0xff] }
  0xa1   : > { %v1525_v11 = vmin.f32 %v1274_v20, %v1524_v38  ;;  %v3470_v20 = vadd.s32 %v2673_v7, %v511_v6  ;;  %vm1026_vm3 = vcmp.lt.s32.totalorder %v3453_v15, %v2686_v13 }
  0xa2   : > { %v2044_v38 = vmax.f32 %v1793_v24, %v2043_v26  ;;  %v1283_v0 = vsel %vm1026_vm3, %v3484_v47, inf  ;;  %v519_v26 = vadd.s32 536, %v2667_v3  ;;  %v1808_v12 = vsel %vm1026_vm3, %v3484_v47, -inf  ;;  %v3722_v47 = vld [vmem:[%s2660_s5 + $0x240] sm:$0xff] }
  0xa3   : > { %v1526_v51 = vmin.f32 %v1275_v23, %v1525_v11  ;;  %v3487_v23 = vadd.s32 %v2673_v7, %v512_v22  ;;  %vm1027_vm4 = vcmp.lt.s32.totalorder %v3470_v20, %v2686_v13 }
  0xa4   : > { %v2045_v11 = vmax.f32 %v1794_v35, %v2044_v38  ;;  %v1284_v6 = vsel %vm1027_vm4, %v3501_v52, inf  ;;  %v520_v38 = vadd.s32 544, %v2667_v3  ;;  %v1809_v15 = vsel %vm1027_vm4, %v3501_v52, -inf  ;;  %v3739_v52 = vld [vmem:[%s2660_s5 + $0x248] sm:$0xff] }
  0xa5   : > { %v1527_v60 = vmin.f32 %v1276_v29, %v1526_v51  ;;  %v3504_v29 = vadd.s32 %v2673_v7, %v513_v31  ;;  %vm1028_vm5 = vcmp.lt.s32.totalorder %v3487_v23, %v2686_v13 }
  0xa6   : > { %v2046_v51 = vmax.f32 %v1795_v17, %v2045_v11  ;;  %v1285_v22 = vsel %vm1028_vm5, %v3518_v57, inf  ;;  %v521_v11 = vadd.s32 552, %v2667_v3  ;;  %v1810_v20 = vsel %vm1028_vm5, %v3518_v57, -inf  ;;  %v3756_v57 = vld [vmem:[%s2660_s5 + $0x250] sm:$0xff] }
  0xa7   : > { %v1528_v5 = vmin.f32 %v1277_v34, %v1527_v60  ;;  %v3521_v34 = vadd.s32 %v2673_v7, %v514_v43  ;;  %vm1029_vm6 = vcmp.lt.s32.totalorder %v3504_v29, %v2686_v13 }
  0xa8   : > { %v2047_v60 = vmax.f32 %v1796_v48, %v2046_v51  ;;  %v1286_v31 = vsel %vm1029_vm6, %v3535_v62, inf  ;;  %v522_v51 = vadd.s32 560, %v2667_v3  ;;  %v1811_v23 = vsel %vm1029_vm6, %v3535_v62, -inf  ;;  %v3773_v62 = vld [vmem:[%s2660_s5 + $0x258] sm:$0xff] }
  0xa9   : > { %v1529_v25 = vmin.f32 %v1278_v39, %v1528_v5  ;;  %v3538_v39 = vadd.s32 %v2673_v7, %v515_v19  ;;  %vm1030_vm7 = vcmp.lt.s32.totalorder %v3521_v34, %v2686_v13 }
  0xaa   : > { %v2048_v5 = vmax.f32 %v1797_v56, %v2047_v60  ;;  %v1287_v43 = vsel %vm1030_vm7, %v3552_v4, inf  ;;  %v523_v60 = vadd.s32 568, %v2667_v3  ;;  %v1812_v29 = vsel %vm1030_vm7, %v3552_v4, -inf  ;;  %v3790_v4 = vld [vmem:[%s2660_s5 + $0x260] sm:$0xff] }
  0xab   : > { %v1530_v36 = vmin.f32 %v1279_v44, %v1529_v25  ;;  %v3555_v44 = vadd.s32 %v2673_v7, %v516_v53  ;;  %vm1031_vm8 = vcmp.lt.s32.totalorder %v3538_v39, %v2686_v13 }
  0xac   : > { %v2049_v25 = vmax.f32 %v1798_v1, %v2048_v5  ;;  %v1288_v19 = vsel %vm1031_vm8, %v3569_v14, inf  ;;  %v524_v5 = vadd.s32 576, %v2667_v3  ;;  %v1813_v34 = vsel %vm1031_vm8, %v3569_v14, -inf  ;;  %v3807_v14 = vld [vmem:[%s2660_s5 + $0x268] sm:$0xff] }
  0xad   : > { %v1531_v45 = vmin.f32 %v1280_v49, %v1530_v36  ;;  %v3572_v49 = vadd.s32 %v2673_v7, %v517_v61  ;;  %vm1032_vm9 = vcmp.lt.s32.totalorder %v3555_v44, %v2686_v13 }
  0xae   : > { %v2050_v36 = vmax.f32 %v1799_v16, %v2049_v25  ;;  %v1289_v53 = vsel %vm1032_vm9, %v3586_v28, inf  ;;  %v525_v25 = vadd.s32 584, %v2667_v3  ;;  %v1814_v39 = vsel %vm1032_vm9, %v3586_v28, -inf  ;;  %v3824_v28 = vld [vmem:[%s2660_s5 + $0x270] sm:$0xff] }
  0xaf   : > { %v1532_v50 = vmin.f32 %v1281_v54, %v1531_v45  ;;  %v3589_v54 = vadd.s32 %v2673_v7, %v518_v8  ;;  %vm1033_vm10 = vcmp.lt.s32.totalorder %v3572_v49, %v2686_v13 }
  0xb0   : > { %v2051_v45 = vmax.f32 %v1800_v33, %v2050_v36  ;;  %v1290_v61 = vsel %vm1033_vm10, %v3603_v41, inf  ;;  %v526_v36 = vadd.s32 592, %v2667_v3  ;;  %v1815_v44 = vsel %vm1033_vm10, %v3603_v41, -inf  ;;  %v3841_v41 = vld [vmem:[%s2660_s5 + $0x278] sm:$0xff] }
  0xb1   : > { %v1533_v58 = vmin.f32 %v1282_v59, %v1532_v50  ;;  %v3606_v59 = vadd.s32 %v2673_v7, %v519_v26  ;;  %vm1034_vm11 = vcmp.lt.s32.totalorder %v3589_v54, %v2686_v13 }
  0xb2   : > { %v2052_v50 = vmax.f32 %v1801_v10, %v2051_v45  ;;  %v1291_v8 = vsel %vm1034_vm11, %v3620_v18, inf  ;;  %v527_v45 = vadd.s32 600, %v2667_v3  ;;  %v1816_v49 = vsel %vm1034_vm11, %v3620_v18, -inf  ;;  %v3858_v18 = vld [vmem:[%s2660_s5 + $0x280] sm:$0xff] }
  0xb3   : > { %v1534_v2 = vmin.f32 %v1283_v0, %v1533_v58  ;;  %v3623_v0 = vadd.s32 %v2673_v7, %v520_v38  ;;  %vm1035_vm12 = vcmp.lt.s32.totalorder %v3606_v59, %v2686_v13 }
  0xb4   : > { %v2053_v58 = vmax.f32 %v1802_v46, %v2052_v50  ;;  %v1292_v26 = vsel %vm1035_vm12, %v3637_v21, inf  ;;  %v528_v50 = vadd.s32 608, %v2667_v3  ;;  %v1817_v54 = vsel %vm1035_vm12, %v3637_v21, -inf  ;;  %v3875_v21 = vld [vmem:[%s2660_s5 + $0x288] sm:$0xff] }
  0xb5   : > { %v1535_v24 = vmin.f32 %v1284_v6, %v1534_v2  ;;  %v3640_v6 = vadd.s32 %v2673_v7, %v521_v11  ;;  %vm1036_vm13 = vcmp.lt.s32.totalorder %v3623_v0, %v2686_v13 }
  0xb6   : > { %v2054_v2 = vmax.f32 %v1803_v55, %v2053_v58  ;;  %v1293_v38 = vsel %vm1036_vm13, %v3654_v27, inf  ;;  %v529_v58 = vadd.s32 616, %v2667_v3  ;;  %v1818_v59 = vsel %vm1036_vm13, %v3654_v27, -inf  ;;  %v3892_v27 = vld [vmem:[%s2660_s5 + $0x290] sm:$0xff] }
  0xb7   : > { %v1536_v35 = vmin.f32 %v1285_v22, %v1535_v24  ;;  %v3657_v22 = vadd.s32 %v2673_v7, %v522_v51  ;;  %vm1037_vm14 = vcmp.lt.s32.totalorder %v3640_v6, %v2686_v13 }
  0xb8   : > { %v2055_v24 = vmax.f32 %v1804_v63, %v2054_v2  ;;  %v1294_v11 = vsel %vm1037_vm14, %v3671_v32, inf  ;;  %v530_v2 = vadd.s32 624, %v2667_v3  ;;  %v1819_v0 = vsel %vm1037_vm14, %v3671_v32, -inf  ;;  %v3909_v32 = vld [vmem:[%s2660_s5 + $0x298] sm:$0xff] }
  0xb9   : > { %v1537_v17 = vmin.f32 %v1286_v31, %v1536_v35  ;;  %v3674_v31 = vadd.s32 %v2673_v7, %v523_v60  ;;  %vm1038_vm15 = vcmp.lt.s32.totalorder %v3657_v22, %v2686_v13 }
  0xba   : > { %v2056_v35 = vmax.f32 %v1805_v9, %v2055_v24  ;;  %v1295_v51 = vsel %vm1038_vm15, %v3688_v37, inf  ;;  %v531_v24 = vadd.s32 632, %v2667_v3  ;;  %v1820_v6 = vsel %vm1038_vm15, %v3688_v37, -inf  ;;  %v3926_v37 = vld [vmem:[%s2660_s5 + $0x2a0] sm:$0xff] }
  0xbb   : > { %v1538_v48 = vmin.f32 %v1287_v43, %v1537_v17  ;;  %v3691_v43 = vadd.s32 %v2673_v7, %v524_v5  ;;  %vm1039_vm0 = vcmp.lt.s32.totalorder %v3674_v31, %v2686_v13 }
  0xbc   : > { %v2057_v17 = vmax.f32 %v1806_v30, %v2056_v35  ;;  %v1296_v60 = vsel %vm1039_vm0, %v3705_v42, inf  ;;  %v532_v35 = vadd.s32 640, %v2667_v3  ;;  %v1821_v22 = vsel %vm1039_vm0, %v3705_v42, -inf  ;;  %v3943_v42 = vld [vmem:[%s2660_s5 + $0x2a8] sm:$0xff] }
  0xbd   : > { %v1539_v56 = vmin.f32 %v1288_v19, %v1538_v48  ;;  %v3708_v19 = vadd.s32 %v2673_v7, %v525_v25  ;;  %vm1040_vm1 = vcmp.lt.s32.totalorder %v3691_v43, %v2686_v13 }
  0xbe   : > { %v2058_v48 = vmax.f32 %v1807_v40, %v2057_v17  ;;  %v1297_v5 = vsel %vm1040_vm1, %v3722_v47, inf  ;;  %v533_v17 = vadd.s32 648, %v2667_v3  ;;  %v1822_v31 = vsel %vm1040_vm1, %v3722_v47, -inf  ;;  %v3960_v47 = vld [vmem:[%s2660_s5 + $0x2b0] sm:$0xff] }
  0xbf   : > { %v1540_v1 = vmin.f32 %v1289_v53, %v1539_v56  ;;  %v3725_v53 = vadd.s32 %v2673_v7, %v526_v36  ;;  %vm1041_vm2 = vcmp.lt.s32.totalorder %v3708_v19, %v2686_v13 }
  0xc0   : > { %v2059_v56 = vmax.f32 %v1808_v12, %v2058_v48  ;;  %v1298_v25 = vsel %vm1041_vm2, %v3739_v52, inf  ;;  %v534_v48 = vadd.s32 656, %v2667_v3  ;;  %v1823_v43 = vsel %vm1041_vm2, %v3739_v52, -inf  ;;  %v3977_v52 = vld [vmem:[%s2660_s5 + $0x2b8] sm:$0xff] }
  0xc1   : > { %v1541_v16 = vmin.f32 %v1290_v61, %v1540_v1  ;;  %v3742_v61 = vadd.s32 %v2673_v7, %v527_v45  ;;  %vm1042_vm3 = vcmp.lt.s32.totalorder %v3725_v53, %v2686_v13 }
  0xc2   : > { %v2060_v1 = vmax.f32 %v1809_v15, %v2059_v56  ;;  %v1299_v36 = vsel %vm1042_vm3, %v3756_v57, inf  ;;  %v535_v56 = vadd.s32 664, %v2667_v3  ;;  %v1824_v19 = vsel %vm1042_vm3, %v3756_v57, -inf  ;;  %v3994_v57 = vld [vmem:[%s2660_s5 + $0x2c0] sm:$0xff] }
  0xc3   : > { %v1542_v33 = vmin.f32 %v1291_v8, %v1541_v16  ;;  %v3759_v8 = vadd.s32 %v2673_v7, %v528_v50  ;;  %vm1043_vm4 = vcmp.lt.s32.totalorder %v3742_v61, %v2686_v13 }
  0xc4   : > { %v2061_v16 = vmax.f32 %v1810_v20, %v2060_v1  ;;  %v1300_v45 = vsel %vm1043_vm4, %v3773_v62, inf  ;;  %v536_v1 = vadd.s32 672, %v2667_v3  ;;  %v1825_v53 = vsel %vm1043_vm4, %v3773_v62, -inf  ;;  %v4011_v62 = vld [vmem:[%s2660_s5 + $0x2c8] sm:$0xff] }
  0xc5   : > { %v1543_v10 = vmin.f32 %v1292_v26, %v1542_v33  ;;  %v3776_v26 = vadd.s32 %v2673_v7, %v529_v58  ;;  %vm1044_vm5 = vcmp.lt.s32.totalorder %v3759_v8, %v2686_v13 }
  0xc6   : > { %v2062_v33 = vmax.f32 %v1811_v23, %v2061_v16  ;;  %v1301_v50 = vsel %vm1044_vm5, %v3790_v4, inf  ;;  %v537_v16 = vadd.s32 680, %v2667_v3  ;;  %v1826_v61 = vsel %vm1044_vm5, %v3790_v4, -inf  ;;  %v4028_v4 = vld [vmem:[%s2660_s5 + $0x2d0] sm:$0xff] }
  0xc7   : > { %v1544_v46 = vmin.f32 %v1293_v38, %v1543_v10  ;;  %v3793_v38 = vadd.s32 %v2673_v7, %v530_v2  ;;  %vm1045_vm6 = vcmp.lt.s32.totalorder %v3776_v26, %v2686_v13 }
  0xc8   : > { %v2063_v10 = vmax.f32 %v1812_v29, %v2062_v33  ;;  %v1302_v58 = vsel %vm1045_vm6, %v3807_v14, inf  ;;  %v538_v33 = vadd.s32 688, %v2667_v3  ;;  %v1827_v8 = vsel %vm1045_vm6, %v3807_v14, -inf  ;;  %v4045_v14 = vld [vmem:[%s2660_s5 + $0x2d8] sm:$0xff] }
  0xc9   : > { %v1545_v55 = vmin.f32 %v1294_v11, %v1544_v46  ;;  %v3810_v11 = vadd.s32 %v2673_v7, %v531_v24  ;;  %vm1046_vm7 = vcmp.lt.s32.totalorder %v3793_v38, %v2686_v13 }
  0xca   : > { %v2064_v46 = vmax.f32 %v1813_v34, %v2063_v10  ;;  %v1303_v2 = vsel %vm1046_vm7, %v3824_v28, inf  ;;  %v539_v10 = vadd.s32 696, %v2667_v3  ;;  %v1828_v26 = vsel %vm1046_vm7, %v3824_v28, -inf  ;;  %v4062_v28 = vld [vmem:[%s2660_s5 + $0x2e0] sm:$0xff] }
  0xcb   : > { %v1546_v63 = vmin.f32 %v1295_v51, %v1545_v55  ;;  %v3827_v51 = vadd.s32 %v2673_v7, %v532_v35  ;;  %vm1047_vm8 = vcmp.lt.s32.totalorder %v3810_v11, %v2686_v13 }
  0xcc   : > { %v2065_v55 = vmax.f32 %v1814_v39, %v2064_v46  ;;  %v1304_v24 = vsel %vm1047_vm8, %v3841_v41, inf  ;;  %v540_v46 = vadd.s32 704, %v2667_v3  ;;  %v1829_v38 = vsel %vm1047_vm8, %v3841_v41, -inf  ;;  %v4079_v41 = vld [vmem:[%s2660_s5 + $0x2e8] sm:$0xff] }
  0xcd   : > { %v1547_v9 = vmin.f32 %v1296_v60, %v1546_v63  ;;  %v3844_v60 = vadd.s32 %v2673_v7, %v533_v17  ;;  %vm1048_vm9 = vcmp.lt.s32.totalorder %v3827_v51, %v2686_v13 }
  0xce   : > { %v2066_v63 = vmax.f32 %v1815_v44, %v2065_v55  ;;  %v1305_v35 = vsel %vm1048_vm9, %v3858_v18, inf  ;;  %v541_v55 = vadd.s32 712, %v2667_v3  ;;  %v1830_v11 = vsel %vm1048_vm9, %v3858_v18, -inf  ;;  %v4096_v18 = vld [vmem:[%s2660_s5 + $0x2f0] sm:$0xff] }
  0xcf   : > { %v1548_v30 = vmin.f32 %v1297_v5, %v1547_v9  ;;  %v3861_v5 = vadd.s32 %v2673_v7, %v534_v48  ;;  %vm1049_vm10 = vcmp.lt.s32.totalorder %v3844_v60, %v2686_v13 }
  0xd0   : > { %v2067_v9 = vmax.f32 %v1816_v49, %v2066_v63  ;;  %v1306_v17 = vsel %vm1049_vm10, %v3875_v21, inf  ;;  %v542_v63 = vadd.s32 720, %v2667_v3  ;;  %v1831_v51 = vsel %vm1049_vm10, %v3875_v21, -inf  ;;  %v4113_v21 = vld [vmem:[%s2660_s5 + $0x2f8] sm:$0xff] }
  0xd1   : > { %v1549_v40 = vmin.f32 %v1298_v25, %v1548_v30  ;;  %v3878_v25 = vadd.s32 %v2673_v7, %v535_v56  ;;  %vm1050_vm11 = vcmp.lt.s32.totalorder %v3861_v5, %v2686_v13 }
  0xd2   : > { %v2068_v30 = vmax.f32 %v1817_v54, %v2067_v9  ;;  %v1307_v48 = vsel %vm1050_vm11, %v3892_v27, inf  ;;  %v543_v9 = vadd.s32 728, %v2667_v3  ;;  %v1832_v60 = vsel %vm1050_vm11, %v3892_v27, -inf  ;;  %v4130_v27 = vld [vmem:[%s2660_s5 + $0x300] sm:$0xff] }
  0xd3   : > { %v1550_v12 = vmin.f32 %v1299_v36, %v1549_v40  ;;  %v3895_v36 = vadd.s32 %v2673_v7, %v536_v1  ;;  %vm1051_vm12 = vcmp.lt.s32.totalorder %v3878_v25, %v2686_v13 }
  0xd4   : > { %v2069_v40 = vmax.f32 %v1818_v59, %v2068_v30  ;;  %v1308_v56 = vsel %vm1051_vm12, %v3909_v32, inf  ;;  %v544_v30 = vadd.s32 736, %v2667_v3  ;;  %v1833_v5 = vsel %vm1051_vm12, %v3909_v32, -inf  ;;  %v4147_v32 = vld [vmem:[%s2660_s5 + $0x308] sm:$0xff] }
  0xd5   : > { %v1551_v15 = vmin.f32 %v1300_v45, %v1550_v12  ;;  %v3912_v45 = vadd.s32 %v2673_v7, %v537_v16  ;;  %vm1052_vm13 = vcmp.lt.s32.totalorder %v3895_v36, %v2686_v13 }
  0xd6   : > { %v2070_v12 = vmax.f32 %v1819_v0, %v2069_v40  ;;  %v1309_v1 = vsel %vm1052_vm13, %v3926_v37, inf  ;;  %v545_v40 = vadd.s32 744, %v2667_v3  ;;  %v1834_v25 = vsel %vm1052_vm13, %v3926_v37, -inf  ;;  %v4164_v37 = vld [vmem:[%s2660_s5 + $0x310] sm:$0xff] }
  0xd7   : > { %v1552_v20 = vmin.f32 %v1301_v50, %v1551_v15  ;;  %v3929_v50 = vadd.s32 %v2673_v7, %v538_v33  ;;  %vm1053_vm14 = vcmp.lt.s32.totalorder %v3912_v45, %v2686_v13 }
  0xd8   : > { %v2071_v15 = vmax.f32 %v1820_v6, %v2070_v12  ;;  %v1310_v16 = vsel %vm1053_vm14, %v3943_v42, inf  ;;  %v546_v12 = vadd.s32 752, %v2667_v3  ;;  %v1835_v36 = vsel %vm1053_vm14, %v3943_v42, -inf  ;;  %v4181_v42 = vld [vmem:[%s2660_s5 + $0x318] sm:$0xff] }
  0xd9   : > { %v1553_v23 = vmin.f32 %v1302_v58, %v1552_v20  ;;  %v3946_v58 = vadd.s32 %v2673_v7, %v539_v10  ;;  %vm1054_vm15 = vcmp.lt.s32.totalorder %v3929_v50, %v2686_v13 }
  0xda   : > { %v2072_v20 = vmax.f32 %v1821_v22, %v2071_v15  ;;  %v1311_v33 = vsel %vm1054_vm15, %v3960_v47, inf  ;;  %v547_v15 = vadd.s32 760, %v2667_v3  ;;  %v1836_v45 = vsel %vm1054_vm15, %v3960_v47, -inf  ;;  %v4198_v47 = vld [vmem:[%s2660_s5 + $0x320] sm:$0xff] }
  0xdb   : > { %v1554_v29 = vmin.f32 %v1303_v2, %v1553_v23  ;;  %v3963_v2 = vadd.s32 %v2673_v7, %v540_v46  ;;  %vm1055_vm0 = vcmp.lt.s32.totalorder %v3946_v58, %v2686_v13 }
  0xdc   : > { %v2073_v23 = vmax.f32 %v1822_v31, %v2072_v20  ;;  %v1312_v10 = vsel %vm1055_vm0, %v3977_v52, inf  ;;  %v548_v20 = vadd.s32 768, %v2667_v3  ;;  %v1837_v50 = vsel %vm1055_vm0, %v3977_v52, -inf  ;;  %v4215_v52 = vld [vmem:[%s2660_s5 + $0x328] sm:$0xff] }
  0xdd   : > { %v1555_v34 = vmin.f32 %v1304_v24, %v1554_v29  ;;  %v3980_v24 = vadd.s32 %v2673_v7, %v541_v55  ;;  %vm1056_vm1 = vcmp.lt.s32.totalorder %v3963_v2, %v2686_v13 }
  0xde   : > { %v2074_v29 = vmax.f32 %v1823_v43, %v2073_v23  ;;  %v1313_v46 = vsel %vm1056_vm1, %v3994_v57, inf  ;;  %v549_v23 = vadd.s32 776, %v2667_v3  ;;  %v1838_v58 = vsel %vm1056_vm1, %v3994_v57, -inf  ;;  %v4232_v57 = vld [vmem:[%s2660_s5 + $0x330] sm:$0xff] }
  0xdf   : > { %v1556_v39 = vmin.f32 %v1305_v35, %v1555_v34  ;;  %v3997_v35 = vadd.s32 %v2673_v7, %v542_v63  ;;  %vm1057_vm2 = vcmp.lt.s32.totalorder %v3980_v24, %v2686_v13 }
  0xe0   : > { %v2075_v34 = vmax.f32 %v1824_v19, %v2074_v29  ;;  %v1314_v55 = vsel %vm1057_vm2, %v4011_v62, inf  ;;  %v550_v29 = vadd.s32 784, %v2667_v3  ;;  %v1839_v2 = vsel %vm1057_vm2, %v4011_v62, -inf  ;;  %v4249_v62 = vld [vmem:[%s2660_s5 + $0x338] sm:$0xff] }
  0xe1   : > { %v1557_v44 = vmin.f32 %v1306_v17, %v1556_v39  ;;  %v4014_v17 = vadd.s32 %v2673_v7, %v543_v9  ;;  %vm1058_vm3 = vcmp.lt.s32.totalorder %v3997_v35, %v2686_v13 }
  0xe2   : > { %v2076_v39 = vmax.f32 %v1825_v53, %v2075_v34  ;;  %v1315_v63 = vsel %vm1058_vm3, %v4028_v4, inf  ;;  %v551_v34 = vadd.s32 792, %v2667_v3  ;;  %v1840_v24 = vsel %vm1058_vm3, %v4028_v4, -inf  ;;  %v4266_v4 = vld [vmem:[%s2660_s5 + $0x340] sm:$0xff] }
  0xe3   : > { %v1558_v49 = vmin.f32 %v1307_v48, %v1557_v44  ;;  %v4031_v48 = vadd.s32 %v2673_v7, %v544_v30  ;;  %vm1059_vm4 = vcmp.lt.s32.totalorder %v4014_v17, %v2686_v13 }
  0xe4   : > { %v2077_v44 = vmax.f32 %v1826_v61, %v2076_v39  ;;  %v1316_v9 = vsel %vm1059_vm4, %v4045_v14, inf  ;;  %v552_v39 = vadd.s32 800, %v2667_v3  ;;  %v1841_v35 = vsel %vm1059_vm4, %v4045_v14, -inf  ;;  %v4283_v14 = vld [vmem:[%s2660_s5 + $0x348] sm:$0xff] }
  0xe5   : > { %v1559_v54 = vmin.f32 %v1308_v56, %v1558_v49  ;;  %v4048_v56 = vadd.s32 %v2673_v7, %v545_v40  ;;  %vm1060_vm5 = vcmp.lt.s32.totalorder %v4031_v48, %v2686_v13 }
  0xe6   : > { %v2078_v49 = vmax.f32 %v1827_v8, %v2077_v44  ;;  %v1317_v30 = vsel %vm1060_vm5, %v4062_v28, inf  ;;  %v553_v44 = vadd.s32 808, %v2667_v3  ;;  %v1842_v17 = vsel %vm1060_vm5, %v4062_v28, -inf  ;;  %v4300_v28 = vld [vmem:[%s2660_s5 + $0x350] sm:$0xff] }
  0xe7   : > { %v1560_v59 = vmin.f32 %v1309_v1, %v1559_v54  ;;  %v4065_v1 = vadd.s32 %v2673_v7, %v546_v12  ;;  %vm1061_vm6 = vcmp.lt.s32.totalorder %v4048_v56, %v2686_v13 }
  0xe8   : > { %v2079_v54 = vmax.f32 %v1828_v26, %v2078_v49  ;;  %v1318_v40 = vsel %vm1061_vm6, %v4079_v41, inf  ;;  %v554_v49 = vadd.s32 816, %v2667_v3  ;;  %v1843_v48 = vsel %vm1061_vm6, %v4079_v41, -inf  ;;  %v4317_v41 = vld [vmem:[%s2660_s5 + $0x358] sm:$0xff] }
  0xe9   : > { %v1561_v0 = vmin.f32 %v1310_v16, %v1560_v59  ;;  %v4082_v16 = vadd.s32 %v2673_v7, %v547_v15  ;;  %vm1062_vm7 = vcmp.lt.s32.totalorder %v4065_v1, %v2686_v13 }
  0xea   : > { %v2080_v59 = vmax.f32 %v1829_v38, %v2079_v54  ;;  %v1319_v12 = vsel %vm1062_vm7, %v4096_v18, inf  ;;  %v555_v54 = vadd.s32 824, %v2667_v3  ;;  %v1844_v56 = vsel %vm1062_vm7, %v4096_v18, -inf  ;;  %v4334_v18 = vld [vmem:[%s2660_s5 + $0x360] sm:$0xff] }
  0xeb   : > { %v1562_v6 = vmin.f32 %v1311_v33, %v1561_v0  ;;  %v4099_v33 = vadd.s32 %v2673_v7, %v548_v20  ;;  %vm1063_vm8 = vcmp.lt.s32.totalorder %v4082_v16, %v2686_v13 }
  0xec   : > { %v2081_v0 = vmax.f32 %v1830_v11, %v2080_v59  ;;  %v1320_v15 = vsel %vm1063_vm8, %v4113_v21, inf  ;;  %v556_v59 = vadd.s32 832, %v2667_v3  ;;  %v1845_v1 = vsel %vm1063_vm8, %v4113_v21, -inf  ;;  %v4351_v21 = vld [vmem:[%s2660_s5 + $0x368] sm:$0xff] }
  0xed   : > { %v1563_v22 = vmin.f32 %v1312_v10, %v1562_v6  ;;  %v4116_v10 = vadd.s32 %v2673_v7, %v549_v23  ;;  %vm1064_vm9 = vcmp.lt.s32.totalorder %v4099_v33, %v2686_v13 }
  0xee   : > { %v2082_v6 = vmax.f32 %v1831_v51, %v2081_v0  ;;  %v1321_v20 = vsel %vm1064_vm9, %v4130_v27, inf  ;;  %v557_v0 = vadd.s32 840, %v2667_v3  ;;  %v1846_v16 = vsel %vm1064_vm9, %v4130_v27, -inf  ;;  %v4368_v27 = vld [vmem:[%s2660_s5 + $0x370] sm:$0xff] }
  0xef   : > { %v1564_v31 = vmin.f32 %v1313_v46, %v1563_v22  ;;  %v4133_v46 = vadd.s32 %v2673_v7, %v550_v29  ;;  %vm1065_vm10 = vcmp.lt.s32.totalorder %v4116_v10, %v2686_v13 }
  0xf0   : > { %v2083_v22 = vmax.f32 %v1832_v60, %v2082_v6  ;;  %v1322_v23 = vsel %vm1065_vm10, %v4147_v32, inf  ;;  %v558_v6 = vadd.s32 848, %v2667_v3  ;;  %v1847_v33 = vsel %vm1065_vm10, %v4147_v32, -inf  ;;  %v4385_v32 = vld [vmem:[%s2660_s5 + $0x378] sm:$0xff] }
  0xf1   : > { %v1565_v43 = vmin.f32 %v1314_v55, %v1564_v31  ;;  %v4150_v55 = vadd.s32 %v2673_v7, %v551_v34  ;;  %vm1066_vm11 = vcmp.lt.s32.totalorder %v4133_v46, %v2686_v13 }
  0xf2   : > { %v2084_v31 = vmax.f32 %v1833_v5, %v2083_v22  ;;  %v1323_v29 = vsel %vm1066_vm11, %v4164_v37, inf  ;;  %v559_v22 = vadd.s32 856, %v2667_v3  ;;  %v1848_v10 = vsel %vm1066_vm11, %v4164_v37, -inf  ;;  %v4402_v37 = vld [vmem:[%s2660_s5 + $0x380] sm:$0xff] }
  0xf3   : > { %v1566_v19 = vmin.f32 %v1315_v63, %v1565_v43  ;;  %v4167_v63 = vadd.s32 %v2673_v7, %v552_v39  ;;  %vm1067_vm12 = vcmp.lt.s32.totalorder %v4150_v55, %v2686_v13 }
  0xf4   : > { %v2085_v43 = vmax.f32 %v1834_v25, %v2084_v31  ;;  %v1324_v34 = vsel %vm1067_vm12, %v4181_v42, inf  ;;  %v560_v31 = vadd.s32 864, %v2667_v3  ;;  %v1849_v46 = vsel %vm1067_vm12, %v4181_v42, -inf  ;;  %v4419_v42 = vld [vmem:[%s2660_s5 + $0x388] sm:$0xff] }
  0xf5   : > { %v1567_v53 = vmin.f32 %v1316_v9, %v1566_v19  ;;  %v4184_v9 = vadd.s32 %v2673_v7, %v553_v44  ;;  %vm1068_vm13 = vcmp.lt.s32.totalorder %v4167_v63, %v2686_v13 }
  0xf6   : > { %v2086_v19 = vmax.f32 %v1835_v36, %v2085_v43  ;;  %v1325_v39 = vsel %vm1068_vm13, %v4198_v47, inf  ;;  %v561_v43 = vadd.s32 872, %v2667_v3  ;;  %v1850_v55 = vsel %vm1068_vm13, %v4198_v47, -inf  ;;  %v4436_v47 = vld [vmem:[%s2660_s5 + $0x390] sm:$0xff] }
  0xf7   : > { %v1568_v61 = vmin.f32 %v1317_v30, %v1567_v53  ;;  %v4201_v30 = vadd.s32 %v2673_v7, %v554_v49  ;;  %vm1069_vm14 = vcmp.lt.s32.totalorder %v4184_v9, %v2686_v13 }
  0xf8   : > { %v2087_v53 = vmax.f32 %v1836_v45, %v2086_v19  ;;  %v1326_v44 = vsel %vm1069_vm14, %v4215_v52, inf  ;;  %v562_v19 = vadd.s32 880, %v2667_v3  ;;  %v1851_v63 = vsel %vm1069_vm14, %v4215_v52, -inf  ;;  %v4453_v52 = vld [vmem:[%s2660_s5 + $0x398] sm:$0xff] }
  0xf9   : > { %v1569_v8 = vmin.f32 %v1318_v40, %v1568_v61  ;;  %v4218_v40 = vadd.s32 %v2673_v7, %v555_v54  ;;  %vm1070_vm15 = vcmp.lt.s32.totalorder %v4201_v30, %v2686_v13 }
  0xfa   : > { %v2088_v61 = vmax.f32 %v1837_v50, %v2087_v53  ;;  %v1327_v49 = vsel %vm1070_vm15, %v4232_v57, inf  ;;  %v563_v53 = vadd.s32 888, %v2667_v3  ;;  %v1852_v9 = vsel %vm1070_vm15, %v4232_v57, -inf  ;;  %v4470_v57 = vld [vmem:[%s2660_s5 + $0x3a0] sm:$0xff] }
  0xfb   : > { %v1570_v26 = vmin.f32 %v1319_v12, %v1569_v8  ;;  %v4235_v12 = vadd.s32 %v2673_v7, %v556_v59  ;;  %vm1071_vm0 = vcmp.lt.s32.totalorder %v4218_v40, %v2686_v13 }
  0xfc   : > { %v2089_v8 = vmax.f32 %v1838_v58, %v2088_v61  ;;  %v1328_v54 = vsel %vm1071_vm0, %v4249_v62, inf  ;;  %v564_v61 = vadd.s32 896, %v2667_v3  ;;  %v1853_v30 = vsel %vm1071_vm0, %v4249_v62, -inf  ;;  %v4487_v62 = vld [vmem:[%s2660_s5 + $0x3a8] sm:$0xff] }
  0xfd   : > { %v1571_v38 = vmin.f32 %v1320_v15, %v1570_v26  ;;  %v4252_v15 = vadd.s32 %v2673_v7, %v557_v0  ;;  %vm1072_vm1 = vcmp.lt.s32.totalorder %v4235_v12, %v2686_v13 }
  0xfe   : > { %v2090_v26 = vmax.f32 %v1839_v2, %v2089_v8  ;;  %v1329_v59 = vsel %vm1072_vm1, %v4266_v4, inf  ;;  %v565_v8 = vadd.s32 904, %v2667_v3  ;;  %v1854_v40 = vsel %vm1072_vm1, %v4266_v4, -inf  ;;  %v4504_v4 = vld [vmem:[%s2660_s5 + $0x3b0] sm:$0xff] }
  0xff   : > { %v1572_v11 = vmin.f32 %v1321_v20, %v1571_v38  ;;  %v4269_v20 = vadd.s32 %v2673_v7, %v558_v6  ;;  %vm1073_vm2 = vcmp.lt.s32.totalorder %v4252_v15, %v2686_v13 }
 0x100   : > { %v2091_v38 = vmax.f32 %v1840_v24, %v2090_v26  ;;  %v1330_v0 = vsel %vm1073_vm2, %v4283_v14, inf  ;;  %v566_v26 = vadd.s32 912, %v2667_v3  ;;  %v1855_v12 = vsel %vm1073_vm2, %v4283_v14, -inf  ;;  %v4521_v14 = vld [vmem:[%s2660_s5 + $0x3b8] sm:$0xff] }
 0x101   : > { %v1573_v51 = vmin.f32 %v1322_v23, %v1572_v11  ;;  %v4286_v23 = vadd.s32 %v2673_v7, %v559_v22  ;;  %vm1074_vm3 = vcmp.lt.s32.totalorder %v4269_v20, %v2686_v13 }
 0x102   : > { %v2092_v11 = vmax.f32 %v1841_v35, %v2091_v38  ;;  %v1331_v6 = vsel %vm1074_vm3, %v4300_v28, inf  ;;  %v567_v38 = vadd.s32 920, %v2667_v3  ;;  %v1856_v15 = vsel %vm1074_vm3, %v4300_v28, -inf  ;;  %v4538_v28 = vld [vmem:[%s2660_s5 + $0x3c0] sm:$0xff] }
 0x103   : > { %v1574_v60 = vmin.f32 %v1323_v29, %v1573_v51  ;;  %v4303_v29 = vadd.s32 %v2673_v7, %v560_v31  ;;  %vm1075_vm4 = vcmp.lt.s32.totalorder %v4286_v23, %v2686_v13 }
 0x104   : > { %v2093_v51 = vmax.f32 %v1842_v17, %v2092_v11  ;;  %v1332_v22 = vsel %vm1075_vm4, %v4317_v41, inf  ;;  %v568_v11 = vadd.s32 928, %v2667_v3  ;;  %v1857_v20 = vsel %vm1075_vm4, %v4317_v41, -inf  ;;  %v4555_v41 = vld [vmem:[%s2660_s5 + $0x3c8] sm:$0xff] }
 0x105   : > { %v1575_v5 = vmin.f32 %v1324_v34, %v1574_v60  ;;  %v4320_v34 = vadd.s32 %v2673_v7, %v561_v43  ;;  %vm1076_vm5 = vcmp.lt.s32.totalorder %v4303_v29, %v2686_v13 }
 0x106   : > { %v2094_v60 = vmax.f32 %v1843_v48, %v2093_v51  ;;  %v1333_v31 = vsel %vm1076_vm5, %v4334_v18, inf  ;;  %v569_v51 = vadd.s32 936, %v2667_v3  ;;  %v1858_v23 = vsel %vm1076_vm5, %v4334_v18, -inf  ;;  %v4572_v18 = vld [vmem:[%s2660_s5 + $0x3d0] sm:$0xff] }
 0x107   : > { %v1576_v25 = vmin.f32 %v1325_v39, %v1575_v5  ;;  %v4337_v39 = vadd.s32 %v2673_v7, %v562_v19  ;;  %vm1077_vm6 = vcmp.lt.s32.totalorder %v4320_v34, %v2686_v13 }
 0x108   : > { %v2095_v5 = vmax.f32 %v1844_v56, %v2094_v60  ;;  %v1334_v43 = vsel %vm1077_vm6, %v4351_v21, inf  ;;  %v570_v60 = vadd.s32 944, %v2667_v3  ;;  %v1859_v29 = vsel %vm1077_vm6, %v4351_v21, -inf  ;;  %v4589_v21 = vld [vmem:[%s2660_s5 + $0x3d8] sm:$0xff] }
 0x109   : > { %v1577_v36 = vmin.f32 %v1326_v44, %v1576_v25  ;;  %v4354_v44 = vadd.s32 %v2673_v7, %v563_v53  ;;  %vm1078_vm7 = vcmp.lt.s32.totalorder %v4337_v39, %v2686_v13 }
 0x10a   : > { %v2096_v25 = vmax.f32 %v1845_v1, %v2095_v5  ;;  %v1335_v19 = vsel %vm1078_vm7, %v4368_v27, inf  ;;  %v571_v5 = vadd.s32 952, %v2667_v3  ;;  %v1860_v34 = vsel %vm1078_vm7, %v4368_v27, -inf  ;;  %v4606_v27 = vld [vmem:[%s2660_s5 + $0x3e0] sm:$0xff] }
 0x10b   : > { %v1578_v45 = vmin.f32 %v1327_v49, %v1577_v36  ;;  %v4371_v49 = vadd.s32 %v2673_v7, %v564_v61  ;;  %vm1079_vm8 = vcmp.lt.s32.totalorder %v4354_v44, %v2686_v13 }
 0x10c   : > { %v2097_v36 = vmax.f32 %v1846_v16, %v2096_v25  ;;  %v1336_v53 = vsel %vm1079_vm8, %v4385_v32, inf  ;;  %v572_v25 = vadd.s32 960, %v2667_v3  ;;  %v1861_v39 = vsel %vm1079_vm8, %v4385_v32, -inf  ;;  %v4623_v32 = vld [vmem:[%s2660_s5 + $0x3e8] sm:$0xff] }
 0x10d   : > { %v1579_v50 = vmin.f32 %v1328_v54, %v1578_v45  ;;  %v4388_v54 = vadd.s32 %v2673_v7, %v565_v8  ;;  %vm1080_vm9 = vcmp.lt.s32.totalorder %v4371_v49, %v2686_v13 }
 0x10e   : > { %v2098_v45 = vmax.f32 %v1847_v33, %v2097_v36  ;;  %v1337_v61 = vsel %vm1080_vm9, %v4402_v37, inf  ;;  %v573_v36 = vadd.s32 968, %v2667_v3  ;;  %v1862_v44 = vsel %vm1080_vm9, %v4402_v37, -inf  ;;  %v4640_v37 = vld [vmem:[%s2660_s5 + $0x3f0] sm:$0xff] }
 0x10f   : > { %v1580_v58 = vmin.f32 %v1329_v59, %v1579_v50  ;;  %v4405_v59 = vadd.s32 %v2673_v7, %v566_v26  ;;  %vm1081_vm10 = vcmp.lt.s32.totalorder %v4388_v54, %v2686_v13 }
 0x110   : > { %v2099_v50 = vmax.f32 %v1848_v10, %v2098_v45  ;;  %v1338_v8 = vsel %vm1081_vm10, %v4419_v42, inf  ;;  %v574_v45 = vadd.s32 976, %v2667_v3  ;;  %v1863_v49 = vsel %vm1081_vm10, %v4419_v42, -inf  ;;  %v4657_v42 = vld [vmem:[%s2660_s5 + $0x3f8] sm:$0xff] }
 0x111   : > { %v1581_v2 = vmin.f32 %v1330_v0, %v1580_v58  ;;  %v4422_v0 = vadd.s32 %v2673_v7, %v567_v38  ;;  %vm1082_vm11 = vcmp.lt.s32.totalorder %v4405_v59, %v2686_v13 }
 0x112   : > { %v2100_v58 = vmax.f32 %v1849_v46, %v2099_v50  ;;  %v1339_v26 = vsel %vm1082_vm11, %v4436_v47, inf  ;;  %v575_v50 = vadd.s32 984, %v2667_v3  ;;  %v1864_v54 = vsel %vm1082_vm11, %v4436_v47, -inf  ;;  %v4674_v47 = vld [vmem:[%s2660_s5 + $0x400] sm:$0xff] }
 0x113   : > { %v1582_v24 = vmin.f32 %v1331_v6, %v1581_v2  ;;  %v4439_v6 = vadd.s32 %v2673_v7, %v568_v11  ;;  %vm1083_vm12 = vcmp.lt.s32.totalorder %v4422_v0, %v2686_v13 }
 0x114   : > { %v2101_v2 = vmax.f32 %v1850_v55, %v2100_v58  ;;  %v1340_v38 = vsel %vm1083_vm12, %v4453_v52, inf  ;;  %v576_v58 = vadd.s32 992, %v2667_v3  ;;  %v1865_v59 = vsel %vm1083_vm12, %v4453_v52, -inf  ;;  %v4691_v52 = vld [vmem:[%s2660_s5 + $0x408] sm:$0xff] }
 0x115   : > { %v1583_v35 = vmin.f32 %v1332_v22, %v1582_v24  ;;  %v4456_v22 = vadd.s32 %v2673_v7, %v569_v51  ;;  %vm1084_vm13 = vcmp.lt.s32.totalorder %v4439_v6, %v2686_v13 }
 0x116   : > { %v2102_v24 = vmax.f32 %v1851_v63, %v2101_v2  ;;  %v1341_v11 = vsel %vm1084_vm13, %v4470_v57, inf  ;;  %v577_v2 = vadd.s32 1000, %v2667_v3  ;;  %v1866_v0 = vsel %vm1084_vm13, %v4470_v57, -inf  ;;  %v4708_v57 = vld [vmem:[%s2660_s5 + $0x410] sm:$0xff] }
 0x117   : > { %v1584_v17 = vmin.f32 %v1333_v31, %v1583_v35  ;;  %v4473_v31 = vadd.s32 %v2673_v7, %v570_v60  ;;  %vm1085_vm14 = vcmp.lt.s32.totalorder %v4456_v22, %v2686_v13 }
 0x118   : > { %v2103_v35 = vmax.f32 %v1852_v9, %v2102_v24  ;;  %v1342_v51 = vsel %vm1085_vm14, %v4487_v62, inf  ;;  %v578_v24 = vadd.s32 1008, %v2667_v3  ;;  %v1867_v6 = vsel %vm1085_vm14, %v4487_v62, -inf  ;;  %v4725_v62 = vld [vmem:[%s2660_s5 + $0x418] sm:$0xff] }
 0x119   : > { %v1585_v48 = vmin.f32 %v1334_v43, %v1584_v17  ;;  %v4490_v43 = vadd.s32 %v2673_v7, %v571_v5  ;;  %vm1086_vm15 = vcmp.lt.s32.totalorder %v4473_v31, %v2686_v13 }
 0x11a   : > { %v2104_v17 = vmax.f32 %v1853_v30, %v2103_v35  ;;  %v1343_v60 = vsel %vm1086_vm15, %v4504_v4, inf  ;;  %v579_v35 = vadd.s32 1016, %v2667_v3  ;;  %v1868_v22 = vsel %vm1086_vm15, %v4504_v4, -inf  ;;  %v4742_v4 = vld [vmem:[%s2660_s5 + $0x420] sm:$0xff] }
 0x11b   : > { %v1586_v56 = vmin.f32 %v1335_v19, %v1585_v48  ;;  %v4507_v19 = vadd.s32 %v2673_v7, %v572_v25  ;;  %vm1087_vm0 = vcmp.lt.s32.totalorder %v4490_v43, %v2686_v13 }
 0x11c   : > { %v2105_v48 = vmax.f32 %v1854_v40, %v2104_v17  ;;  %v1344_v5 = vsel %vm1087_vm0, %v4521_v14, inf  ;;  %v580_v17 = vadd.s32 1024, %v2667_v3  ;;  %v1869_v31 = vsel %vm1087_vm0, %v4521_v14, -inf  ;;  %v4759_v14 = vld [vmem:[%s2660_s5 + $0x428] sm:$0xff] }
 0x11d   : > { %v1587_v1 = vmin.f32 %v1336_v53, %v1586_v56  ;;  %v4524_v53 = vadd.s32 %v2673_v7, %v573_v36  ;;  %vm1088_vm1 = vcmp.lt.s32.totalorder %v4507_v19, %v2686_v13 }
 0x11e   : > { %v2106_v56 = vmax.f32 %v1855_v12, %v2105_v48  ;;  %v1345_v25 = vsel %vm1088_vm1, %v4538_v28, inf  ;;  %v581_v48 = vadd.s32 1032, %v2667_v3  ;;  %v1870_v43 = vsel %vm1088_vm1, %v4538_v28, -inf  ;;  %v4776_v28 = vld [vmem:[%s2660_s5 + $0x430] sm:$0xff] }
 0x11f   : > { %v1588_v16 = vmin.f32 %v1337_v61, %v1587_v1  ;;  %v4541_v61 = vadd.s32 %v2673_v7, %v574_v45  ;;  %vm1089_vm2 = vcmp.lt.s32.totalorder %v4524_v53, %v2686_v13 }
 0x120   : > { %v2107_v1 = vmax.f32 %v1856_v15, %v2106_v56  ;;  %v1346_v36 = vsel %vm1089_vm2, %v4555_v41, inf  ;;  %v582_v56 = vadd.s32 1040, %v2667_v3  ;;  %v1871_v19 = vsel %vm1089_vm2, %v4555_v41, -inf  ;;  %v4793_v41 = vld [vmem:[%s2660_s5 + $0x438] sm:$0xff] }
 0x121   : > { %v1589_v33 = vmin.f32 %v1338_v8, %v1588_v16  ;;  %v4558_v8 = vadd.s32 %v2673_v7, %v575_v50  ;;  %vm1090_vm3 = vcmp.lt.s32.totalorder %v4541_v61, %v2686_v13 }
 0x122   : > { %v2108_v16 = vmax.f32 %v1857_v20, %v2107_v1  ;;  %v1347_v45 = vsel %vm1090_vm3, %v4572_v18, inf  ;;  %v583_v1 = vadd.s32 1048, %v2667_v3  ;;  %v1872_v53 = vsel %vm1090_vm3, %v4572_v18, -inf  ;;  %v4810_v18 = vld [vmem:[%s2660_s5 + $0x440] sm:$0xff] }
 0x123   : > { %v1590_v10 = vmin.f32 %v1339_v26, %v1589_v33  ;;  %v4575_v26 = vadd.s32 %v2673_v7, %v576_v58  ;;  %vm1091_vm4 = vcmp.lt.s32.totalorder %v4558_v8, %v2686_v13 }
 0x124   : > { %v2109_v33 = vmax.f32 %v1858_v23, %v2108_v16  ;;  %v1348_v50 = vsel %vm1091_vm4, %v4589_v21, inf  ;;  %v584_v16 = vadd.s32 1056, %v2667_v3  ;;  %v1873_v61 = vsel %vm1091_vm4, %v4589_v21, -inf  ;;  %v4827_v21 = vld [vmem:[%s2660_s5 + $0x448] sm:$0xff] }
 0x125   : > { %v1591_v46 = vmin.f32 %v1340_v38, %v1590_v10  ;;  %v4592_v38 = vadd.s32 %v2673_v7, %v577_v2  ;;  %vm1092_vm5 = vcmp.lt.s32.totalorder %v4575_v26, %v2686_v13 }
 0x126   : > { %v2110_v10 = vmax.f32 %v1859_v29, %v2109_v33  ;;  %v1349_v58 = vsel %vm1092_vm5, %v4606_v27, inf  ;;  %v585_v33 = vadd.s32 1064, %v2667_v3  ;;  %v1874_v8 = vsel %vm1092_vm5, %v4606_v27, -inf  ;;  %v4844_v27 = vld [vmem:[%s2660_s5 + $0x450] sm:$0xff] }
 0x127   : > { %v1592_v55 = vmin.f32 %v1341_v11, %v1591_v46  ;;  %v4609_v11 = vadd.s32 %v2673_v7, %v578_v24  ;;  %vm1093_vm6 = vcmp.lt.s32.totalorder %v4592_v38, %v2686_v13 }
 0x128   : > { %v2111_v46 = vmax.f32 %v1860_v34, %v2110_v10  ;;  %v1350_v2 = vsel %vm1093_vm6, %v4623_v32, inf  ;;  %v586_v10 = vadd.s32 1072, %v2667_v3  ;;  %v1875_v26 = vsel %vm1093_vm6, %v4623_v32, -inf  ;;  %v4861_v32 = vld [vmem:[%s2660_s5 + $0x458] sm:$0xff] }
 0x129   : > { %v1593_v63 = vmin.f32 %v1342_v51, %v1592_v55  ;;  %v4626_v51 = vadd.s32 %v2673_v7, %v579_v35  ;;  %vm1094_vm7 = vcmp.lt.s32.totalorder %v4609_v11, %v2686_v13 }
 0x12a   : > { %v2112_v55 = vmax.f32 %v1861_v39, %v2111_v46  ;;  %v1351_v24 = vsel %vm1094_vm7, %v4640_v37, inf  ;;  %v587_v46 = vadd.s32 1080, %v2667_v3  ;;  %v1876_v38 = vsel %vm1094_vm7, %v4640_v37, -inf  ;;  %v4878_v37 = vld [vmem:[%s2660_s5 + $0x460] sm:$0xff] }
 0x12b   : > { %v1594_v9 = vmin.f32 %v1343_v60, %v1593_v63  ;;  %v4643_v60 = vadd.s32 %v2673_v7, %v580_v17  ;;  %vm1095_vm8 = vcmp.lt.s32.totalorder %v4626_v51, %v2686_v13 }
 0x12c   : > { %v2113_v63 = vmax.f32 %v1862_v44, %v2112_v55  ;;  %v1352_v35 = vsel %vm1095_vm8, %v4657_v42, inf  ;;  %v588_v55 = vadd.s32 1088, %v2667_v3  ;;  %v1877_v11 = vsel %vm1095_vm8, %v4657_v42, -inf  ;;  %v4895_v42 = vld [vmem:[%s2660_s5 + $0x468] sm:$0xff] }
 0x12d   : > { %v1595_v30 = vmin.f32 %v1344_v5, %v1594_v9  ;;  %v4660_v5 = vadd.s32 %v2673_v7, %v581_v48  ;;  %vm1096_vm9 = vcmp.lt.s32.totalorder %v4643_v60, %v2686_v13 }
 0x12e   : > { %v2114_v9 = vmax.f32 %v1863_v49, %v2113_v63  ;;  %v1353_v17 = vsel %vm1096_vm9, %v4674_v47, inf  ;;  %v589_v63 = vadd.s32 1096, %v2667_v3  ;;  %v1878_v51 = vsel %vm1096_vm9, %v4674_v47, -inf  ;;  %v4912_v47 = vld [vmem:[%s2660_s5 + $0x470] sm:$0xff] }
 0x12f   : > { %v1596_v40 = vmin.f32 %v1345_v25, %v1595_v30  ;;  %v4677_v25 = vadd.s32 %v2673_v7, %v582_v56  ;;  %vm1097_vm10 = vcmp.lt.s32.totalorder %v4660_v5, %v2686_v13 }
 0x130   : > { %v2115_v30 = vmax.f32 %v1864_v54, %v2114_v9  ;;  %v1354_v48 = vsel %vm1097_vm10, %v4691_v52, inf  ;;  %v590_v9 = vadd.s32 1104, %v2667_v3  ;;  %v1879_v60 = vsel %vm1097_vm10, %v4691_v52, -inf  ;;  %v4929_v52 = vld [vmem:[%s2660_s5 + $0x478] sm:$0xff] }
 0x131   : > { %v1597_v12 = vmin.f32 %v1346_v36, %v1596_v40  ;;  %v4694_v36 = vadd.s32 %v2673_v7, %v583_v1  ;;  %vm1098_vm11 = vcmp.lt.s32.totalorder %v4677_v25, %v2686_v13 }
 0x132   : > { %v2116_v40 = vmax.f32 %v1865_v59, %v2115_v30  ;;  %v1355_v56 = vsel %vm1098_vm11, %v4708_v57, inf  ;;  %v591_v30 = vadd.s32 1112, %v2667_v3  ;;  %v1880_v5 = vsel %vm1098_vm11, %v4708_v57, -inf  ;;  %v4946_v57 = vld [vmem:[%s2660_s5 + $0x480] sm:$0xff] }
 0x133   : > { %v1598_v15 = vmin.f32 %v1347_v45, %v1597_v12  ;;  %v4711_v45 = vadd.s32 %v2673_v7, %v584_v16  ;;  %vm1099_vm12 = vcmp.lt.s32.totalorder %v4694_v36, %v2686_v13 }
 0x134   : > { %v2117_v12 = vmax.f32 %v1866_v0, %v2116_v40  ;;  %v1356_v1 = vsel %vm1099_vm12, %v4725_v62, inf  ;;  %v592_v40 = vadd.s32 1120, %v2667_v3  ;;  %v1881_v25 = vsel %vm1099_vm12, %v4725_v62, -inf  ;;  %v4963_v62 = vld [vmem:[%s2660_s5 + $0x488] sm:$0xff] }
 0x135   : > { %v1599_v20 = vmin.f32 %v1348_v50, %v1598_v15  ;;  %v4728_v50 = vadd.s32 %v2673_v7, %v585_v33  ;;  %vm1100_vm13 = vcmp.lt.s32.totalorder %v4711_v45, %v2686_v13 }
 0x136   : > { %v2118_v15 = vmax.f32 %v1867_v6, %v2117_v12  ;;  %v1357_v16 = vsel %vm1100_vm13, %v4742_v4, inf  ;;  %v593_v12 = vadd.s32 1128, %v2667_v3  ;;  %v1882_v36 = vsel %vm1100_vm13, %v4742_v4, -inf  ;;  %v4980_v4 = vld [vmem:[%s2660_s5 + $0x490] sm:$0xff] }
 0x137   : > { %v1600_v23 = vmin.f32 %v1349_v58, %v1599_v20  ;;  %v4745_v58 = vadd.s32 %v2673_v7, %v586_v10  ;;  %vm1101_vm14 = vcmp.lt.s32.totalorder %v4728_v50, %v2686_v13 }
 0x138   : > { %v2119_v20 = vmax.f32 %v1868_v22, %v2118_v15  ;;  %v1358_v33 = vsel %vm1101_vm14, %v4759_v14, inf  ;;  %v594_v15 = vadd.s32 1136, %v2667_v3  ;;  %v1883_v45 = vsel %vm1101_vm14, %v4759_v14, -inf  ;;  %v4997_v14 = vld [vmem:[%s2660_s5 + $0x498] sm:$0xff] }
 0x139   : > { %v1601_v29 = vmin.f32 %v1350_v2, %v1600_v23  ;;  %v4762_v2 = vadd.s32 %v2673_v7, %v587_v46  ;;  %vm1102_vm15 = vcmp.lt.s32.totalorder %v4745_v58, %v2686_v13 }
 0x13a   : > { %v2120_v23 = vmax.f32 %v1869_v31, %v2119_v20  ;;  %v1359_v10 = vsel %vm1102_vm15, %v4776_v28, inf  ;;  %v595_v20 = vadd.s32 1144, %v2667_v3  ;;  %v1884_v50 = vsel %vm1102_vm15, %v4776_v28, -inf  ;;  %v5014_v28 = vld [vmem:[%s2660_s5 + $0x4a0] sm:$0xff] }
 0x13b   : > { %v1602_v34 = vmin.f32 %v1351_v24, %v1601_v29  ;;  %v4779_v24 = vadd.s32 %v2673_v7, %v588_v55  ;;  %vm1103_vm0 = vcmp.lt.s32.totalorder %v4762_v2, %v2686_v13 }
 0x13c   : > { %v2121_v29 = vmax.f32 %v1870_v43, %v2120_v23  ;;  %v1360_v46 = vsel %vm1103_vm0, %v4793_v41, inf  ;;  %v596_v23 = vadd.s32 1152, %v2667_v3  ;;  %v1885_v58 = vsel %vm1103_vm0, %v4793_v41, -inf  ;;  %v5031_v41 = vld [vmem:[%s2660_s5 + $0x4a8] sm:$0xff] }
 0x13d   : > { %v1603_v39 = vmin.f32 %v1352_v35, %v1602_v34  ;;  %v4796_v35 = vadd.s32 %v2673_v7, %v589_v63  ;;  %vm1104_vm1 = vcmp.lt.s32.totalorder %v4779_v24, %v2686_v13 }
 0x13e   : > { %v2122_v34 = vmax.f32 %v1871_v19, %v2121_v29  ;;  %v1361_v55 = vsel %vm1104_vm1, %v4810_v18, inf  ;;  %v597_v29 = vadd.s32 1160, %v2667_v3  ;;  %v1886_v2 = vsel %vm1104_vm1, %v4810_v18, -inf  ;;  %v5048_v18 = vld [vmem:[%s2660_s5 + $0x4b0] sm:$0xff] }
 0x13f   : > { %v1604_v44 = vmin.f32 %v1353_v17, %v1603_v39  ;;  %v4813_v17 = vadd.s32 %v2673_v7, %v590_v9  ;;  %vm1105_vm2 = vcmp.lt.s32.totalorder %v4796_v35, %v2686_v13 }
 0x140   : > { %v2123_v39 = vmax.f32 %v1872_v53, %v2122_v34  ;;  %v1362_v63 = vsel %vm1105_vm2, %v4827_v21, inf  ;;  %v598_v34 = vadd.s32 1168, %v2667_v3  ;;  %v1887_v24 = vsel %vm1105_vm2, %v4827_v21, -inf  ;;  %v5065_v21 = vld [vmem:[%s2660_s5 + $0x4b8] sm:$0xff] }
 0x141   : > { %v1605_v49 = vmin.f32 %v1354_v48, %v1604_v44  ;;  %v4830_v48 = vadd.s32 %v2673_v7, %v591_v30  ;;  %vm1106_vm3 = vcmp.lt.s32.totalorder %v4813_v17, %v2686_v13 }
 0x142   : > { %v2124_v44 = vmax.f32 %v1873_v61, %v2123_v39  ;;  %v1363_v9 = vsel %vm1106_vm3, %v4844_v27, inf  ;;  %v599_v39 = vadd.s32 1176, %v2667_v3  ;;  %v1888_v35 = vsel %vm1106_vm3, %v4844_v27, -inf  ;;  %v5082_v27 = vld [vmem:[%s2660_s5 + $0x4c0] sm:$0xff] }
 0x143   : > { %v1606_v54 = vmin.f32 %v1355_v56, %v1605_v49  ;;  %v4847_v56 = vadd.s32 %v2673_v7, %v592_v40  ;;  %vm1107_vm4 = vcmp.lt.s32.totalorder %v4830_v48, %v2686_v13 }
 0x144   : > { %v2125_v49 = vmax.f32 %v1874_v8, %v2124_v44  ;;  %v1364_v30 = vsel %vm1107_vm4, %v4861_v32, inf  ;;  %v600_v44 = vadd.s32 1184, %v2667_v3  ;;  %v1889_v17 = vsel %vm1107_vm4, %v4861_v32, -inf  ;;  %v5099_v32 = vld [vmem:[%s2660_s5 + $0x4c8] sm:$0xff] }
 0x145   : > { %v1607_v59 = vmin.f32 %v1356_v1, %v1606_v54  ;;  %v4864_v1 = vadd.s32 %v2673_v7, %v593_v12  ;;  %vm1108_vm5 = vcmp.lt.s32.totalorder %v4847_v56, %v2686_v13 }
 0x146   : > { %v2126_v54 = vmax.f32 %v1875_v26, %v2125_v49  ;;  %v1365_v40 = vsel %vm1108_vm5, %v4878_v37, inf  ;;  %v601_v49 = vadd.s32 1192, %v2667_v3  ;;  %v1890_v48 = vsel %vm1108_vm5, %v4878_v37, -inf  ;;  %v5116_v37 = vld [vmem:[%s2660_s5 + $0x4d0] sm:$0xff] }
 0x147   : > { %v1608_v0 = vmin.f32 %v1357_v16, %v1607_v59  ;;  %v4881_v16 = vadd.s32 %v2673_v7, %v594_v15  ;;  %vm1109_vm6 = vcmp.lt.s32.totalorder %v4864_v1, %v2686_v13 }
 0x148   : > { %v2127_v59 = vmax.f32 %v1876_v38, %v2126_v54  ;;  %v1366_v12 = vsel %vm1109_vm6, %v4895_v42, inf  ;;  %v602_v54 = vadd.s32 1200, %v2667_v3  ;;  %v1891_v56 = vsel %vm1109_vm6, %v4895_v42, -inf  ;;  %v5133_v42 = vld [vmem:[%s2660_s5 + $0x4d8] sm:$0xff] }
 0x149   : > { %v1609_v6 = vmin.f32 %v1358_v33, %v1608_v0  ;;  %v4898_v33 = vadd.s32 %v2673_v7, %v595_v20  ;;  %vm1110_vm7 = vcmp.lt.s32.totalorder %v4881_v16, %v2686_v13 }
 0x14a   : > { %v2128_v0 = vmax.f32 %v1877_v11, %v2127_v59  ;;  %v1367_v15 = vsel %vm1110_vm7, %v4912_v47, inf  ;;  %v603_v59 = vadd.s32 1208, %v2667_v3  ;;  %v1892_v1 = vsel %vm1110_vm7, %v4912_v47, -inf  ;;  %v5150_v47 = vld [vmem:[%s2660_s5 + $0x4e0] sm:$0xff] }
 0x14b   : > { %v1610_v22 = vmin.f32 %v1359_v10, %v1609_v6  ;;  %v4915_v10 = vadd.s32 %v2673_v7, %v596_v23  ;;  %vm1111_vm8 = vcmp.lt.s32.totalorder %v4898_v33, %v2686_v13 }
 0x14c   : > { %v2129_v6 = vmax.f32 %v1878_v51, %v2128_v0  ;;  %v1368_v20 = vsel %vm1111_vm8, %v4929_v52, inf  ;;  %v604_v0 = vadd.s32 1216, %v2667_v3  ;;  %v1893_v16 = vsel %vm1111_vm8, %v4929_v52, -inf  ;;  %v5167_v52 = vld [vmem:[%s2660_s5 + $0x4e8] sm:$0xff] }
 0x14d   : > { %v1611_v31 = vmin.f32 %v1360_v46, %v1610_v22  ;;  %v4932_v46 = vadd.s32 %v2673_v7, %v597_v29  ;;  %vm1112_vm9 = vcmp.lt.s32.totalorder %v4915_v10, %v2686_v13 }
 0x14e   : > { %v2130_v22 = vmax.f32 %v1879_v60, %v2129_v6  ;;  %v1369_v23 = vsel %vm1112_vm9, %v4946_v57, inf  ;;  %v605_v6 = vadd.s32 1224, %v2667_v3  ;;  %v1894_v33 = vsel %vm1112_vm9, %v4946_v57, -inf  ;;  %v5184_v57 = vld [vmem:[%s2660_s5 + $0x4f0] sm:$0xff] }
 0x14f   : > { %v1612_v43 = vmin.f32 %v1361_v55, %v1611_v31  ;;  %v4949_v55 = vadd.s32 %v2673_v7, %v598_v34  ;;  %vm1113_vm10 = vcmp.lt.s32.totalorder %v4932_v46, %v2686_v13 }
 0x150   : > { %v2131_v31 = vmax.f32 %v1880_v5, %v2130_v22  ;;  %v1370_v29 = vsel %vm1113_vm10, %v4963_v62, inf  ;;  %v606_v22 = vadd.s32 1232, %v2667_v3  ;;  %v1895_v10 = vsel %vm1113_vm10, %v4963_v62, -inf  ;;  %v5201_v62 = vld [vmem:[%s2660_s5 + $0x4f8] sm:$0xff] }
 0x151   : > { %v1613_v19 = vmin.f32 %v1362_v63, %v1612_v43  ;;  %v4966_v63 = vadd.s32 %v2673_v7, %v599_v39  ;;  %vm1114_vm11 = vcmp.lt.s32.totalorder %v4949_v55, %v2686_v13 }
 0x152   : > { %v2132_v43 = vmax.f32 %v1881_v25, %v2131_v31  ;;  %v1371_v34 = vsel %vm1114_vm11, %v4980_v4, inf  ;;  %v607_v31 = vadd.s32 1240, %v2667_v3  ;;  %v1896_v46 = vsel %vm1114_vm11, %v4980_v4, -inf  ;;  %v5218_v4 = vld [vmem:[%s2660_s5 + $0x500] sm:$0xff] }
 0x153   : > { %v1614_v53 = vmin.f32 %v1363_v9, %v1613_v19  ;;  %v4983_v9 = vadd.s32 %v2673_v7, %v600_v44  ;;  %vm1115_vm12 = vcmp.lt.s32.totalorder %v4966_v63, %v2686_v13 }
 0x154   : > { %v2133_v19 = vmax.f32 %v1882_v36, %v2132_v43  ;;  %v1372_v39 = vsel %vm1115_vm12, %v4997_v14, inf  ;;  %v608_v43 = vadd.s32 1248, %v2667_v3  ;;  %v1897_v55 = vsel %vm1115_vm12, %v4997_v14, -inf  ;;  %v5235_v14 = vld [vmem:[%s2660_s5 + $0x508] sm:$0xff] }
 0x155   : > { %v1615_v61 = vmin.f32 %v1364_v30, %v1614_v53  ;;  %v5000_v30 = vadd.s32 %v2673_v7, %v601_v49  ;;  %vm1116_vm13 = vcmp.lt.s32.totalorder %v4983_v9, %v2686_v13 }
 0x156   : > { %v2134_v53 = vmax.f32 %v1883_v45, %v2133_v19  ;;  %v1373_v44 = vsel %vm1116_vm13, %v5014_v28, inf  ;;  %v609_v19 = vadd.s32 1256, %v2667_v3  ;;  %v1898_v63 = vsel %vm1116_vm13, %v5014_v28, -inf  ;;  %v5252_v28 = vld [vmem:[%s2660_s5 + $0x510] sm:$0xff] }
 0x157   : > { %v1616_v8 = vmin.f32 %v1365_v40, %v1615_v61  ;;  %v5017_v40 = vadd.s32 %v2673_v7, %v602_v54  ;;  %vm1117_vm14 = vcmp.lt.s32.totalorder %v5000_v30, %v2686_v13 }
 0x158   : > { %v2135_v61 = vmax.f32 %v1884_v50, %v2134_v53  ;;  %v1374_v49 = vsel %vm1117_vm14, %v5031_v41, inf  ;;  %v610_v53 = vadd.s32 1264, %v2667_v3  ;;  %v1899_v9 = vsel %vm1117_vm14, %v5031_v41, -inf  ;;  %v5269_v41 = vld [vmem:[%s2660_s5 + $0x518] sm:$0xff] }
 0x159   : > { %v1617_v26 = vmin.f32 %v1366_v12, %v1616_v8  ;;  %v5034_v12 = vadd.s32 %v2673_v7, %v603_v59  ;;  %vm1118_vm15 = vcmp.lt.s32.totalorder %v5017_v40, %v2686_v13 }
 0x15a   : > { %v2136_v8 = vmax.f32 %v1885_v58, %v2135_v61  ;;  %v1375_v54 = vsel %vm1118_vm15, %v5048_v18, inf  ;;  %v611_v61 = vadd.s32 1272, %v2667_v3  ;;  %v1900_v30 = vsel %vm1118_vm15, %v5048_v18, -inf  ;;  %v5286_v18 = vld [vmem:[%s2660_s5 + $0x520] sm:$0xff] }
 0x15b   : > { %v1618_v38 = vmin.f32 %v1367_v15, %v1617_v26  ;;  %v5051_v15 = vadd.s32 %v2673_v7, %v604_v0  ;;  %vm1119_vm0 = vcmp.lt.s32.totalorder %v5034_v12, %v2686_v13 }
 0x15c   : > { %v2137_v26 = vmax.f32 %v1886_v2, %v2136_v8  ;;  %v1376_v59 = vsel %vm1119_vm0, %v5065_v21, inf  ;;  %v612_v8 = vadd.s32 1280, %v2667_v3  ;;  %v1901_v40 = vsel %vm1119_vm0, %v5065_v21, -inf  ;;  %v5303_v21 = vld [vmem:[%s2660_s5 + $0x528] sm:$0xff] }
 0x15d   : > { %v1619_v11 = vmin.f32 %v1368_v20, %v1618_v38  ;;  %v5068_v20 = vadd.s32 %v2673_v7, %v605_v6  ;;  %vm1120_vm1 = vcmp.lt.s32.totalorder %v5051_v15, %v2686_v13 }
 0x15e   : > { %v2138_v38 = vmax.f32 %v1887_v24, %v2137_v26  ;;  %v1377_v0 = vsel %vm1120_vm1, %v5082_v27, inf  ;;  %v613_v26 = vadd.s32 1288, %v2667_v3  ;;  %v1902_v12 = vsel %vm1120_vm1, %v5082_v27, -inf  ;;  %v5320_v27 = vld [vmem:[%s2660_s5 + $0x530] sm:$0xff] }
 0x15f   : > { %v1620_v51 = vmin.f32 %v1369_v23, %v1619_v11  ;;  %v5085_v23 = vadd.s32 %v2673_v7, %v606_v22  ;;  %vm1121_vm2 = vcmp.lt.s32.totalorder %v5068_v20, %v2686_v13 }
 0x160   : > { %v2139_v11 = vmax.f32 %v1888_v35, %v2138_v38  ;;  %v1378_v6 = vsel %vm1121_vm2, %v5099_v32, inf  ;;  %v614_v38 = vadd.s32 1296, %v2667_v3  ;;  %v1903_v15 = vsel %vm1121_vm2, %v5099_v32, -inf  ;;  %v5337_v32 = vld [vmem:[%s2660_s5 + $0x538] sm:$0xff] }
 0x161   : > { %v1621_v60 = vmin.f32 %v1370_v29, %v1620_v51  ;;  %v5102_v29 = vadd.s32 %v2673_v7, %v607_v31  ;;  %vm1122_vm3 = vcmp.lt.s32.totalorder %v5085_v23, %v2686_v13 }
 0x162   : > { %v2140_v51 = vmax.f32 %v1889_v17, %v2139_v11  ;;  %v1379_v22 = vsel %vm1122_vm3, %v5116_v37, inf  ;;  %v615_v11 = vadd.s32 1304, %v2667_v3  ;;  %v1904_v20 = vsel %vm1122_vm3, %v5116_v37, -inf  ;;  %v5354_v37 = vld [vmem:[%s2660_s5 + $0x540] sm:$0xff] }
 0x163   : > { %v1622_v5 = vmin.f32 %v1371_v34, %v1621_v60  ;;  %v5119_v34 = vadd.s32 %v2673_v7, %v608_v43  ;;  %vm1123_vm4 = vcmp.lt.s32.totalorder %v5102_v29, %v2686_v13 }
 0x164   : > { %v2141_v60 = vmax.f32 %v1890_v48, %v2140_v51  ;;  %v1380_v31 = vsel %vm1123_vm4, %v5133_v42, inf  ;;  %v616_v51 = vadd.s32 1312, %v2667_v3  ;;  %v1905_v23 = vsel %vm1123_vm4, %v5133_v42, -inf  ;;  %v5371_v42 = vld [vmem:[%s2660_s5 + $0x548] sm:$0xff] }
 0x165   : > { %v1623_v25 = vmin.f32 %v1372_v39, %v1622_v5  ;;  %v5136_v39 = vadd.s32 %v2673_v7, %v609_v19  ;;  %vm1124_vm5 = vcmp.lt.s32.totalorder %v5119_v34, %v2686_v13 }
 0x166   : > { %v2142_v5 = vmax.f32 %v1891_v56, %v2141_v60  ;;  %v1381_v43 = vsel %vm1124_vm5, %v5150_v47, inf  ;;  %v617_v60 = vadd.s32 1320, %v2667_v3  ;;  %v1906_v29 = vsel %vm1124_vm5, %v5150_v47, -inf  ;;  %v5388_v47 = vld [vmem:[%s2660_s5 + $0x550] sm:$0xff] }
 0x167   : > { %v1624_v36 = vmin.f32 %v1373_v44, %v1623_v25  ;;  %v5153_v44 = vadd.s32 %v2673_v7, %v610_v53  ;;  %vm1125_vm6 = vcmp.lt.s32.totalorder %v5136_v39, %v2686_v13 }
 0x168   : > { %v2143_v25 = vmax.f32 %v1892_v1, %v2142_v5  ;;  %v1382_v19 = vsel %vm1125_vm6, %v5167_v52, inf  ;;  %v618_v5 = vadd.s32 1328, %v2667_v3  ;;  %v1907_v34 = vsel %vm1125_vm6, %v5167_v52, -inf  ;;  %v5405_v52 = vld [vmem:[%s2660_s5 + $0x558] sm:$0xff] }
 0x169   : > { %v1625_v45 = vmin.f32 %v1374_v49, %v1624_v36  ;;  %v5170_v49 = vadd.s32 %v2673_v7, %v611_v61  ;;  %vm1126_vm7 = vcmp.lt.s32.totalorder %v5153_v44, %v2686_v13 }
 0x16a   : > { %v2144_v36 = vmax.f32 %v1893_v16, %v2143_v25  ;;  %v1383_v53 = vsel %vm1126_vm7, %v5184_v57, inf  ;;  %v619_v25 = vadd.s32 1336, %v2667_v3  ;;  %v1908_v39 = vsel %vm1126_vm7, %v5184_v57, -inf  ;;  %v5422_v57 = vld [vmem:[%s2660_s5 + $0x560] sm:$0xff] }
 0x16b   : > { %v1626_v50 = vmin.f32 %v1375_v54, %v1625_v45  ;;  %v5187_v54 = vadd.s32 %v2673_v7, %v612_v8  ;;  %vm1127_vm8 = vcmp.lt.s32.totalorder %v5170_v49, %v2686_v13 }
 0x16c   : > { %v2145_v45 = vmax.f32 %v1894_v33, %v2144_v36  ;;  %v1384_v61 = vsel %vm1127_vm8, %v5201_v62, inf  ;;  %v620_v36 = vadd.s32 1344, %v2667_v3  ;;  %v1909_v44 = vsel %vm1127_vm8, %v5201_v62, -inf  ;;  %v5439_v62 = vld [vmem:[%s2660_s5 + $0x568] sm:$0xff] }
 0x16d   : > { %v1627_v58 = vmin.f32 %v1376_v59, %v1626_v50  ;;  %v5204_v59 = vadd.s32 %v2673_v7, %v613_v26  ;;  %vm1128_vm9 = vcmp.lt.s32.totalorder %v5187_v54, %v2686_v13 }
 0x16e   : > { %v2146_v50 = vmax.f32 %v1895_v10, %v2145_v45  ;;  %v1385_v8 = vsel %vm1128_vm9, %v5218_v4, inf  ;;  %v621_v45 = vadd.s32 1352, %v2667_v3  ;;  %v1910_v49 = vsel %vm1128_vm9, %v5218_v4, -inf  ;;  %v5456_v4 = vld [vmem:[%s2660_s5 + $0x570] sm:$0xff] }
 0x16f   : > { %v1628_v2 = vmin.f32 %v1377_v0, %v1627_v58  ;;  %v5221_v0 = vadd.s32 %v2673_v7, %v614_v38  ;;  %vm1129_vm10 = vcmp.lt.s32.totalorder %v5204_v59, %v2686_v13 }
 0x170   : > { %v2147_v58 = vmax.f32 %v1896_v46, %v2146_v50  ;;  %v1386_v26 = vsel %vm1129_vm10, %v5235_v14, inf  ;;  %v622_v50 = vadd.s32 1360, %v2667_v3  ;;  %v1911_v54 = vsel %vm1129_vm10, %v5235_v14, -inf  ;;  %v5473_v14 = vld [vmem:[%s2660_s5 + $0x578] sm:$0xff] }
 0x171   : > { %v1629_v24 = vmin.f32 %v1378_v6, %v1628_v2  ;;  %v5238_v6 = vadd.s32 %v2673_v7, %v615_v11  ;;  %vm1130_vm11 = vcmp.lt.s32.totalorder %v5221_v0, %v2686_v13 }
 0x172   : > { %v2148_v2 = vmax.f32 %v1897_v55, %v2147_v58  ;;  %v1387_v38 = vsel %vm1130_vm11, %v5252_v28, inf  ;;  %v623_v58 = vadd.s32 1368, %v2667_v3  ;;  %v1912_v59 = vsel %vm1130_vm11, %v5252_v28, -inf  ;;  %v5490_v28 = vld [vmem:[%s2660_s5 + $0x580] sm:$0xff] }
 0x173   : > { %v1630_v35 = vmin.f32 %v1379_v22, %v1629_v24  ;;  %v5255_v22 = vadd.s32 %v2673_v7, %v616_v51  ;;  %vm1131_vm12 = vcmp.lt.s32.totalorder %v5238_v6, %v2686_v13 }
 0x174   : > { %v2149_v24 = vmax.f32 %v1898_v63, %v2148_v2  ;;  %v1388_v11 = vsel %vm1131_vm12, %v5269_v41, inf  ;;  %v624_v2 = vadd.s32 1376, %v2667_v3  ;;  %v1913_v0 = vsel %vm1131_vm12, %v5269_v41, -inf  ;;  %v5507_v41 = vld [vmem:[%s2660_s5 + $0x588] sm:$0xff] }
 0x175   : > { %v1631_v17 = vmin.f32 %v1380_v31, %v1630_v35  ;;  %v5272_v31 = vadd.s32 %v2673_v7, %v617_v60  ;;  %vm1132_vm13 = vcmp.lt.s32.totalorder %v5255_v22, %v2686_v13 }
 0x176   : > { %v2150_v35 = vmax.f32 %v1899_v9, %v2149_v24  ;;  %v1389_v51 = vsel %vm1132_vm13, %v5286_v18, inf  ;;  %v625_v24 = vadd.s32 1384, %v2667_v3  ;;  %v1914_v6 = vsel %vm1132_vm13, %v5286_v18, -inf  ;;  %v5524_v18 = vld [vmem:[%s2660_s5 + $0x590] sm:$0xff] }
 0x177   : > { %v1632_v48 = vmin.f32 %v1381_v43, %v1631_v17  ;;  %v5289_v43 = vadd.s32 %v2673_v7, %v618_v5  ;;  %vm1133_vm14 = vcmp.lt.s32.totalorder %v5272_v31, %v2686_v13 }
 0x178   : > { %v2151_v17 = vmax.f32 %v1900_v30, %v2150_v35  ;;  %v1390_v60 = vsel %vm1133_vm14, %v5303_v21, inf  ;;  %v626_v35 = vadd.s32 1392, %v2667_v3  ;;  %v1915_v22 = vsel %vm1133_vm14, %v5303_v21, -inf  ;;  %v5541_v21 = vld [vmem:[%s2660_s5 + $0x598] sm:$0xff] }
 0x179   : > { %v1633_v56 = vmin.f32 %v1382_v19, %v1632_v48  ;;  %v5306_v19 = vadd.s32 %v2673_v7, %v619_v25  ;;  %vm1134_vm15 = vcmp.lt.s32.totalorder %v5289_v43, %v2686_v13 }
 0x17a   : > { %v2152_v48 = vmax.f32 %v1901_v40, %v2151_v17  ;;  %v1391_v5 = vsel %vm1134_vm15, %v5320_v27, inf  ;;  %v627_v17 = vadd.s32 1400, %v2667_v3  ;;  %v1916_v31 = vsel %vm1134_vm15, %v5320_v27, -inf  ;;  %v5558_v27 = vld [vmem:[%s2660_s5 + $0x5a0] sm:$0xff] }
 0x17b   : > { %v1634_v1 = vmin.f32 %v1383_v53, %v1633_v56  ;;  %v5323_v53 = vadd.s32 %v2673_v7, %v620_v36  ;;  %vm1135_vm0 = vcmp.lt.s32.totalorder %v5306_v19, %v2686_v13 }
 0x17c   : > { %v2153_v56 = vmax.f32 %v1902_v12, %v2152_v48  ;;  %v1392_v25 = vsel %vm1135_vm0, %v5337_v32, inf  ;;  %v628_v48 = vadd.s32 1408, %v2667_v3  ;;  %v1917_v43 = vsel %vm1135_vm0, %v5337_v32, -inf  ;;  %v5575_v32 = vld [vmem:[%s2660_s5 + $0x5a8] sm:$0xff] }
 0x17d   : > { %v1635_v16 = vmin.f32 %v1384_v61, %v1634_v1  ;;  %v5340_v61 = vadd.s32 %v2673_v7, %v621_v45  ;;  %vm1136_vm1 = vcmp.lt.s32.totalorder %v5323_v53, %v2686_v13 }
 0x17e   : > { %v2154_v1 = vmax.f32 %v1903_v15, %v2153_v56  ;;  %v1393_v36 = vsel %vm1136_vm1, %v5354_v37, inf  ;;  %v629_v56 = vadd.s32 1416, %v2667_v3  ;;  %v1918_v19 = vsel %vm1136_vm1, %v5354_v37, -inf  ;;  %v5592_v37 = vld [vmem:[%s2660_s5 + $0x5b0] sm:$0xff] }
 0x17f   : > { %v1636_v33 = vmin.f32 %v1385_v8, %v1635_v16  ;;  %v5357_v8 = vadd.s32 %v2673_v7, %v622_v50  ;;  %vm1137_vm2 = vcmp.lt.s32.totalorder %v5340_v61, %v2686_v13 }
 0x180   : > { %v2155_v16 = vmax.f32 %v1904_v20, %v2154_v1  ;;  %v1394_v45 = vsel %vm1137_vm2, %v5371_v42, inf  ;;  %v630_v1 = vadd.s32 1424, %v2667_v3  ;;  %v1919_v53 = vsel %vm1137_vm2, %v5371_v42, -inf  ;;  %v5609_v42 = vld [vmem:[%s2660_s5 + $0x5b8] sm:$0xff] }
 0x181   : > { %v1637_v10 = vmin.f32 %v1386_v26, %v1636_v33  ;;  %v5374_v26 = vadd.s32 %v2673_v7, %v623_v58  ;;  %vm1138_vm3 = vcmp.lt.s32.totalorder %v5357_v8, %v2686_v13 }
 0x182   : > { %v2156_v33 = vmax.f32 %v1905_v23, %v2155_v16  ;;  %v1395_v50 = vsel %vm1138_vm3, %v5388_v47, inf  ;;  %v631_v16 = vadd.s32 1432, %v2667_v3  ;;  %v1920_v61 = vsel %vm1138_vm3, %v5388_v47, -inf  ;;  %v5626_v47 = vld [vmem:[%s2660_s5 + $0x5c0] sm:$0xff] }
 0x183   : > { %v1638_v46 = vmin.f32 %v1387_v38, %v1637_v10  ;;  %v5391_v38 = vadd.s32 %v2673_v7, %v624_v2  ;;  %vm1139_vm4 = vcmp.lt.s32.totalorder %v5374_v26, %v2686_v13 }
 0x184   : > { %v2157_v10 = vmax.f32 %v1906_v29, %v2156_v33  ;;  %v1396_v58 = vsel %vm1139_vm4, %v5405_v52, inf  ;;  %v632_v33 = vadd.s32 1440, %v2667_v3  ;;  %v1921_v8 = vsel %vm1139_vm4, %v5405_v52, -inf  ;;  %v5643_v52 = vld [vmem:[%s2660_s5 + $0x5c8] sm:$0xff] }
 0x185   : > { %v1639_v55 = vmin.f32 %v1388_v11, %v1638_v46  ;;  %v5408_v11 = vadd.s32 %v2673_v7, %v625_v24  ;;  %vm1140_vm5 = vcmp.lt.s32.totalorder %v5391_v38, %v2686_v13 }
 0x186   : > { %v2158_v46 = vmax.f32 %v1907_v34, %v2157_v10  ;;  %v1397_v2 = vsel %vm1140_vm5, %v5422_v57, inf  ;;  %v633_v10 = vadd.s32 1448, %v2667_v3  ;;  %v1922_v26 = vsel %vm1140_vm5, %v5422_v57, -inf  ;;  %v5660_v57 = vld [vmem:[%s2660_s5 + $0x5d0] sm:$0xff] }
 0x187   : > { %v1640_v63 = vmin.f32 %v1389_v51, %v1639_v55  ;;  %v5425_v51 = vadd.s32 %v2673_v7, %v626_v35  ;;  %vm1141_vm6 = vcmp.lt.s32.totalorder %v5408_v11, %v2686_v13 }
 0x188   : > { %v2159_v55 = vmax.f32 %v1908_v39, %v2158_v46  ;;  %v1398_v24 = vsel %vm1141_vm6, %v5439_v62, inf  ;;  %v634_v46 = vadd.s32 1456, %v2667_v3  ;;  %v1923_v38 = vsel %vm1141_vm6, %v5439_v62, -inf  ;;  %v5677_v62 = vld [vmem:[%s2660_s5 + $0x5d8] sm:$0xff] }
 0x189   : > { %v1641_v9 = vmin.f32 %v1390_v60, %v1640_v63  ;;  %v5442_v60 = vadd.s32 %v2673_v7, %v627_v17  ;;  %vm1142_vm7 = vcmp.lt.s32.totalorder %v5425_v51, %v2686_v13 }
 0x18a   : > { %v2160_v63 = vmax.f32 %v1909_v44, %v2159_v55  ;;  %v1399_v35 = vsel %vm1142_vm7, %v5456_v4, inf  ;;  %v635_v55 = vadd.s32 1464, %v2667_v3  ;;  %v1924_v11 = vsel %vm1142_vm7, %v5456_v4, -inf  ;;  %v5694_v4 = vld [vmem:[%s2660_s5 + $0x5e0] sm:$0xff] }
 0x18b   : > { %v1642_v30 = vmin.f32 %v1391_v5, %v1641_v9  ;;  %v5459_v5 = vadd.s32 %v2673_v7, %v628_v48  ;;  %vm1143_vm8 = vcmp.lt.s32.totalorder %v5442_v60, %v2686_v13 }
 0x18c   : > { %v2161_v9 = vmax.f32 %v1910_v49, %v2160_v63  ;;  %v1400_v17 = vsel %vm1143_vm8, %v5473_v14, inf  ;;  %v636_v63 = vadd.s32 1472, %v2667_v3  ;;  %v1925_v51 = vsel %vm1143_vm8, %v5473_v14, -inf  ;;  %v5711_v14 = vld [vmem:[%s2660_s5 + $0x5e8] sm:$0xff] }
 0x18d   : > { %v1643_v40 = vmin.f32 %v1392_v25, %v1642_v30  ;;  %v5476_v25 = vadd.s32 %v2673_v7, %v629_v56  ;;  %vm1144_vm9 = vcmp.lt.s32.totalorder %v5459_v5, %v2686_v13 }
 0x18e   : > { %v2162_v30 = vmax.f32 %v1911_v54, %v2161_v9  ;;  %v1401_v48 = vsel %vm1144_vm9, %v5490_v28, inf  ;;  %v637_v9 = vadd.s32 1480, %v2667_v3  ;;  %v1926_v60 = vsel %vm1144_vm9, %v5490_v28, -inf  ;;  %v5728_v28 = vld [vmem:[%s2660_s5 + $0x5f0] sm:$0xff] }
 0x18f   : > { %v1644_v12 = vmin.f32 %v1393_v36, %v1643_v40  ;;  %v5493_v36 = vadd.s32 %v2673_v7, %v630_v1  ;;  %vm1145_vm10 = vcmp.lt.s32.totalorder %v5476_v25, %v2686_v13 }
 0x190   : > { %v2163_v40 = vmax.f32 %v1912_v59, %v2162_v30  ;;  %v1402_v56 = vsel %vm1145_vm10, %v5507_v41, inf  ;;  %v638_v30 = vadd.s32 1488, %v2667_v3  ;;  %v1927_v5 = vsel %vm1145_vm10, %v5507_v41, -inf  ;;  %v5745_v41 = vld [vmem:[%s2660_s5 + $0x5f8] sm:$0xff] }
 0x191   : > { %v1645_v15 = vmin.f32 %v1394_v45, %v1644_v12  ;;  %v5510_v45 = vadd.s32 %v2673_v7, %v631_v16  ;;  %vm1146_vm11 = vcmp.lt.s32.totalorder %v5493_v36, %v2686_v13 }
 0x192   : > { %v2164_v12 = vmax.f32 %v1913_v0, %v2163_v40  ;;  %v1403_v1 = vsel %vm1146_vm11, %v5524_v18, inf  ;;  %v639_v40 = vadd.s32 1496, %v2667_v3  ;;  %v1928_v25 = vsel %vm1146_vm11, %v5524_v18, -inf  ;;  %v5762_v18 = vld [vmem:[%s2660_s5 + $0x600] sm:$0xff] }
 0x193   : > { %v1646_v20 = vmin.f32 %v1395_v50, %v1645_v15  ;;  %v5527_v50 = vadd.s32 %v2673_v7, %v632_v33  ;;  %vm1147_vm12 = vcmp.lt.s32.totalorder %v5510_v45, %v2686_v13 }
 0x194   : > { %v2165_v15 = vmax.f32 %v1914_v6, %v2164_v12  ;;  %v1404_v16 = vsel %vm1147_vm12, %v5541_v21, inf  ;;  %v640_v12 = vadd.s32 1504, %v2667_v3  ;;  %v1929_v36 = vsel %vm1147_vm12, %v5541_v21, -inf  ;;  %v5779_v21 = vld [vmem:[%s2660_s5 + $0x608] sm:$0xff] }
 0x195   : > { %v1647_v23 = vmin.f32 %v1396_v58, %v1646_v20  ;;  %v5544_v58 = vadd.s32 %v2673_v7, %v633_v10  ;;  %vm1148_vm13 = vcmp.lt.s32.totalorder %v5527_v50, %v2686_v13 }
 0x196   : > { %v2166_v20 = vmax.f32 %v1915_v22, %v2165_v15  ;;  %v1405_v33 = vsel %vm1148_vm13, %v5558_v27, inf  ;;  %v641_v15 = vadd.s32 1512, %v2667_v3  ;;  %v1930_v45 = vsel %vm1148_vm13, %v5558_v27, -inf  ;;  %v5796_v27 = vld [vmem:[%s2660_s5 + $0x610] sm:$0xff] }
 0x197   : > { %v1648_v29 = vmin.f32 %v1397_v2, %v1647_v23  ;;  %v5561_v2 = vadd.s32 %v2673_v7, %v634_v46  ;;  %vm1149_vm14 = vcmp.lt.s32.totalorder %v5544_v58, %v2686_v13 }
 0x198   : > { %v2167_v23 = vmax.f32 %v1916_v31, %v2166_v20  ;;  %v1406_v10 = vsel %vm1149_vm14, %v5575_v32, inf  ;;  %v642_v20 = vadd.s32 1520, %v2667_v3  ;;  %v1931_v50 = vsel %vm1149_vm14, %v5575_v32, -inf  ;;  %v5813_v32 = vld [vmem:[%s2660_s5 + $0x618] sm:$0xff] }
 0x199   : > { %v1649_v34 = vmin.f32 %v1398_v24, %v1648_v29  ;;  %v5578_v24 = vadd.s32 %v2673_v7, %v635_v55  ;;  %vm1150_vm15 = vcmp.lt.s32.totalorder %v5561_v2, %v2686_v13 }
 0x19a   : > { %v2168_v29 = vmax.f32 %v1917_v43, %v2167_v23  ;;  %v1407_v46 = vsel %vm1150_vm15, %v5592_v37, inf  ;;  %v643_v23 = vadd.s32 1528, %v2667_v3  ;;  %v1932_v58 = vsel %vm1150_vm15, %v5592_v37, -inf  ;;  %v5830_v37 = vld [vmem:[%s2660_s5 + $0x620] sm:$0xff] }
 0x19b   : > { %v1650_v39 = vmin.f32 %v1399_v35, %v1649_v34  ;;  %v5595_v35 = vadd.s32 %v2673_v7, %v636_v63  ;;  %vm1151_vm0 = vcmp.lt.s32.totalorder %v5578_v24, %v2686_v13 }
 0x19c   : > { %v2169_v34 = vmax.f32 %v1918_v19, %v2168_v29  ;;  %v1408_v55 = vsel %vm1151_vm0, %v5609_v42, inf  ;;  %v644_v29 = vadd.s32 1536, %v2667_v3  ;;  %v1933_v2 = vsel %vm1151_vm0, %v5609_v42, -inf  ;;  %v5847_v42 = vld [vmem:[%s2660_s5 + $0x628] sm:$0xff] }
 0x19d   : > { %v1651_v44 = vmin.f32 %v1400_v17, %v1650_v39  ;;  %v5612_v17 = vadd.s32 %v2673_v7, %v637_v9  ;;  %vm1152_vm1 = vcmp.lt.s32.totalorder %v5595_v35, %v2686_v13 }
 0x19e   : > { %v2170_v39 = vmax.f32 %v1919_v53, %v2169_v34  ;;  %v1409_v63 = vsel %vm1152_vm1, %v5626_v47, inf  ;;  %v645_v34 = vadd.s32 1544, %v2667_v3  ;;  %v1934_v24 = vsel %vm1152_vm1, %v5626_v47, -inf  ;;  %v5864_v47 = vld [vmem:[%s2660_s5 + $0x630] sm:$0xff] }
 0x19f   : > { %v1652_v49 = vmin.f32 %v1401_v48, %v1651_v44  ;;  %v5629_v48 = vadd.s32 %v2673_v7, %v638_v30  ;;  %vm1153_vm2 = vcmp.lt.s32.totalorder %v5612_v17, %v2686_v13 }
 0x1a0   : > { %v2171_v44 = vmax.f32 %v1920_v61, %v2170_v39  ;;  %v1410_v9 = vsel %vm1153_vm2, %v5643_v52, inf  ;;  %v646_v39 = vadd.s32 1552, %v2667_v3  ;;  %v1935_v35 = vsel %vm1153_vm2, %v5643_v52, -inf  ;;  %v5881_v52 = vld [vmem:[%s2660_s5 + $0x638] sm:$0xff] }
 0x1a1   : > { %v1653_v54 = vmin.f32 %v1402_v56, %v1652_v49  ;;  %v5646_v56 = vadd.s32 %v2673_v7, %v639_v40  ;;  %vm1154_vm3 = vcmp.lt.s32.totalorder %v5629_v48, %v2686_v13 }
 0x1a2   : > { %v2172_v49 = vmax.f32 %v1921_v8, %v2171_v44  ;;  %v1411_v30 = vsel %vm1154_vm3, %v5660_v57, inf  ;;  %v647_v44 = vadd.s32 1560, %v2667_v3  ;;  %v1936_v17 = vsel %vm1154_vm3, %v5660_v57, -inf  ;;  %v5898_v57 = vld [vmem:[%s2660_s5 + $0x640] sm:$0xff] }
 0x1a3   : > { %v1654_v59 = vmin.f32 %v1403_v1, %v1653_v54  ;;  %v5663_v1 = vadd.s32 %v2673_v7, %v640_v12  ;;  %vm1155_vm4 = vcmp.lt.s32.totalorder %v5646_v56, %v2686_v13 }
 0x1a4   : > { %v2173_v54 = vmax.f32 %v1922_v26, %v2172_v49  ;;  %v1412_v40 = vsel %vm1155_vm4, %v5677_v62, inf  ;;  %v648_v49 = vadd.s32 1568, %v2667_v3  ;;  %v1937_v48 = vsel %vm1155_vm4, %v5677_v62, -inf  ;;  %v5915_v62 = vld [vmem:[%s2660_s5 + $0x648] sm:$0xff] }
 0x1a5   : > { %v1655_v0 = vmin.f32 %v1404_v16, %v1654_v59  ;;  %v5680_v16 = vadd.s32 %v2673_v7, %v641_v15  ;;  %vm1156_vm5 = vcmp.lt.s32.totalorder %v5663_v1, %v2686_v13 }
 0x1a6   : > { %v2174_v59 = vmax.f32 %v1923_v38, %v2173_v54  ;;  %v1413_v12 = vsel %vm1156_vm5, %v5694_v4, inf  ;;  %v649_v54 = vadd.s32 1576, %v2667_v3  ;;  %v1938_v56 = vsel %vm1156_vm5, %v5694_v4, -inf  ;;  %v5932_v4 = vld [vmem:[%s2660_s5 + $0x650] sm:$0xff] }
 0x1a7   : > { %v1656_v6 = vmin.f32 %v1405_v33, %v1655_v0  ;;  %v5697_v33 = vadd.s32 %v2673_v7, %v642_v20  ;;  %vm1157_vm6 = vcmp.lt.s32.totalorder %v5680_v16, %v2686_v13 }
 0x1a8   : > { %v2175_v0 = vmax.f32 %v1924_v11, %v2174_v59  ;;  %v1414_v15 = vsel %vm1157_vm6, %v5711_v14, inf  ;;  %v650_v59 = vadd.s32 1584, %v2667_v3  ;;  %v1939_v1 = vsel %vm1157_vm6, %v5711_v14, -inf  ;;  %v5949_v14 = vld [vmem:[%s2660_s5 + $0x658] sm:$0xff] }
 0x1a9   : > { %v1657_v22 = vmin.f32 %v1406_v10, %v1656_v6  ;;  %v5714_v10 = vadd.s32 %v2673_v7, %v643_v23  ;;  %vm1158_vm7 = vcmp.lt.s32.totalorder %v5697_v33, %v2686_v13 }
 0x1aa   : > { %v2176_v6 = vmax.f32 %v1925_v51, %v2175_v0  ;;  %v1415_v20 = vsel %vm1158_vm7, %v5728_v28, inf  ;;  %v651_v0 = vadd.s32 1592, %v2667_v3  ;;  %v1940_v16 = vsel %vm1158_vm7, %v5728_v28, -inf  ;;  %v5966_v28 = vld [vmem:[%s2660_s5 + $0x660] sm:$0xff] }
 0x1ab   : > { %v1658_v31 = vmin.f32 %v1407_v46, %v1657_v22  ;;  %v5731_v46 = vadd.s32 %v2673_v7, %v644_v29  ;;  %vm1159_vm8 = vcmp.lt.s32.totalorder %v5714_v10, %v2686_v13 }
 0x1ac   : > { %v2177_v22 = vmax.f32 %v1926_v60, %v2176_v6  ;;  %v1416_v23 = vsel %vm1159_vm8, %v5745_v41, inf  ;;  %v652_v6 = vadd.s32 1600, %v2667_v3  ;;  %v1941_v33 = vsel %vm1159_vm8, %v5745_v41, -inf  ;;  %v5983_v41 = vld [vmem:[%s2660_s5 + $0x668] sm:$0xff] }
 0x1ad   : > { %v1659_v43 = vmin.f32 %v1408_v55, %v1658_v31  ;;  %v5748_v55 = vadd.s32 %v2673_v7, %v645_v34  ;;  %vm1160_vm9 = vcmp.lt.s32.totalorder %v5731_v46, %v2686_v13 }
 0x1ae   : > { %v2178_v31 = vmax.f32 %v1927_v5, %v2177_v22  ;;  %v1417_v29 = vsel %vm1160_vm9, %v5762_v18, inf  ;;  %v653_v22 = vadd.s32 1608, %v2667_v3  ;;  %v1942_v10 = vsel %vm1160_vm9, %v5762_v18, -inf  ;;  %v6000_v18 = vld [vmem:[%s2660_s5 + $0x670] sm:$0xff] }
 0x1af   : > { %v1660_v19 = vmin.f32 %v1409_v63, %v1659_v43  ;;  %v5765_v63 = vadd.s32 %v2673_v7, %v646_v39  ;;  %vm1161_vm10 = vcmp.lt.s32.totalorder %v5748_v55, %v2686_v13 }
 0x1b0   : > { %v2179_v43 = vmax.f32 %v1928_v25, %v2178_v31  ;;  %v1418_v34 = vsel %vm1161_vm10, %v5779_v21, inf  ;;  %v654_v31 = vadd.s32 1616, %v2667_v3  ;;  %v1943_v46 = vsel %vm1161_vm10, %v5779_v21, -inf  ;;  %v6017_v21 = vld [vmem:[%s2660_s5 + $0x678] sm:$0xff] }
 0x1b1   : > { %v1661_v53 = vmin.f32 %v1410_v9, %v1660_v19  ;;  %v5782_v9 = vadd.s32 %v2673_v7, %v647_v44  ;;  %vm1162_vm11 = vcmp.lt.s32.totalorder %v5765_v63, %v2686_v13 }
 0x1b2   : > { %v2180_v19 = vmax.f32 %v1929_v36, %v2179_v43  ;;  %v1419_v39 = vsel %vm1162_vm11, %v5796_v27, inf  ;;  %v655_v43 = vadd.s32 1624, %v2667_v3  ;;  %v1944_v55 = vsel %vm1162_vm11, %v5796_v27, -inf  ;;  %v6034_v27 = vld [vmem:[%s2660_s5 + $0x680] sm:$0xff] }
 0x1b3   : > { %v1662_v61 = vmin.f32 %v1411_v30, %v1661_v53  ;;  %v5799_v30 = vadd.s32 %v2673_v7, %v648_v49  ;;  %vm1163_vm12 = vcmp.lt.s32.totalorder %v5782_v9, %v2686_v13 }
 0x1b4   : > { %v2181_v53 = vmax.f32 %v1930_v45, %v2180_v19  ;;  %v1420_v44 = vsel %vm1163_vm12, %v5813_v32, inf  ;;  %v656_v19 = vadd.s32 1632, %v2667_v3  ;;  %v1945_v63 = vsel %vm1163_vm12, %v5813_v32, -inf  ;;  %v6051_v32 = vld [vmem:[%s2660_s5 + $0x688] sm:$0xff] }
 0x1b5   : > { %v1663_v8 = vmin.f32 %v1412_v40, %v1662_v61  ;;  %v5816_v40 = vadd.s32 %v2673_v7, %v649_v54  ;;  %vm1164_vm13 = vcmp.lt.s32.totalorder %v5799_v30, %v2686_v13 }
 0x1b6   : > { %v2182_v61 = vmax.f32 %v1931_v50, %v2181_v53  ;;  %v1421_v49 = vsel %vm1164_vm13, %v5830_v37, inf  ;;  %v657_v53 = vadd.s32 1640, %v2667_v3  ;;  %v1946_v9 = vsel %vm1164_vm13, %v5830_v37, -inf  ;;  %v6068_v37 = vld [vmem:[%s2660_s5 + $0x690] sm:$0xff] }
 0x1b7   : > { %v1664_v26 = vmin.f32 %v1413_v12, %v1663_v8  ;;  %v5833_v12 = vadd.s32 %v2673_v7, %v650_v59  ;;  %vm1165_vm14 = vcmp.lt.s32.totalorder %v5816_v40, %v2686_v13 }
 0x1b8   : > { %v2183_v8 = vmax.f32 %v1932_v58, %v2182_v61  ;;  %v1422_v54 = vsel %vm1165_vm14, %v5847_v42, inf  ;;  %v658_v61 = vadd.s32 1648, %v2667_v3  ;;  %v1947_v30 = vsel %vm1165_vm14, %v5847_v42, -inf  ;;  %v6085_v42 = vld [vmem:[%s2660_s5 + $0x698] sm:$0xff] }
 0x1b9   : > { %v1665_v38 = vmin.f32 %v1414_v15, %v1664_v26  ;;  %v5850_v15 = vadd.s32 %v2673_v7, %v651_v0  ;;  %vm1166_vm15 = vcmp.lt.s32.totalorder %v5833_v12, %v2686_v13 }
 0x1ba   : > { %v2184_v26 = vmax.f32 %v1933_v2, %v2183_v8  ;;  %v1423_v59 = vsel %vm1166_vm15, %v5864_v47, inf  ;;  %v659_v8 = vadd.s32 1656, %v2667_v3  ;;  %v1948_v40 = vsel %vm1166_vm15, %v5864_v47, -inf  ;;  %v6102_v47 = vld [vmem:[%s2660_s5 + $0x6a0] sm:$0xff] }
 0x1bb   : > { %v1666_v11 = vmin.f32 %v1415_v20, %v1665_v38  ;;  %v5867_v20 = vadd.s32 %v2673_v7, %v652_v6  ;;  %vm1167_vm0 = vcmp.lt.s32.totalorder %v5850_v15, %v2686_v13 }
 0x1bc   : > { %v2185_v38 = vmax.f32 %v1934_v24, %v2184_v26  ;;  %v1424_v0 = vsel %vm1167_vm0, %v5881_v52, inf  ;;  %v660_v26 = vadd.s32 1664, %v2667_v3  ;;  %v1949_v12 = vsel %vm1167_vm0, %v5881_v52, -inf  ;;  %v6119_v52 = vld [vmem:[%s2660_s5 + $0x6a8] sm:$0xff] }
 0x1bd   : > { %v1667_v51 = vmin.f32 %v1416_v23, %v1666_v11  ;;  %v5884_v23 = vadd.s32 %v2673_v7, %v653_v22  ;;  %vm1168_vm1 = vcmp.lt.s32.totalorder %v5867_v20, %v2686_v13 }
 0x1be   : > { %v2186_v11 = vmax.f32 %v1935_v35, %v2185_v38  ;;  %v1425_v6 = vsel %vm1168_vm1, %v5898_v57, inf  ;;  %v661_v38 = vadd.s32 1672, %v2667_v3  ;;  %v1950_v15 = vsel %vm1168_vm1, %v5898_v57, -inf  ;;  %v6136_v57 = vld [vmem:[%s2660_s5 + $0x6b0] sm:$0xff] }
 0x1bf   : > { %v1668_v60 = vmin.f32 %v1417_v29, %v1667_v51  ;;  %v5901_v29 = vadd.s32 %v2673_v7, %v654_v31  ;;  %vm1169_vm2 = vcmp.lt.s32.totalorder %v5884_v23, %v2686_v13 }
 0x1c0   : > { %v2187_v51 = vmax.f32 %v1936_v17, %v2186_v11  ;;  %v1426_v22 = vsel %vm1169_vm2, %v5915_v62, inf  ;;  %v662_v11 = vadd.s32 1680, %v2667_v3  ;;  %v1951_v20 = vsel %vm1169_vm2, %v5915_v62, -inf  ;;  %v6153_v62 = vld [vmem:[%s2660_s5 + $0x6b8] sm:$0xff] }
 0x1c1   : > { %v1669_v5 = vmin.f32 %v1418_v34, %v1668_v60  ;;  %v5918_v34 = vadd.s32 %v2673_v7, %v655_v43  ;;  %vm1170_vm3 = vcmp.lt.s32.totalorder %v5901_v29, %v2686_v13 }
 0x1c2   : > { %v2188_v60 = vmax.f32 %v1937_v48, %v2187_v51  ;;  %v1427_v31 = vsel %vm1170_vm3, %v5932_v4, inf  ;;  %v663_v51 = vadd.s32 1688, %v2667_v3  ;;  %v1952_v23 = vsel %vm1170_vm3, %v5932_v4, -inf  ;;  %v6170_v4 = vld [vmem:[%s2660_s5 + $0x6c0] sm:$0xff] }
 0x1c3   : > { %v1670_v25 = vmin.f32 %v1419_v39, %v1669_v5  ;;  %v5935_v39 = vadd.s32 %v2673_v7, %v656_v19  ;;  %vm1171_vm4 = vcmp.lt.s32.totalorder %v5918_v34, %v2686_v13 }
 0x1c4   : > { %v2189_v5 = vmax.f32 %v1938_v56, %v2188_v60  ;;  %v1428_v43 = vsel %vm1171_vm4, %v5949_v14, inf  ;;  %v664_v60 = vadd.s32 1696, %v2667_v3  ;;  %v1953_v29 = vsel %vm1171_vm4, %v5949_v14, -inf  ;;  %v6187_v14 = vld [vmem:[%s2660_s5 + $0x6c8] sm:$0xff] }
 0x1c5   : > { %v1671_v36 = vmin.f32 %v1420_v44, %v1670_v25  ;;  %v5952_v44 = vadd.s32 %v2673_v7, %v657_v53  ;;  %vm1172_vm5 = vcmp.lt.s32.totalorder %v5935_v39, %v2686_v13 }
 0x1c6   : > { %v2190_v25 = vmax.f32 %v1939_v1, %v2189_v5  ;;  %v1429_v19 = vsel %vm1172_vm5, %v5966_v28, inf  ;;  %v665_v5 = vadd.s32 1704, %v2667_v3  ;;  %v1954_v34 = vsel %vm1172_vm5, %v5966_v28, -inf  ;;  %v6204_v28 = vld [vmem:[%s2660_s5 + $0x6d0] sm:$0xff] }
 0x1c7   : > { %v1672_v45 = vmin.f32 %v1421_v49, %v1671_v36  ;;  %v5969_v49 = vadd.s32 %v2673_v7, %v658_v61  ;;  %vm1173_vm6 = vcmp.lt.s32.totalorder %v5952_v44, %v2686_v13 }
 0x1c8   : > { %v2191_v36 = vmax.f32 %v1940_v16, %v2190_v25  ;;  %v1430_v53 = vsel %vm1173_vm6, %v5983_v41, inf  ;;  %v666_v25 = vadd.s32 1712, %v2667_v3  ;;  %v1955_v39 = vsel %vm1173_vm6, %v5983_v41, -inf  ;;  %v6221_v41 = vld [vmem:[%s2660_s5 + $0x6d8] sm:$0xff] }
 0x1c9   : > { %v1673_v50 = vmin.f32 %v1422_v54, %v1672_v45  ;;  %v5986_v54 = vadd.s32 %v2673_v7, %v659_v8  ;;  %vm1174_vm7 = vcmp.lt.s32.totalorder %v5969_v49, %v2686_v13 }
 0x1ca   : > { %v2192_v45 = vmax.f32 %v1941_v33, %v2191_v36  ;;  %v1431_v61 = vsel %vm1174_vm7, %v6000_v18, inf  ;;  %v667_v36 = vadd.s32 1720, %v2667_v3  ;;  %v1956_v44 = vsel %vm1174_vm7, %v6000_v18, -inf  ;;  %v6238_v18 = vld [vmem:[%s2660_s5 + $0x6e0] sm:$0xff] }
 0x1cb   : > { %v1674_v58 = vmin.f32 %v1423_v59, %v1673_v50  ;;  %v6003_v59 = vadd.s32 %v2673_v7, %v660_v26  ;;  %vm1175_vm8 = vcmp.lt.s32.totalorder %v5986_v54, %v2686_v13 }
 0x1cc   : > { %v2193_v50 = vmax.f32 %v1942_v10, %v2192_v45  ;;  %v1432_v8 = vsel %vm1175_vm8, %v6017_v21, inf  ;;  %v668_v45 = vadd.s32 1728, %v2667_v3  ;;  %v1957_v49 = vsel %vm1175_vm8, %v6017_v21, -inf  ;;  %v6255_v21 = vld [vmem:[%s2660_s5 + $0x6e8] sm:$0xff] }
 0x1cd   : > { %v1675_v2 = vmin.f32 %v1424_v0, %v1674_v58  ;;  %v6020_v0 = vadd.s32 %v2673_v7, %v661_v38  ;;  %vm1176_vm9 = vcmp.lt.s32.totalorder %v6003_v59, %v2686_v13 }
 0x1ce   : > { %v2194_v58 = vmax.f32 %v1943_v46, %v2193_v50  ;;  %v1433_v26 = vsel %vm1176_vm9, %v6034_v27, inf  ;;  %v669_v50 = vadd.s32 1736, %v2667_v3  ;;  %v1958_v54 = vsel %vm1176_vm9, %v6034_v27, -inf  ;;  %v6272_v27 = vld [vmem:[%s2660_s5 + $0x6f0] sm:$0xff] }
 0x1cf   : > { %v1676_v24 = vmin.f32 %v1425_v6, %v1675_v2  ;;  %v6037_v6 = vadd.s32 %v2673_v7, %v662_v11  ;;  %vm1177_vm10 = vcmp.lt.s32.totalorder %v6020_v0, %v2686_v13 }
 0x1d0   : > { %v2195_v2 = vmax.f32 %v1944_v55, %v2194_v58  ;;  %v1434_v38 = vsel %vm1177_vm10, %v6051_v32, inf  ;;  %v670_v58 = vadd.s32 1744, %v2667_v3  ;;  %v1959_v59 = vsel %vm1177_vm10, %v6051_v32, -inf  ;;  %v6289_v32 = vld [vmem:[%s2660_s5 + $0x6f8] sm:$0xff] }
 0x1d1   : > { %v1677_v35 = vmin.f32 %v1426_v22, %v1676_v24  ;;  %v6054_v22 = vadd.s32 %v2673_v7, %v663_v51  ;;  %vm1178_vm11 = vcmp.lt.s32.totalorder %v6037_v6, %v2686_v13 }
 0x1d2   : > { %v2196_v24 = vmax.f32 %v1945_v63, %v2195_v2  ;;  %v1435_v11 = vsel %vm1178_vm11, %v6068_v37, inf  ;;  %v671_v2 = vadd.s32 1752, %v2667_v3  ;;  %v1960_v0 = vsel %vm1178_vm11, %v6068_v37, -inf  ;;  %v6306_v37 = vld [vmem:[%s2660_s5 + $0x700] sm:$0xff] }
 0x1d3   : > { %v1678_v17 = vmin.f32 %v1427_v31, %v1677_v35  ;;  %v6071_v31 = vadd.s32 %v2673_v7, %v664_v60  ;;  %vm1179_vm12 = vcmp.lt.s32.totalorder %v6054_v22, %v2686_v13 }
 0x1d4   : > { %v2197_v35 = vmax.f32 %v1946_v9, %v2196_v24  ;;  %v1436_v51 = vsel %vm1179_vm12, %v6085_v42, inf  ;;  %v672_v24 = vadd.s32 1760, %v2667_v3  ;;  %v1961_v6 = vsel %vm1179_vm12, %v6085_v42, -inf  ;;  %v6323_v42 = vld [vmem:[%s2660_s5 + $0x708] sm:$0xff] }
 0x1d5   : > { %v1679_v48 = vmin.f32 %v1428_v43, %v1678_v17  ;;  %v6088_v43 = vadd.s32 %v2673_v7, %v665_v5  ;;  %vm1180_vm13 = vcmp.lt.s32.totalorder %v6071_v31, %v2686_v13 }
 0x1d6   : > { %v2198_v17 = vmax.f32 %v1947_v30, %v2197_v35  ;;  %v1437_v60 = vsel %vm1180_vm13, %v6102_v47, inf  ;;  %v673_v35 = vadd.s32 1768, %v2667_v3  ;;  %v1962_v22 = vsel %vm1180_vm13, %v6102_v47, -inf  ;;  %v6340_v47 = vld [vmem:[%s2660_s5 + $0x710] sm:$0xff] }
 0x1d7   : > { %v1680_v56 = vmin.f32 %v1429_v19, %v1679_v48  ;;  %v6105_v19 = vadd.s32 %v2673_v7, %v666_v25  ;;  %vm1181_vm14 = vcmp.lt.s32.totalorder %v6088_v43, %v2686_v13 }
 0x1d8   : > { %v2199_v48 = vmax.f32 %v1948_v40, %v2198_v17  ;;  %v1438_v5 = vsel %vm1181_vm14, %v6119_v52, inf  ;;  %v674_v17 = vadd.s32 1776, %v2667_v3  ;;  %v1963_v31 = vsel %vm1181_vm14, %v6119_v52, -inf  ;;  %v6357_v52 = vld [vmem:[%s2660_s5 + $0x718] sm:$0xff] }
 0x1d9   : > { %v1681_v1 = vmin.f32 %v1430_v53, %v1680_v56  ;;  %v6122_v53 = vadd.s32 %v2673_v7, %v667_v36  ;;  %vm1182_vm15 = vcmp.lt.s32.totalorder %v6105_v19, %v2686_v13 }
 0x1da   : > { %v2200_v56 = vmax.f32 %v1949_v12, %v2199_v48  ;;  %v1439_v25 = vsel %vm1182_vm15, %v6136_v57, inf  ;;  %v675_v48 = vadd.s32 1784, %v2667_v3  ;;  %v1964_v43 = vsel %vm1182_vm15, %v6136_v57, -inf  ;;  %v6374_v57 = vld [vmem:[%s2660_s5 + $0x720] sm:$0xff] }
 0x1db   : > { %v1682_v16 = vmin.f32 %v1431_v61, %v1681_v1  ;;  %v6139_v61 = vadd.s32 %v2673_v7, %v668_v45  ;;  %vm1183_vm0 = vcmp.lt.s32.totalorder %v6122_v53, %v2686_v13 }
 0x1dc   : > { %v2201_v1 = vmax.f32 %v1950_v15, %v2200_v56  ;;  %v1440_v36 = vsel %vm1183_vm0, %v6153_v62, inf  ;;  %v676_v56 = vadd.s32 1792, %v2667_v3  ;;  %v1965_v19 = vsel %vm1183_vm0, %v6153_v62, -inf  ;;  %v6391_v62 = vld [vmem:[%s2660_s5 + $0x728] sm:$0xff] }
 0x1dd   : > { %v1683_v33 = vmin.f32 %v1432_v8, %v1682_v16  ;;  %v6156_v8 = vadd.s32 %v2673_v7, %v669_v50  ;;  %vm1184_vm1 = vcmp.lt.s32.totalorder %v6139_v61, %v2686_v13 }
 0x1de   : > { %v2202_v16 = vmax.f32 %v1951_v20, %v2201_v1  ;;  %v1441_v45 = vsel %vm1184_vm1, %v6170_v4, inf  ;;  %v677_v1 = vadd.s32 1800, %v2667_v3  ;;  %v1966_v53 = vsel %vm1184_vm1, %v6170_v4, -inf  ;;  %v6408_v4 = vld [vmem:[%s2660_s5 + $0x730] sm:$0xff] }
 0x1df   : > { %v1684_v10 = vmin.f32 %v1433_v26, %v1683_v33  ;;  %v6173_v26 = vadd.s32 %v2673_v7, %v670_v58  ;;  %vm1185_vm2 = vcmp.lt.s32.totalorder %v6156_v8, %v2686_v13 }
 0x1e0   : > { %v2203_v33 = vmax.f32 %v1952_v23, %v2202_v16  ;;  %v1442_v50 = vsel %vm1185_vm2, %v6187_v14, inf  ;;  %v678_v16 = vadd.s32 1808, %v2667_v3  ;;  %v1967_v61 = vsel %vm1185_vm2, %v6187_v14, -inf  ;;  %v6425_v14 = vld [vmem:[%s2660_s5 + $0x738] sm:$0xff] }
 0x1e1   : > { %v1685_v46 = vmin.f32 %v1434_v38, %v1684_v10  ;;  %v6190_v38 = vadd.s32 %v2673_v7, %v671_v2  ;;  %vm1186_vm3 = vcmp.lt.s32.totalorder %v6173_v26, %v2686_v13 }
 0x1e2   : > { %v2204_v10 = vmax.f32 %v1953_v29, %v2203_v33  ;;  %v1443_v58 = vsel %vm1186_vm3, %v6204_v28, inf  ;;  %v679_v33 = vadd.s32 1816, %v2667_v3  ;;  %v1968_v8 = vsel %vm1186_vm3, %v6204_v28, -inf  ;;  %v6442_v28 = vld [vmem:[%s2660_s5 + $0x740] sm:$0xff] }
 0x1e3   : > { %v1686_v55 = vmin.f32 %v1435_v11, %v1685_v46  ;;  %v6207_v11 = vadd.s32 %v2673_v7, %v672_v24  ;;  %vm1187_vm4 = vcmp.lt.s32.totalorder %v6190_v38, %v2686_v13 }
 0x1e4   : > { %v2205_v46 = vmax.f32 %v1954_v34, %v2204_v10  ;;  %v1444_v2 = vsel %vm1187_vm4, %v6221_v41, inf  ;;  %v680_v10 = vadd.s32 1824, %v2667_v3  ;;  %v1969_v26 = vsel %vm1187_vm4, %v6221_v41, -inf  ;;  %v6459_v41 = vld [vmem:[%s2660_s5 + $0x748] sm:$0xff] }
 0x1e5   : > { %v1687_v63 = vmin.f32 %v1436_v51, %v1686_v55  ;;  %v6224_v51 = vadd.s32 %v2673_v7, %v673_v35  ;;  %vm1188_vm5 = vcmp.lt.s32.totalorder %v6207_v11, %v2686_v13 }
 0x1e6   : > { %v2206_v55 = vmax.f32 %v1955_v39, %v2205_v46  ;;  %v1445_v24 = vsel %vm1188_vm5, %v6238_v18, inf  ;;  %v681_v46 = vadd.s32 1832, %v2667_v3  ;;  %v1970_v38 = vsel %vm1188_vm5, %v6238_v18, -inf  ;;  %v6476_v18 = vld [vmem:[%s2660_s5 + $0x750] sm:$0xff] }
 0x1e7   : > { %v1688_v9 = vmin.f32 %v1437_v60, %v1687_v63  ;;  %v6241_v60 = vadd.s32 %v2673_v7, %v674_v17  ;;  %vm1189_vm6 = vcmp.lt.s32.totalorder %v6224_v51, %v2686_v13 }
 0x1e8   : > { %v2207_v63 = vmax.f32 %v1956_v44, %v2206_v55  ;;  %v1446_v35 = vsel %vm1189_vm6, %v6255_v21, inf  ;;  %v682_v55 = vadd.s32 1840, %v2667_v3  ;;  %v1971_v11 = vsel %vm1189_vm6, %v6255_v21, -inf  ;;  %v6493_v21 = vld [vmem:[%s2660_s5 + $0x758] sm:$0xff] }
 0x1e9   : > { %v1689_v30 = vmin.f32 %v1438_v5, %v1688_v9  ;;  %v6258_v5 = vadd.s32 %v2673_v7, %v675_v48  ;;  %vm1190_vm7 = vcmp.lt.s32.totalorder %v6241_v60, %v2686_v13 }
 0x1ea   : > { %v2208_v9 = vmax.f32 %v1957_v49, %v2207_v63  ;;  %v1447_v17 = vsel %vm1190_vm7, %v6272_v27, inf  ;;  %v683_v63 = vadd.s32 1848, %v2667_v3  ;;  %v1972_v51 = vsel %vm1190_vm7, %v6272_v27, -inf  ;;  %v6510_v27 = vld [vmem:[%s2660_s5 + $0x760] sm:$0xff] }
 0x1eb   : > { %v1690_v40 = vmin.f32 %v1439_v25, %v1689_v30  ;;  %v6275_v25 = vadd.s32 %v2673_v7, %v676_v56  ;;  %vm1191_vm8 = vcmp.lt.s32.totalorder %v6258_v5, %v2686_v13 }
 0x1ec   : > { %v2209_v30 = vmax.f32 %v1958_v54, %v2208_v9  ;;  %v1448_v48 = vsel %vm1191_vm8, %v6289_v32, inf  ;;  %v684_v9 = vadd.s32 1856, %v2667_v3  ;;  %v1973_v60 = vsel %vm1191_vm8, %v6289_v32, -inf  ;;  %v6527_v32 = vld [vmem:[%s2660_s5 + $0x768] sm:$0xff] }
 0x1ed   : > { %v1691_v12 = vmin.f32 %v1440_v36, %v1690_v40  ;;  %v6292_v36 = vadd.s32 %v2673_v7, %v677_v1  ;;  %vm1192_vm9 = vcmp.lt.s32.totalorder %v6275_v25, %v2686_v13 }
 0x1ee   : > { %v2210_v40 = vmax.f32 %v1959_v59, %v2209_v30  ;;  %v1449_v56 = vsel %vm1192_vm9, %v6306_v37, inf  ;;  %v685_v30 = vadd.s32 1864, %v2667_v3  ;;  %v1974_v5 = vsel %vm1192_vm9, %v6306_v37, -inf  ;;  %v6544_v37 = vld [vmem:[%s2660_s5 + $0x770] sm:$0xff] }
 0x1ef   : > { %v1692_v15 = vmin.f32 %v1441_v45, %v1691_v12  ;;  %v6309_v45 = vadd.s32 %v2673_v7, %v678_v16  ;;  %vm1193_vm10 = vcmp.lt.s32.totalorder %v6292_v36, %v2686_v13 }
 0x1f0   : > { %v2211_v12 = vmax.f32 %v1960_v0, %v2210_v40  ;;  %v1450_v1 = vsel %vm1193_vm10, %v6323_v42, inf  ;;  %v686_v40 = vadd.s32 1872, %v2667_v3  ;;  %v1975_v25 = vsel %vm1193_vm10, %v6323_v42, -inf  ;;  %v6561_v42 = vld [vmem:[%s2660_s5 + $0x778] sm:$0xff] }
 0x1f1   : > { %v1693_v20 = vmin.f32 %v1442_v50, %v1692_v15  ;;  %v6326_v50 = vadd.s32 %v2673_v7, %v679_v33  ;;  %vm1194_vm11 = vcmp.lt.s32.totalorder %v6309_v45, %v2686_v13 }
 0x1f2   : > { %v2212_v15 = vmax.f32 %v1961_v6, %v2211_v12  ;;  %v1451_v16 = vsel %vm1194_vm11, %v6340_v47, inf  ;;  %v687_v12 = vadd.s32 1880, %v2667_v3  ;;  %v1976_v36 = vsel %vm1194_vm11, %v6340_v47, -inf  ;;  %v6578_v47 = vld [vmem:[%s2660_s5 + $0x780] sm:$0xff] }
 0x1f3   : > { %v1694_v23 = vmin.f32 %v1443_v58, %v1693_v20  ;;  %v6343_v58 = vadd.s32 %v2673_v7, %v680_v10  ;;  %vm1195_vm12 = vcmp.lt.s32.totalorder %v6326_v50, %v2686_v13 }
 0x1f4   : > { %v2213_v20 = vmax.f32 %v1962_v22, %v2212_v15  ;;  %v1452_v33 = vsel %vm1195_vm12, %v6357_v52, inf  ;;  %v688_v15 = vadd.s32 1888, %v2667_v3  ;;  %v1977_v45 = vsel %vm1195_vm12, %v6357_v52, -inf  ;;  %v6595_v52 = vld [vmem:[%s2660_s5 + $0x788] sm:$0xff] }
 0x1f5   : > { %v1695_v29 = vmin.f32 %v1444_v2, %v1694_v23  ;;  %v6360_v2 = vadd.s32 %v2673_v7, %v681_v46  ;;  %vm1196_vm13 = vcmp.lt.s32.totalorder %v6343_v58, %v2686_v13 }
 0x1f6   : > { %v2214_v23 = vmax.f32 %v1963_v31, %v2213_v20  ;;  %v1453_v10 = vsel %vm1196_vm13, %v6374_v57, inf  ;;  %v689_v20 = vadd.s32 1896, %v2667_v3  ;;  %v1978_v50 = vsel %vm1196_vm13, %v6374_v57, -inf }
 0x1f7   : > { %v1696_v34 = vmin.f32 %v1445_v24, %v1695_v29  ;;  %v6377_v24 = vadd.s32 %v2673_v7, %v682_v55  ;;  %vm1197_vm14 = vcmp.lt.s32.totalorder %v6360_v2, %v2686_v13 }
 0x1f8   : > { %v2215_v29 = vmax.f32 %v1964_v43, %v2214_v23  ;;  %v1454_v46 = vsel %vm1197_vm14, %v6391_v62, inf  ;;  %v690_v23 = vadd.s32 1904, %v2667_v3  ;;  %v1979_v57 = vsel %vm1197_vm14, %v6391_v62, -inf }
 0x1f9   : > { %v1697_v39 = vmin.f32 %v1446_v35, %v1696_v34  ;;  %v6394_v35 = vadd.s32 %v2673_v7, %v683_v63  ;;  %vm1198_vm15 = vcmp.lt.s32.totalorder %v6377_v24, %v2686_v13 }
 0x1fa   : > { %v2216_v34 = vmax.f32 %v1965_v19, %v2215_v29  ;;  %v1455_v55 = vsel %vm1198_vm15, %v6408_v4, inf  ;;  %v691_v29 = vadd.s32 1912, %v2667_v3  ;;  %v1980_v62 = vsel %vm1198_vm15, %v6408_v4, -inf }
 0x1fb   : > { %v1698_v44 = vmin.f32 %v1447_v17, %v1697_v39  ;;  %v6411_v17 = vadd.s32 %v2673_v7, %v684_v9  ;;  %vm1199_vm0 = vcmp.lt.s32.totalorder %v6394_v35, %v2686_v13 }
 0x1fc   : > { %v2217_v39 = vmax.f32 %v1966_v53, %v2216_v34  ;;  %v1456_v63 = vsel %vm1199_vm0, %v6425_v14, inf  ;;  %v692_v34 = vadd.s32 1920, %v2667_v3  ;;  %v1981_v4 = vsel %vm1199_vm0, %v6425_v14, -inf }
 0x1fd   : > { %v1699_v49 = vmin.f32 %v1448_v48, %v1698_v44  ;;  %v6428_v48 = vadd.s32 %v2673_v7, %v685_v30  ;;  %vm1200_vm1 = vcmp.lt.s32.totalorder %v6411_v17, %v2686_v13 }
 0x1fe   : > { %v2218_v44 = vmax.f32 %v1967_v61, %v2217_v39  ;;  %v1457_v9 = vsel %vm1200_vm1, %v6442_v28, inf  ;;  %v693_v39 = vadd.s32 1928, %v2667_v3  ;;  %v1982_v14 = vsel %vm1200_vm1, %v6442_v28, -inf }
 0x1ff   : > { %v1700_v54 = vmin.f32 %v1449_v56, %v1699_v49  ;;  %v6445_v56 = vadd.s32 %v2673_v7, %v686_v40  ;;  %vm1201_vm2 = vcmp.lt.s32.totalorder %v6428_v48, %v2686_v13 }
 0x200   : > { %v2219_v49 = vmax.f32 %v1968_v8, %v2218_v44  ;;  %v1458_v30 = vsel %vm1201_vm2, %v6459_v41, inf  ;;  %v694_v44 = vadd.s32 1936, %v2667_v3  ;;  %v1983_v28 = vsel %vm1201_vm2, %v6459_v41, -inf }
 0x201   : > { %v1701_v59 = vmin.f32 %v1450_v1, %v1700_v54  ;;  %v6462_v1 = vadd.s32 %v2673_v7, %v687_v12  ;;  %vm1202_vm3 = vcmp.lt.s32.totalorder %v6445_v56, %v2686_v13 }
 0x202   : > { %v2220_v54 = vmax.f32 %v1969_v26, %v2219_v49  ;;  %v1459_v40 = vsel %vm1202_vm3, %v6476_v18, inf  ;;  %v695_v49 = vadd.s32 1944, %v2667_v3  ;;  %v1984_v41 = vsel %vm1202_vm3, %v6476_v18, -inf }
 0x203   : > { %v1702_v0 = vmin.f32 %v1451_v16, %v1701_v59  ;;  %v6479_v16 = vadd.s32 %v2673_v7, %v688_v15  ;;  %vm1203_vm4 = vcmp.lt.s32.totalorder %v6462_v1, %v2686_v13 }
 0x204   : > { %v2221_v59 = vmax.f32 %v1970_v38, %v2220_v54  ;;  %v1460_v12 = vsel %vm1203_vm4, %v6493_v21, inf  ;;  %v696_v54 = vadd.s32 1952, %v2667_v3  ;;  %v1985_v18 = vsel %vm1203_vm4, %v6493_v21, -inf }
 0x205   : > { %v1703_v6 = vmin.f32 %v1452_v33, %v1702_v0  ;;  %v6496_v33 = vadd.s32 %v2673_v7, %v689_v20  ;;  %vm1204_vm5 = vcmp.lt.s32.totalorder %v6479_v16, %v2686_v13 }
 0x206   : > { %v2222_v0 = vmax.f32 %v1971_v11, %v2221_v59  ;;  %v1461_v15 = vsel %vm1204_vm5, %v6510_v27, inf  ;;  %v697_v59 = vadd.s32 1960, %v2667_v3  ;;  %v1986_v21 = vsel %vm1204_vm5, %v6510_v27, -inf }
 0x207   : > { %v1704_v22 = vmin.f32 %v1453_v10, %v1703_v6  ;;  %v6513_v10 = vadd.s32 %v2673_v7, %v690_v23  ;;  %vm1205_vm6 = vcmp.lt.s32.totalorder %v6496_v33, %v2686_v13 }
 0x208   : > { %v2223_v6 = vmax.f32 %v1972_v51, %v2222_v0  ;;  %v1462_v20 = vsel %vm1205_vm6, %v6527_v32, inf  ;;  %v6603_v0 = vadd.s32 8, %v2667_v3  ;;  %v1987_v27 = vsel %vm1205_vm6, %v6527_v32, -inf }
 0x209   : > { %v1705_v31 = vmin.f32 %v1454_v46, %v1704_v22  ;;  %v6530_v46 = vadd.s32 %v2673_v7, %v691_v29  ;;  %vm1206_vm7 = vcmp.lt.s32.totalorder %v6513_v10, %v2686_v13 }
 0x20a   : > { %v2224_v22 = vmax.f32 %v1973_v60, %v2223_v6  ;;  %v1463_v23 = vsel %vm1206_vm7, %v6544_v37, inf  ;;  %v6618_v60 = vadd.s32 %v2673_v7, %v696_v54  ;;  %v1988_v32 = vsel %vm1206_vm7, %v6544_v37, -inf }
 0x20b   : > { %v1706_v43 = vmin.f32 %v1455_v55, %v1705_v31  ;;  %v6547_v55 = vadd.s32 %v2673_v7, %v692_v34  ;;  %vm1207_vm8 = vcmp.lt.s32.totalorder %v6530_v46, %v2686_v13  ;;  %v698_v34 = vadd.s32 1968, %v2667_v3 }
 0x20c   : > { %v2225_v31 = vmax.f32 %v1974_v5, %v2224_v22  ;;  %v1464_v29 = vsel %vm1207_vm8, %v6561_v42, inf  ;;  %v6635_v5 = vld [vmem:[%s2660_s5 + $0x798] sm:$0xff]  ;;  %vm1212_vm13 = vcmp.lt.s32.totalorder %v6618_v60, %v2686_v13  ;;  %v1989_v37 = vsel %vm1207_vm8, %v6561_v42, -inf }
 0x20d   : > { %v1707_v19 = vmin.f32 %v1456_v63, %v1706_v43  ;;  %v6564_v63 = vadd.s32 %v2673_v7, %v693_v39  ;;  %vm1208_vm9 = vcmp.lt.s32.totalorder %v6547_v55, %v2686_v13  ;;  %v6623_v39 = vadd.s32 16, %v2667_v3 }
 0x20e   : > { %v2226_v43 = vmax.f32 %v1975_v25, %v2225_v31  ;;  %v1465_v58 = vsel %vm1208_vm9, %v6578_v47, inf  ;;  %v700_v25 = vadd.s32 1984, %v2667_v3  ;;  %v6658_v31 = vadd.s32 %v2673_v7, %v698_v34 }
 0x20f   : > { %v1708_v53 = vmin.f32 %v1457_v9, %v1707_v19  ;;  %v6581_v9 = vadd.s32 %v2673_v7, %v694_v44  ;;  %vm1209_vm10 = vcmp.lt.s32.totalorder %v6564_v63, %v2686_v13  ;;  %v703_v34 = vadd.s32 2008, %v2667_v3 }
 0x210   : > { %v2227_v19 = vmax.f32 %v1976_v36, %v2226_v43  ;;  %v1466_v2 = vsel %vm1209_vm10, %v6595_v52, inf  ;;  %v701_v36 = vadd.s32 1992, %v2667_v3  ;;  %v6676_v43 = vld [vmem:[%s2660_s5 + $0x7a8] sm:$0xff]  ;;  %vm1214_vm15 = vcmp.lt.s32.totalorder %v6658_v31, %v2686_v13 }
 0x211   : > { %v1709_v61 = vmin.f32 %v1458_v30, %v1708_v53  ;;  %v6598_v30 = vadd.s32 %v2673_v7, %v695_v49  ;;  %vm1210_vm11 = vcmp.lt.s32.totalorder %v6581_v9, %v2686_v13  ;;  %v1990_v42 = vsel %vm1208_vm9, %v6578_v47, -inf }
 0x212   : > { %v2228_v53 = vmax.f32 %v1977_v45, %v2227_v19  ;;  %v702_v19 = vadd.s32 2000, %v2667_v3  ;;  %v1991_v47 = vsel %vm1209_vm10, %v6595_v52, -inf }
 0x213   : > { %v1710_v8 = vmin.f32 %v1459_v40, %v1709_v61  ;;  %v6615_v40 = vld [vmem:[%s2660_s5 + $0x790] sm:$0xff]  ;;  %vm1211_vm12 = vcmp.lt.s32.totalorder %v6598_v30, %v2686_v13 }
 0x214   : > { %v2229_v6 = vmax.f32 %v1978_v50, %v2228_v53  ;;  %v1467_v24 = vsel %vm1210_vm11, %v6615_v40, inf  ;;  %v1468_v35 = vsel %vm1211_vm12, %v6635_v5, inf  ;;  %v457_v53 = vadd.s32 40, %v2667_v3 }
 0x215   : > { %v1711_v26 = vmin.f32 %v1460_v12, %v1710_v8  ;;  %v699_v12 = vadd.s32 1976, %v2667_v3  ;;  %v6638_v8 = vadd.s32 %v2673_v7, %v697_v59  ;;  %v6694_v59 = vld [vmem:[%s2660_s5 + $0x7b0] sm:$0xff]  ;;  %v1992_v52 = vsel %vm1210_vm11, %v6615_v40, -inf }
 0x216   : > { %v2230_v44 = vmax.f32 %v1979_v57, %v2229_v6  ;;  %v6715_v57 = vadd.s32 %v2673_v7, %v701_v36  ;;  %v1471_v56 = vsel %vm1214_vm15, %v6694_v59, inf }
 0x217   : > { %v1712_v38 = vmin.f32 %v1461_v15, %v1711_v26  ;;  %v6643_v15 = vadd.s32 24, %v2667_v3  ;;  %v6655_v26 = vld [vmem:[%s2660_s5 + $0x7a0] sm:$0xff]  ;;  %v6679_v54 = vadd.s32 %v2673_v7, %v699_v12  ;;  %vm1213_vm14 = vcmp.lt.s32.totalorder %v6638_v8, %v2686_v13 }
 0x218   : > { %v1469_v17 = vsel %vm1212_vm13, %v6655_v26, inf  ;;  %v1470_v48 = vsel %vm1213_vm14, %v6676_v43, inf  ;;  %v458_v12 = vadd.s32 48, %v2667_v3  ;;  %vm1217_vm2 = vcmp.lt.s32.totalorder %v6715_v57, %v2686_v13 }
 0x219   : > { %v1713_v11 = vmin.f32 %v1462_v20, %v1712_v38  ;;  %v2231_v20 = vmax.f32 %v1980_v62, %v2230_v44  ;;  %v6665_v38 = vadd.s32 %v2673_v7, %v2667_v3  ;;  %vm1215_vm0 = vcmp.lt.s32.totalorder %v6679_v54, %v2686_v13  ;;  %v6730_v62 = vld [vmem:[%s2660_s5 + $0x7c0] sm:$0xff] }
 0x21a   : > { %v1995_v60 = vsel %vm1213_vm14, %v6676_v43, -inf }
 0x21b   : > { %v1714_v51 = vmin.f32 %v1463_v23, %v1713_v11  ;;  %v2232_v45 = vmax.f32 %v1981_v4, %v2231_v20  ;;  %v456_v11 = vadd.s32 32, %v2667_v3  ;;  %v705_v4 = vadd.s32 2024, %v2667_v3 }
 0x21c   : > { %v6751_v20 = vadd.s32 %v2673_v7, %v703_v34  ;;  %vm7052_vm7 = vcmp.lt.s32.totalorder %v6665_v38, %v2686_v13 }
 0x21d   : > { %v1715_v61 = vmin.f32 %v1464_v29, %v1714_v51  ;;  %v6697_v29 = vadd.s32 %v2673_v7, %v700_v25  ;;  %v2233_v51 = vmax.f32 %v1982_v14, %v2232_v45  ;;  %v706_v14 = vadd.s32 2032, %v2667_v3  ;;  %v6769_v45 = vld [vmem:[%s2660_s5 + $0x7d0] sm:$0xff] }
 0x21e   : > { %v6793_v34 = vadd.s32 %v2673_v7, %v705_v4  ;;  %vm7050_vm4 = vcmp.lt.s32.totalorder %v6751_v20, %v2686_v13  ;;  %v6856_v4 = vld [vmem:[%s2660_s5] sm:$0xff]  ;;  %vm7055_vm14 = vcmp.lt.s32.totalorder %v6751_v20, %v2686_v13 }
 0x21f   : > { %v1716_v22 = vmin.f32 %v1465_v58, %v1715_v61  ;;  %v6712_v58 = vld [vmem:[%s2660_s5 + $0x7b8] sm:$0xff]  ;;  %v2234_v6 = vmax.f32 %v1983_v28, %v2233_v51  ;;  %vm1216_vm1 = vcmp.lt.s32.totalorder %v6697_v29, %v2686_v13  ;;  %v707_v28 = vadd.s32 2040, %v2667_v3 }
 0x220   : > { %v1472_v1 = vsel %vm1215_vm0, %v6712_v58, inf  ;;  %v1473_v16 = vsel %vm1216_vm1, %v6730_v62, inf  ;;  %v6790_v51 = vld [vmem:[%s2660_s5 + $0x7d8] sm:$0xff]  ;;  %vm1221_vm6 = vcmp.lt.s32.totalorder %v6793_v34, %v2686_v13  ;;  %v1997_v43 = vsel %vm1215_vm0, %v6712_v58, -inf }
 0x221   : > { %v1717_v49 = vmin.f32 %v1466_v2, %v1716_v22  ;;  %v704_v2 = vadd.s32 2016, %v2667_v3  ;;  %v6733_v22 = vadd.s32 %v2673_v7, %v702_v19  ;;  %v2235_v25 = vmax.f32 %v1984_v41, %v2234_v6 }
 0x222   : > { %v6802_v41 = vadd.s32 %v2673_v7, %v456_v11  ;;  %v6816_v6 = vadd.s32 %v2673_v7, %v706_v14  ;;  %v1476_v46 = vsel %vm7050_vm4, %v6790_v51, inf  ;;  %v450_v14 = vld [vmem:[%s2660_s5 + $0x7f8] sm:$0xff]  ;;  %v2001_v29 = vsel %vm7055_vm14, %v6790_v51, -inf }
 0x223   : > { %v1718_v23 = vmin.f32 %v1467_v24, %v1717_v49  ;;  %v459_v24 = vadd.s32 56, %v2667_v3  ;;  %v6748_v49 = vld [vmem:[%s2660_s5 + $0x7c8] sm:$0xff]  ;;  %v6772_v19 = vadd.s32 %v2673_v7, %v704_v2  ;;  %vm7051_vm3 = vcmp.lt.s32.totalorder %v6733_v22, %v2686_v13 }
 0x224   : > { %v1474_v33 = vsel %vm1217_vm2, %v6748_v49, inf  ;;  %v1475_v10 = vsel %vm7051_vm3, %v6769_v45, inf  ;;  %v6821_v2 = vadd.s32 %v2673_v7, %v457_v53  ;;  %vm972_vm8 = vcmp.lt.s32.totalorder %v6802_v41, %v2686_v13 }
 0x225   : > { %v1719_v50 = vmin.f32 %v1468_v35, %v1718_v23  ;;  %v2236_v35 = vmax.f32 %v1985_v18, %v2235_v25  ;;  %v6758_v23 = vadd.s32 %v2673_v7, %v6603_v0  ;;  %vm7049_vm5 = vcmp.lt.s32.totalorder %v6772_v19, %v2686_v13  ;;  %v6835_v18 = vld [vmem:[%s2660_s5 + $0x7e8] sm:$0xff] }
 0x226   : > { %v6843_v25 = vadd.s32 %v2673_v7, %v459_v24  ;;  %vm1222_vm9 = vcmp.lt.s32.totalorder %v6816_v6, %v2686_v13  ;;  %v1478_v63 = vsel %vm1221_vm6, %v6835_v18, inf  ;;  %vm973_vm4 = vcmp.lt.s32.totalorder %v6821_v2, %v2686_v13 }
 0x227   : > { %v1720_v61 = vmin.f32 %v1469_v17, %v1719_v50  ;;  %v2237_v17 = vmax.f32 %v1986_v21, %v2236_v35  ;;  %v6779_v50 = vadd.s32 %v2673_v7, %v6623_v39  ;;  %v200_v35 = vld [vmem:[%s2660_s5 + $0x28] sm:$0xff]  ;;  %v1999_v31 = vsel %vm1217_vm2, %v6748_v49, -inf }
 0x228   : > { %vm7057_vm0 = vcmp.lt.s32.totalorder %v6665_v38, %v2686_v13  ;;  %v1755_v38 = vsel %vm973_vm4, %v200_v35, -inf }
 0x229   : > { %v1721_v44 = vmin.f32 %v1470_v48, %v1720_v61  ;;  %v2238_v39 = vmax.f32 %v1987_v27, %v2237_v17  ;;  %v6799_v48 = vadd.s32 %v2673_v7, %v6643_v15  ;;  %v6813_v61 = vld [vmem:[%s2660_s5 + $0x7e0] sm:$0xff]  ;;  %vm970_vm10 = vcmp.lt.s32.totalorder %v6779_v50, %v2686_v13 }
 0x22a   : > { %v1477_v55 = vsel %vm7049_vm5, %v6813_v61, inf  ;;  %vm969_vm5 = vcmp.lt.s32.totalorder %v6758_v23, %v2686_v13  ;;  %v1993_v17 = vsel %vm1211_vm12, %v6635_v5, -inf  ;;  %v1994_v5 = vsel %vm1212_vm13, %v6655_v26, -inf }
 0x22b   : > { %v1722_v36 = vmin.f32 %v1471_v56, %v1721_v44  ;;  %v2239_v11 = vmax.f32 %v1988_v32, %v2238_v39  ;;  %v6824_v56 = vadd.s32 %v2673_v7, %v458_v12  ;;  %v6838_v44 = vadd.s32 %v2673_v7, %v707_v28  ;;  %v6862_v7 = vld [vmem:[%s2660_s5 + $0x7f0] sm:$0xff] }
 0x22c   : > { %v1479_v40 = vsel %vm1222_vm9, %v6862_v7, inf  ;;  %v197_v28 = vld [vmem:[%s2660_s5 + $0x10] sm:$0xff]  ;;  %vm971_vm11 = vcmp.lt.s32.totalorder %v6799_v48, %v2686_v13  ;;  %vm975_vm12 = vcmp.lt.s32.totalorder %v6843_v25, %v2686_v13  ;;  %vm7054_vm13 = vcmp.lt.s32.totalorder %v6733_v22, %v2686_v13 }
 0x22d   : > { %v1723_v0 = vmin.f32 %v1472_v1, %v1722_v36  ;;  %v2240_v12 = vmax.f32 %v1989_v37, %v2239_v11  ;;  %v6859_v1 = vld [vmem:[%s2660_s5 + $0x20] sm:$0xff]  ;;  %v196_v36 = vld [vmem:[%s2660_s5 + $0x8] sm:$0xff]  ;;  %vm1223_vm3 = vcmp.lt.s32.totalorder %v6838_v44, %v2686_v13  ;;  %v198_v37 = vld [vmem:[%s2660_s5 + $0x18] sm:$0xff]  ;;  %v2000_v54 = vsel %vm7054_vm13, %v6769_v45, -inf }
 0x22e   : > { %v1229_v9 = vsel %vm972_vm8, %v6859_v1, inf  ;;  %v1226_v39 = vsel %vm969_vm5, %v196_v36, inf  ;;  %v1480_v30 = vsel %vm1223_vm3, %v450_v14, inf  ;;  %v2003_v22 = vsel %vm1221_vm6, %v6835_v18, -inf }
 0x22f   : > { %v1724_v3 = vmin.f32 %v1473_v16, %v1723_v0  ;;  %v2241_v21 = vmax.f32 %v1990_v42, %v2240_v12  ;;  %v1225_v0 = vsel %vm7052_vm7, %v6856_v4, inf  ;;  %vm974_vm7 = vcmp.lt.s32.totalorder %v6824_v56, %v2686_v13 }
 0x230   : > { %v1754_v20 = vsel %vm972_vm8, %v6859_v1, -inf  ;;  %v1751_v34 = vsel %vm969_vm5, %v196_v36, -inf  ;;  %v1752_v6 = vsel %vm970_vm10, %v197_v28, -inf  ;;  %v1753_v2 = vsel %vm971_vm11, %v198_v37, -inf }
 0x231   : > { %v1725_v15 = vmin.f32 %v1474_v33, %v1724_v3  ;;  %v2242_v27 = vmax.f32 %v1991_v47, %v2241_v21  ;;  %v201_v33 = vld [vmem:[%s2660_s5 + $0x30] sm:$0xff]  ;;  %v2007_v1 = vmax.f32 %v1751_v34, %v1755_v38 }
 0x232   : > { %v1231_v12 = vsel %vm974_vm7, %v201_v33, inf }
 0x233   : > { %v1726_v53 = vmin.f32 %v1475_v10, %v1725_v15  ;;  %v2243_v3 = vmax.f32 %v1992_v52, %v2242_v27  ;;  %v1230_v10 = vsel %vm973_vm4, %v200_v35, inf  ;;  %v202_v15 = vld [vmem:[%s2660_s5 + $0x38] sm:$0xff] }
 0x234   : > { %v1232_v21 = vsel %vm975_vm12, %v202_v15, inf  ;;  %v1757_v44 = vsel %vm975_vm12, %v202_v15, -inf }
 0x235   : > { %v1727_v24 = vmin.f32 %v1476_v46, %v1726_v53  ;;  %v1481_v46 = vmin.f32 %v1225_v0, %v1229_v9  ;;  %v2244_v42 = vmax.f32 %v1993_v17, %v2243_v3  ;;  %v1227_v53 = vsel %vm970_vm10, %v197_v28, inf }
 0x237   : > { %v1728_v16 = vmin.f32 %v1477_v55, %v1727_v24  ;;  %v1482_v55 = vmin.f32 %v1226_v39, %v1230_v10  ;;  %v2245_v47 = vmax.f32 %v1994_v5, %v2244_v42  ;;  %v1228_v24 = vsel %vm971_vm11, %v198_v37, inf }
 0x238   : > { %v1484_v0 = vmin.f32 %v1228_v24, %v1232_v21  ;;  %v1750_v39 = vsel %vm7057_vm0, %v6856_v4, -inf  ;;  %v1756_v4 = vsel %vm974_vm7, %v201_v33, -inf }
 0x239   : > { %v1729_v32 = vmin.f32 %v1478_v63, %v1728_v16  ;;  %v1996_v63 = vsel %vm1214_vm15, %v6694_v59, -inf  ;;  %v1483_v16 = vmin.f32 %v1227_v53, %v1231_v12  ;;  %v2246_v8 = vmax.f32 %v1995_v60, %v2245_v47  ;;  %v1224_v12 = vld [vmem:[#allocation6] sm:$0x1] }
 0x23a   : > { %vm7056_vm15 = vcmp.lt.s32.totalorder %v6772_v19, %v2686_v13  ;;  %v2004_v19 = vsel %vm1222_vm9, %v6862_v7, -inf  ;;  %v2006_v18 = vmax.f32 %v1750_v39, %v1754_v20  ;;  %v2008_v36 = vmax.f32 %v1752_v6, %v1756_v4 }
 0x23b   : > { %v1730_v11 = vmin.f32 %v1479_v40, %v1729_v32  ;;  %v2247_v9 = vmax.f32 %v1996_v63, %v2246_v8  ;;  %v1998_v40 = vsel %vm1216_vm1, %v6730_v62, -inf  ;;  %v2002_v57 = vsel %vm7056_vm15, %v6813_v61, -inf }
 0x23c   : > { %v2005_v61 = vsel %vm1223_vm3, %v450_v14, -inf  ;;  %v2009_v14 = vmax.f32 %v1753_v2, %v1757_v44  ;;  %vm1747_vm1 = vcmask 0  }
 0x23d   : > { %v1731_v26 = vmin.f32 %v1480_v30, %v1730_v11  ;;  %v2248_v32 = vmax.f32 %v1997_v43, %v2247_v9 }
 0x23f   : > { %v1732_v52 = vmin.f32 %v1481_v46, %v1731_v26  ;;  %v2249_v3 = vmax.f32 %v1998_v40, %v2248_v32 }
 0x241   : > { %v1733_v27 = vmin.f32 %v1482_v55, %v1732_v52  ;;  %v2250_v58 = vmax.f32 %v1999_v31, %v2249_v3 }
 0x243   : > { %v1734_v17 = vmin.f32 %v1483_v16, %v1733_v27  ;;  %v2251_v62 = vmax.f32 %v2000_v54, %v2250_v58 }
 0x245   : > { %v1735_v59 = vmin.f32 %v1484_v0, %v1734_v17  ;;  %v2252_v49 = vmax.f32 %v2001_v29, %v2251_v62 }
 0x247   : > { %1736 = vmin.xlane.f32.xlu0 %v1735_v59  ;;  %v2253_v45 = vmax.f32 %v2002_v57, %v2252_v49 }
 0x249   : > { %v2254_v51 = vmax.f32 %v2003_v22, %v2253_v45 }
 0x24b   : > { %v2255_v41 = vmax.f32 %v2004_v19, %v2254_v51 }
 0x24d   : > { %v2256_v23 = vmax.f32 %v2005_v61, %v2255_v41 }
 0x24f   : > { %v2257_v7 = vmax.f32 %v2006_v18, %v2256_v23 }
 0x251   : > { %v2258_v35 = vmax.f32 %v2007_v1, %v2257_v7 }
 0x253   : > { %v2259_v50 = vmax.f32 %v2008_v36, %v2258_v35 }
 0x255   : > { %v2260_v28 = vmax.f32 %v2009_v14, %v2259_v50 }
 0x257   : > { %2261 = vmax.xlane.f32.xlu0 %v2260_v28 }
 0x2d0   : > { %v1737_v10 = vpop.xlane.xlu0 %1736 }
 0x2d1   : > { %v1738_v56 = vrot.slane %v1737_v10, 4 }
 0x2d3   : > { %v1739_v33 = vmin.f32 %v1737_v10, %v1738_v56 }
 0x2d5   : > { %v1740_v30 = vrot.slane %v1739_v33, 2 }
 0x2d7   : > { %v1741_v5 = vmin.f32 %v1739_v33, %v1740_v30 }
 0x2d9   : > { %v1742_v11 = vrot.slane %v1741_v5, 1 }
 0x2db   : > { %v1743_v46 = vmin.f32 %v1741_v5, %v1742_v11 }
 0x2dd   : > { %2373 = vpush %v1743_v46 }
 0x2e0   : > { %v2262_v48 = vpop.xlane.xlu0 %2261 }
 0x2e1   : > { %v2263_v37 = vrot.slane %v2262_v48, 4 }
 0x2e3   : > { %v2264_v13 = vmax.f32 %v2262_v48, %v2263_v37 }
 0x2e5   : > { %v2265_v25 = vrot.slane %v2264_v13, 2 }
 0x2e7   : > { %v2266_v15 = vmax.f32 %v2264_v13, %v2265_v25 }
 0x2e9   : > { %v2267_v42 = vrot.slane %v2266_v15, 1 }
 0x2eb   : > { %v2268_v53 = vmax.f32 %v2266_v15, %v2267_v42 }
 0x2ed   : > { %2375 = vpush %v2268_v53 }
 0x30e   : > { %s2374_s6 = spop %2373 }
 0x30f   : > { %v1745_v60 = vstv %s2374_s6 }
 0x310   : > { %v1746_v26 = vmin.f32 %v1224_v12, %v1745_v60 }
 0x312   : > { %1748 = vst.msk [vmem:[#allocation6] sm:$0x1] %vm1747_vm1, %v1746_v26 }
 0x313   : > { %2467 = shalt.err (!%p2464_p8)
}
 0x314   : > { %2379 = dma.vmem_to_hbm [thread:$0]  (%p2386_p6), %s2281_s29, 16, %s7047_s2, [#allocation5]   ;;  %v1749_v55 = vld [vmem:[#allocation7] sm:$0x1] }
 0x315   : > { %s2552_s11 = smov [#allocation7]  }
 0x316   : > { %s2291_s12 = sshll.u32 %s2552_s11, 4  ;;  %s2292_s12 = int_to_ptr.vmem [resolvable:$true] %s2291_s12 }
 0x317   : > { %s2478_s14 = scalar_lea.vmem %s2292_s12, 16  ;;  %s2484_s19 = scalar_lea.vmem %s2292_s12, 32 }
 0x318   : > { %p2479_p10 = scmp.ne.s32.totalorder %s2292_s12, %s2478_s14  ;;  %p2485_p13 = scmp.lt.s32.totalorder %s2292_s12, %s2292_s12 }
 0x319   : > { %p2486_p0 = scmp.lt.s32.totalorder %s2484_s19, %s2478_s14 }
 0x31a   : > { %p2480_p11 = pnand %p2479_p10, %p2386_p6 }
 0x31b   : > { %p2487_p9 = por %p2486_p0, %p2485_p13 }
 0x31c   : > { %p2481_p12 = pneg %p2480_p11 }
 0x31e   : > { %s2376_s13 = spop %2375  ;;  %p2488_p1 = pnand %p2487_p9, %p2481_p12 }
 0x31f   : > { %v2270_v47 = vstv %s2376_s13 }
 0x320   : > { %v2271_v24 = vmax.f32 %v1749_v55, %v2270_v47 }
 0x322   : > { %2272 = vst.msk [vmem:[#allocation7] sm:$0x1] %vm1747_vm1, %v2271_v24 }
 0x323   : > { %2491 = shalt.err (!%p2488_p1)
}
 0x324   : > { %2381 = dma.vmem_to_hbm [thread:$0]  (%p2386_p6), %s2292_s12, 16, %s7048_s3, [#allocation8]  }
 0x325   : > { %2523 = dma.done.wait (%p2386_p6), [#allocation5], 16  }
 0x326   : > { %2525 = vsyncadd (%p2386_p6), [#allocation5], 4294967280 }
 0x327   : > { %2527 = dma.done.wait (%p2386_p6), [#allocation8], 16  }
 0x328   : > { %2529 = vsyncadd (%p2386_p6), [#allocation8], 4294967280 }
 0x329 PF: > { %p17_p2 = scmp.ge.s32.totalorder %s2598_s18, 4   ;;  %s7058_s14 = smov %s2536_s15 }
 0x32a   : > { %s7059_s15 = smov %s2540_s16  ;;  %s7060_s16 = smov %s2608_s21 }
 0x32b   : > { %s7061_s17 = smov %s2598_s18  ;;  %19 = sbr.rel (!%p17_p2) target bundleno = 7 (0x7), region = 77 }
 0x330   :  { %2308 = vsyncpa [#allocation4], 1 }
 0x331   :  { %2310 = vsyncpa [#allocation4 + $0x1], 1 }
 0x332   :  { %2311 = vsyncpa [#allocation5], 1 }
 0x333   :  { %2313 = vsyncpa [#allocation5 + $0x1], 1 }
 0x334   :  { %2314 = vsyncpa [#allocation8], 1 }

</bundles_post_ra>
